<compile_context>
chip_gen: v6e
topology: v6e:2x2x1
jax: 0.10.0
libtpu: 0.0.40
codegen_flags: <defaults>
</compile_context>

<pallas_src>
import functools
import math

import numpy as np

import jax
import jax.numpy as jnp
from jax.experimental import pallas as pl
from jax.experimental.pallas import tpu as pltpu

LANE = 128


def _round_up(v, m):
    return ((v + m - 1) // m) * m


def _cdiv(a, b):
    return (a + b - 1) // b


@functools.lru_cache(maxsize=None)
def _vmem_limit_bytes():
    # Generation-aware VMEM budget (v5e/v6e: 128 MiB, v7x: 64 MiB per TC).
    try:
        info = pltpu.get_tpu_info()
        cap = int(getattr(info, "vmem_capacity_bytes", 0) or 0)
        if cap > 0:
            return int(min((cap * 3) // 4, 96 * 1024 * 1024))
    except Exception:
        pass
    return 64 * 1024 * 1024


# ----------------------------------------------------------------------------
# Pallas kernel 1: fused  (im2col-matmul, bf16 MXU) + bias (+ optional PReLU).
# BatchNorm scale is folded into the weight matrix by the wrapper.
# ----------------------------------------------------------------------------
def _matmul_bias_act_kernel(x_ref, w_ref, ba_ref, o_ref, *, apply_prelu):
    # x_ref: (TM, Kp) bf16, w_ref: (Kp, Np) bf16, ba_ref: (2, Np) f32
    y = jnp.dot(x_ref[...], w_ref[...], preferred_element_type=jnp.float32)
    ba = ba_ref[...]
    y = y + ba[0:1, :]
    if apply_prelu:
        y = jnp.where(y >= 0.0, y, ba[1:2, :] * y)
    o_ref[...] = y.astype(o_ref.dtype)


def fused_matmul_bias_prelu(x, w, bias, alpha=None, *, out_dtype=jnp.bfloat16,
                            max_tile_m=512):
    """y = act(x @ w + bias); act = PReLU(alpha) if alpha is not None, else id."""
    M, K = x.shape
    _, Nc = w.shape
    Kp = _round_up(K, LANE)
    Np = _round_up(Nc, LANE)
    n_tiles = _cdiv(M, max_tile_m)
    tm = _round_up(_cdiv(M, n_tiles), 16)        # balanced, bf16-sublane friendly
    Mp = _round_up(M, tm)

    xp = jnp.zeros((Mp, Kp), jnp.bfloat16).at[:M, :K].set(x.astype(jnp.bfloat16))
    wp = jnp.zeros((Kp, Np), jnp.bfloat16).at[:K, :Nc].set(w.astype(jnp.bfloat16))
    ba = jnp.zeros((2, Np), jnp.float32).at[0, :Nc].set(bias.astype(jnp.float32))
    if alpha is not None:
        ba = ba.at[1, :Nc].set(alpha.astype(jnp.float32))

    out_bytes = Mp * Np * jnp.dtype(out_dtype).itemsize
    cost = pl.CostEstimate(
        flops=2 * Mp * Kp * Np, transcendentals=0,
        bytes_accessed=Mp * Kp * 2 + Kp * Np * 2 + 2 * Np * 4 + out_bytes)

    out = pl.pallas_call(
        functools.partial(_matmul_bias_act_kernel, apply_prelu=alpha is not None),
        out_shape=jax.ShapeDtypeStruct((Mp, Np), out_dtype),
        grid_spec=pltpu.PrefetchScalarGridSpec(
            num_scalar_prefetch=0,
            grid=(Mp // tm,),
            in_specs=[
                pl.BlockSpec((tm, Kp), lambda i: (i, 0)),
                pl.BlockSpec((Kp, Np), lambda i: (0, 0)),
                pl.BlockSpec((2, Np), lambda i: (0, 0)),
            ],
            out_specs=pl.BlockSpec((tm, Np), lambda i: (i, 0)),
        ),
        compiler_params=pltpu.CompilerParams(
            dimension_semantics=("parallel",),
            vmem_limit_bytes=_vmem_limit_bytes()),
        cost_estimate=cost,
    )(xp, wp, ba)
    return out[:M, :Nc]


# ----------------------------------------------------------------------------
# Pallas kernel 2: fused 6-layer convblock (+ residual), activation resident in
# VMEM, grid over batch.  The padded bf16 buffer holds three horizontally
# pre-shifted / pre-masked variants (lane blocks [ox=-1 | ox=0 | ox=+1]); the
# three vertical taps are row-aligned slices, each feeding one K=3*Cp matmul.
# ----------------------------------------------------------------------------
def _convblock_kernel(feat_ref, w_ref, ba_ref, o_ref, buf_ref, *,
                      wb, cp, pad, n_layers):
    M = feat_ref.shape[0]                       # M = Hb*Wb (flat rows)

    # Column-boundary pre-masks computed in-kernel (no HBM mask operand).
    col = jax.lax.broadcasted_iota(jnp.int32, (M, cp), 0) % wb
    keep_m = col != (wb - 1)                    # pre-mask for the ox = -1 block
    keep_p = col != 0                           # pre-mask for the ox = +1 block

    # Zero the halo bands once; the per-layer stores below overwrite only the
    # interior rows of each lane block, so the halos stay zero across layers.
    zeros_band = jnp.zeros((pad + 8, 3 * cp), jnp.bfloat16)
    buf_ref[0:pad + 8, :] = zeros_band
    buf_ref[pad + M - 8:2 * pad + M, :] = zeros_band

    cur = feat_ref[...].astype(jnp.float32)
    for layer in range(n_layers):
        # Write the three pre-shifted / pre-masked variants (mask in f32, then
        # cast to bf16 -> v5e-friendly; bf16 halves VMEM + window load traffic).
        buf_ref[pad + 1:pad + 1 + M, 0:cp] = (
            jnp.where(keep_m, cur, 0.0).astype(jnp.bfloat16))       # ox = -1
        buf_ref[pad:pad + M, cp:2 * cp] = cur.astype(jnp.bfloat16)  # ox =  0
        buf_ref[pad - 1:pad - 1 + M, 2 * cp:3 * cp] = (
            jnp.where(keep_p, cur, 0.0).astype(jnp.bfloat16))       # ox = +1

        acc = None
        for dyi in range(3):                    # ky = dyi, row offset oy = dyi-1
            start = pad + (dyi - 1) * wb        # aligned when wb % 8 == 0
            win = buf_ref[start:start + M, :]   # (M, 3*cp) bf16
            part = jnp.dot(win, w_ref[layer * 3 + dyi],
                           preferred_element_type=jnp.float32)
            acc = part if acc is None else acc + part

        ba = ba_ref[layer]                      # (2, cp): bias row, alpha row
        y = acc + ba[0:1, :]
        cur = jnp.where(y >= 0.0, y, ba[1:2, :] * y)

    # Residual add: re-read the resident input block (no long-lived x0).
    o_ref[...] = (cur + feat_ref[...].astype(jnp.float32)).astype(o_ref.dtype)


def fused_convblock(feat_nhwc, layer_params):
    # TODO(synk): for v7x-scale resolutions add a row-block (halo) M tiling +
    # an M-parallel grid axis so both TensorCores are used when batch == 1.
    N, Hb, Wb, C2 = feat_nhwc.shape
    Cp = _round_up(C2, LANE)
    M = Hb * Wb
    pad = _round_up(max(Wb, 1), 8)
    n_layers = len(layer_params)

    featp = jnp.zeros((N, M, Cp), jnp.bfloat16).at[:, :, :C2].set(
        feat_nhwc.reshape(N, M, C2).astype(jnp.bfloat16))

    # Pack weights (BN scale folded) in concat-K form: one (3*Cp, Cp) block per
    # (layer, ky); K rows ordered [ox=-1 | ox=0 | ox=+1] to match the buffer.
    W = jnp.zeros((n_layers, 3, 3, Cp, Cp), jnp.float32)
    BA = jnp.zeros((n_layers, 2, Cp), jnp.float32)
    for l, p in enumerate(layer_params):
        w_s = p["w"] * p["scale"][:, None, None, None]       # (Co,Ci,ky,kx)
        t = jnp.transpose(w_s, (2, 3, 1, 0))                  # (ky,kx,Ci,Co)
        W = W.at[l, :, :, :C2, :C2].set(t)
        BA = BA.at[l, 0, :C2].set(p["bias"])
        BA = BA.at[l, 1, :C2].set(p["alpha"])
    W = W.reshape(n_layers * 3, 3 * Cp, Cp).astype(jnp.bfloat16)

    kern = functools.partial(_convblock_kernel, wb=Wb, cp=Cp, pad=pad,
                             n_layers=n_layers)
    flops = N * n_layers * 3 * 2 * M * (3 * Cp) * Cp
    bytes_accessed = int(featp.size) * 2 + int(W.size) * 2 + int(BA.size) * 4 \
        + N * M * Cp * 2
    cost = pl.CostEstimate(flops=flops, transcendentals=0,
                           bytes_accessed=bytes_accessed)

    out = pl.pallas_call(
        kern,
        out_shape=jax.ShapeDtypeStruct((N, M, Cp), jnp.bfloat16),
        grid_spec=pltpu.PrefetchScalarGridSpec(
            num_scalar_prefetch=0,
            grid=(N,),
            in_specs=[
                pl.BlockSpec((None, M, Cp), lambda n: (n, 0, 0)),
                pl.BlockSpec((n_layers * 3, 3 * Cp, Cp), lambda n: (0, 0, 0)),
                pl.BlockSpec((n_layers, 2, Cp), lambda n: (0, 0, 0)),
            ],
            out_specs=pl.BlockSpec((None, M, Cp), lambda n: (n, 0, 0)),
            scratch_shapes=[pltpu.VMEM((2 * pad + M, 3 * Cp), jnp.bfloat16)],
        ),
        compiler_params=pltpu.CompilerParams(
            dimension_semantics=("parallel",),
            vmem_limit_bytes=_vmem_limit_bytes()),
        cost_estimate=cost,
    )(featp, W, BA)
    return out[:, :, :C2].reshape(N, Hb, Wb, C2)


# ----------------------------------------------------------------------------
# Plain-JAX glue (fused by jit): im2col, bilinear resize, layout helpers.
# ----------------------------------------------------------------------------
def im2col(x_nhwc, kh, kw, stride, pad):
    # TODO(synk): the stride-2 conv0 path keeps wrapper-side im2col (jit-fused,
    # bf16 patches); only the stride-1 convblock does im2col inside Pallas.
    N, H, W, C = x_nhwc.shape
    xp = jnp.pad(x_nhwc, ((0, 0), (pad, pad), (pad, pad), (0, 0)))
    Ho = (H + 2 * pad - kh) // stride + 1
    Wo = (W + 2 * pad - kw) // stride + 1
    cols = []
    for dy in range(kh):
        for dx in range(kw):
            cols.append(xp[:, dy:dy + stride * Ho:stride, dx:dx + stride * Wo:stride, :])
    patches = jnp.concatenate(cols, axis=-1)  # (N, Ho, Wo, kh*kw*C) ordered (dy, dx, ci)
    return patches.reshape(N * Ho * Wo, kh * kw * C), (N, Ho, Wo)


def _resize_matrix(in_size, out_size):
    # PyTorch F.interpolate(mode='bilinear', align_corners=False) weights.
    M = np.zeros((out_size, in_size), np.float32)
    s = in_size / out_size
    for i in range(out_size):
        src = (i + 0.5) * s - 0.5
        src = max(src, 0.0)
        i0 = min(int(math.floor(src)), in_size - 1)
        i1 = min(i0 + 1, in_size - 1)
        f = src - i0
        M[i, i0] += 1.0 - f
        M[i, i1] += f
    return jnp.asarray(M)


def bilinear_resize_nhwc(x, out_h, out_w):
    # TODO(synk): interpolation stays as small dense matmuls in plain-JAX glue.
    N, H, W, C = x.shape
    if out_h == H and out_w == W:
        return x
    Mh = _resize_matrix(H, out_h)
    Mw = _resize_matrix(W, out_w)
    y = jnp.einsum("ph,nhwc->npwc", Mh, x)
    y = jnp.einsum("qw,npwc->npqc", Mw, y)
    return y


def nchw_to_nhwc(x):
    return jnp.transpose(x, (0, 2, 3, 1))


def nhwc_to_nchw(x):
    return jnp.transpose(x, (0, 3, 1, 2))


# ----------------------------------------------------------------------------
# Layers built on the Pallas kernels.
# ----------------------------------------------------------------------------
def conv_bn_prelu(x_nhwc, p, k, stride, pad):
    cols, (N, Ho, Wo) = im2col(x_nhwc.astype(jnp.bfloat16), k, k, stride, pad)
    cout, cin = p["w"].shape[0], p["w"].shape[1]
    w_s = p["w"] * p["scale"][:, None, None, None]            # fold BN scale into W
    wmat = jnp.transpose(w_s, (2, 3, 1, 0)).reshape(k * k * cin, cout)
    out = fused_matmul_bias_prelu(cols, wmat, p["bias"], p["alpha"],
                                  out_dtype=jnp.bfloat16)
    return out.reshape(N, Ho, Wo, cout)


def conv_transpose_4x4_s2_p1(x_nhwc, w, b):
    """ConvTranspose2d(Cin, Cout, 4, stride=2, padding=1) via the 4-phase
    (sub-pixel) decomposition: one 3x3/stride-1 im2col matmul over the
    un-dilated input producing all 4 output parities, then pixel-shuffle."""
    N, H, W_, Cin = x_nhwc.shape
    Cout = w.shape[1]
    # phase parity -> ((input offset, kernel index), ...)
    taps = {0: ((0, 1), (-1, 3)), 1: ((1, 0), (0, 2))}
    Wc = jnp.zeros((9 * Cin, 4 * Cout), jnp.float32)
    for py in range(2):
        for px in range(2):
            pcol = (py * 2 + px) * Cout
            for (di, ry) in taps[py]:
                for (dj, rx) in taps[px]:
                    t = (di + 1) * 3 + (dj + 1)
                    Wc = Wc.at[t * Cin:(t + 1) * Cin, pcol:pcol + Cout].set(w[:, :, ry, rx])
    bias_c = jnp.tile(b, 4)

    cols, _ = im2col(x_nhwc.astype(jnp.bfloat16), 3, 3, 1, 1)
    y = fused_matmul_bias_prelu(cols, Wc, bias_c, alpha=None,   # no PReLU select
                                out_dtype=jnp.float32)          # (N*H*W, 4*Cout)
    y = y.reshape(N, H, W_, 2, 2, Cout)
    y = jnp.transpose(y, (0, 1, 3, 2, 4, 5)).reshape(N, 2 * H, 2 * W_, Cout)
    return y


# ----------------------------------------------------------------------------
# Parameter init (deterministic, synthetic).
# ----------------------------------------------------------------------------
def init_conv_bn(key, cin, cout, k=3):
    k1, k2, k3, k4, k5 = jax.random.split(key, 5)
    w = 0.1 * jax.random.normal(k1, (cout, cin, k, k), jnp.float32)
    gamma = 1.0 + 0.1 * jax.random.normal(k2, (cout,), jnp.float32)
    beta = 0.1 * jax.random.normal(k3, (cout,), jnp.float32)
    mean = 0.1 * jax.random.normal(k4, (cout,), jnp.float32)
    var = 0.5 + 0.1 * jnp.abs(jax.random.normal(k5, (cout,), jnp.float32))
    scale = gamma / jnp.sqrt(var + 1e-5)
    bias = beta - mean * scale
    alpha = jnp.full((cout,), 0.25, jnp.float32)   # nn.PReLU(out_planes) default init
    return dict(w=w, scale=scale, bias=bias, alpha=alpha)


def init_flowblock(key, in_planes, c):
    keys = jax.random.split(key, 10)
    conv0 = [
        init_conv_bn(keys[0], in_planes, c // 2, 3),
        init_conv_bn(keys[1], c // 2, c, 3),
        init_conv_bn(keys[2], c, 2 * c, 3),
    ]
    convblock = [init_conv_bn(keys[3 + i], 2 * c, 2 * c, 3) for i in range(6)]
    kw, kb = jax.random.split(keys[9], 2)
    last_w = 0.1 * jax.random.normal(kw, (2 * c, 4, 4, 4), jnp.float32)  # (Cin,Cout,kh,kw)
    last_b = 0.1 * jax.random.normal(kb, (4,), jnp.float32)
    return dict(conv0=conv0, convblock=convblock, last_w=last_w, last_b=last_b)


# ----------------------------------------------------------------------------
# FlowBlock forward (matches PyTorch FlowBlock.forward, eval-mode BN).
# ----------------------------------------------------------------------------
def flow_block_forward(params, x_nchw, flow_nchw, scale=1):
    x = nchw_to_nhwc(x_nchw).astype(jnp.float32)
    N, H, W, _ = x.shape
    Hs, Ws = int(math.floor(H / scale)), int(math.floor(W / scale))
    x = bilinear_resize_nhwc(x, Hs, Ws)

    if flow_nchw is not None:
        f = nchw_to_nhwc(flow_nchw).astype(jnp.float32)
        f = bilinear_resize_nhwc(f, Hs, Ws) * (1.0 / scale)
        x = jnp.concatenate([x, f], axis=-1)

    feat = x
    for p in params["conv0"]:                       # 3x conv_bn(3, stride=2, pad=1)
        feat = conv_bn_prelu(feat, p, 3, 2, 1)

    feat = fused_convblock(feat, params["convblock"])   # 6 layers + residual, in VMEM

    tmp = conv_transpose_4x4_s2_p1(feat, params["last_w"], params["last_b"])
    Ht, Wt = tmp.shape[1:3]
    tmp = bilinear_resize_nhwc(tmp, int(Ht * scale * 4), int(Wt * scale * 4))

    flow_out = tmp[..., :2] * (scale * 4)
    mask = tmp[..., 2:3]
    return nhwc_to_nchw(flow_out), nhwc_to_nchw(mask)


# ----------------------------------------------------------------------------
if __name__ == "__main__":
    key = jax.random.PRNGKey(0)
    kx, kf, kp = jax.random.split(key, 3)

    c = 16                       # small synthetic width (PyTorch default is 64/128)
    x = jax.random.normal(kx, (2, 6, 16, 16), jnp.float32)      # NCHW image stack
    flow = jax.random.normal(kf, (2, 2, 16, 16), jnp.float32)   # NCHW flow
    in_planes = x.shape[1] + flow.shape[1]                      # concat of x and flow

    params = init_flowblock(kp, in_planes, c)

    fwd = jax.jit(flow_block_forward, static_argnames=("scale",))
    flow_out, mask = fwd(params, x, flow, scale=1)
    jax.block_until_ready((flow_out, mask))

    assert flow_out.shape == (2, 2, 16, 16)
    assert mask.shape == (2, 1, 16, 16)
    print("KERNEL_OK")
</pallas_src>

<mosaic_0001>
module attributes {stable_mosaic.version = 11 : i64} {
  func.func @_matmul_bias_act_kernel(%arg0: i32, %arg1: memref<128x128xbf16, #tpu.memory_space<vmem>>, %arg2: memref<128x128xbf16, #tpu.memory_space<vmem>>, %arg3: memref<2x128xf32, #tpu.memory_space<vmem>>, %arg4: memref<128x128xbf16, #tpu.memory_space<vmem>>) attributes {dimension_semantics = [#tpu.dimension_semantics<parallel>], iteration_bounds = array<i64: 1>, scalar_prefetch = 0 : i64, scratch_operands = 0 : i64, tpu.core_type = #tpu.core_type<tc>, window_params = [{transform_indices = @transform_0, window_bounds = array<i64: 128, 128>}, {pipeline_mode = #tpu.pipeline_mode<synchronous>, transform_indices = @transform_1, window_bounds = array<i64: 128, 128>}, {pipeline_mode = #tpu.pipeline_mode<synchronous>, transform_indices = @transform_2, window_bounds = array<i64: 2, 128>}, {transform_indices = @transform_3, window_bounds = array<i64: 128, 128>}]} {
    %c0 = arith.constant 0 : index
    %c0_0 = arith.constant 0 : index
    %0 = vector.load %arg1[%c0, %c0_0] : memref<128x128xbf16, #tpu.memory_space<vmem>>, vector<128x128xbf16>
    %c0_1 = arith.constant 0 : index
    %c0_2 = arith.constant 0 : index
    %1 = vector.load %arg2[%c0_1, %c0_2] : memref<128x128xbf16, #tpu.memory_space<vmem>>, vector<128x128xbf16>
    %cst = arith.constant dense<0.000000e+00> : vector<128x128xf32>
    %2 = tpu.matmul %0, %1, %cst {dimension_numbers = #tpu.dot_dimension_numbers<[1], [0], [0], [1], [0, 0, 1, 1], [], []>} : vector<128x128xbf16>, vector<128x128xbf16>, vector<128x128xf32> -> vector<128x128xf32>
    %c0_3 = arith.constant 0 : index
    %c0_4 = arith.constant 0 : index
    %3 = vector.load %arg3[%c0_3, %c0_4] : memref<2x128xf32, #tpu.memory_space<vmem>>, vector<2x128xf32>
    %4 = vector.extract_strided_slice %3 {offsets = [0, 0], sizes = [1, 128], strides = [1, 1]} : vector<2x128xf32> to vector<1x128xf32>
    %5 = vector.broadcast %4 : vector<1x128xf32> to vector<128x128xf32>
    %6 = arith.addf %2, %5 : vector<128x128xf32>
    %cst_5 = arith.constant 0.000000e+00 : f32
    %7 = vector.broadcast %cst_5 : f32 to vector<128x128xf32>
    %8 = arith.cmpf oge, %6, %7 : vector<128x128xf32>
    %9 = vector.extract_strided_slice %3 {offsets = [1, 0], sizes = [1, 128], strides = [1, 1]} : vector<2x128xf32> to vector<1x128xf32>
    %10 = vector.broadcast %9 : vector<1x128xf32> to vector<128x128xf32>
    %11 = arith.mulf %10, %6 : vector<128x128xf32>
    %12 = arith.select %8, %6, %11 : vector<128x128xi1>, vector<128x128xf32>
    %13 = arith.truncf %12 : vector<128x128xf32> to vector<128x128xbf16>
    %c0_6 = arith.constant 0 : index
    %c0_7 = arith.constant 0 : index
    %14 = vector.load %arg4[%c0_6, %c0_7] : memref<128x128xbf16, #tpu.memory_space<vmem>>, vector<128x128xbf16>
    tpu.vector_store %arg4[%c0_6, %c0_7], %13 {strides = array<i32>} : memref<128x128xbf16, #tpu.memory_space<vmem>>, vector<128x128xbf16>,
    return
  }
  func.func @transform_0(%arg0: i32) -> (i32, i32) {
    %c0_i32 = arith.constant 0 : i32
    %c0_i32_0 = arith.constant 0 : i32
    return %arg0, %c0_i32 : i32, i32
  }
  func.func @transform_1(%arg0: i32) -> (i32, i32) {
    %c0_i32 = arith.constant 0 : i32
    %c0_i32_0 = arith.constant 0 : i32
    %c0_i32_1 = arith.constant 0 : i32
    return %c0_i32, %c0_i32_0 : i32, i32
  }
  func.func @transform_2(%arg0: i32) -> (i32, i32) {
    %c0_i32 = arith.constant 0 : i32
    %c0_i32_0 = arith.constant 0 : i32
    %c0_i32_1 = arith.constant 0 : i32
    return %c0_i32, %c0_i32_0 : i32, i32
  }
  func.func @transform_3(%arg0: i32) -> (i32, i32) {
    %c0_i32 = arith.constant 0 : i32
    %c0_i32_0 = arith.constant 0 : i32
    return %arg0, %c0_i32 : i32, i32
  }
}

module attributes {stable_mosaic.version = 11 : i64} {
  func.func @_matmul_bias_act_kernel(%arg0: i32, %arg1: memref<32x128xbf16, #tpu.memory_space<vmem>>, %arg2: memref<128x128xbf16, #tpu.memory_space<vmem>>, %arg3: memref<2x128xf32, #tpu.memory_space<vmem>>, %arg4: memref<32x128xbf16, #tpu.memory_space<vmem>>) attributes {dimension_semantics = [#tpu.dimension_semantics<parallel>], iteration_bounds = array<i64: 1>, scalar_prefetch = 0 : i64, scratch_operands = 0 : i64, tpu.core_type = #tpu.core_type<tc>, window_params = [{transform_indices = @transform_0, window_bounds = array<i64: 32, 128>}, {pipeline_mode = #tpu.pipeline_mode<synchronous>, transform_indices = @transform_1, window_bounds = array<i64: 128, 128>}, {pipeline_mode = #tpu.pipeline_mode<synchronous>, transform_indices = @transform_2, window_bounds = array<i64: 2, 128>}, {transform_indices = @transform_3, window_bounds = array<i64: 32, 128>}]} {
    %c0 = arith.constant 0 : index
    %c0_0 = arith.constant 0 : index
    %0 = vector.load %arg1[%c0, %c0_0] : memref<32x128xbf16, #tpu.memory_space<vmem>>, vector<32x128xbf16>
    %c0_1 = arith.constant 0 : index
    %c0_2 = arith.constant 0 : index
    %1 = vector.load %arg2[%c0_1, %c0_2] : memref<128x128xbf16, #tpu.memory_space<vmem>>, vector<128x128xbf16>
    %cst = arith.constant dense<0.000000e+00> : vector<32x128xf32>
    %2 = tpu.matmul %0, %1, %cst {dimension_numbers = #tpu.dot_dimension_numbers<[1], [0], [0], [1], [0, 0, 1, 1], [], []>} : vector<32x128xbf16>, vector<128x128xbf16>, vector<32x128xf32> -> vector<32x128xf32>
    %c0_3 = arith.constant 0 : index
    %c0_4 = arith.constant 0 : index
    %3 = vector.load %arg3[%c0_3, %c0_4] : memref<2x128xf32, #tpu.memory_space<vmem>>, vector<2x128xf32>
    %4 = vector.extract_strided_slice %3 {offsets = [0, 0], sizes = [1, 128], strides = [1, 1]} : vector<2x128xf32> to vector<1x128xf32>
    %5 = vector.broadcast %4 : vector<1x128xf32> to vector<32x128xf32>
    %6 = arith.addf %2, %5 : vector<32x128xf32>
    %cst_5 = arith.constant 0.000000e+00 : f32
    %7 = vector.broadcast %cst_5 : f32 to vector<32x128xf32>
    %8 = arith.cmpf oge, %6, %7 : vector<32x128xf32>
    %9 = vector.extract_strided_slice %3 {offsets = [1, 0], sizes = [1, 128], strides = [1, 1]} : vector<2x128xf32> to vector<1x128xf32>
    %10 = vector.broadcast %9 : vector<1x128xf32> to vector<32x128xf32>
    %11 = arith.mulf %10, %6 : vector<32x128xf32>
    %12 = arith.select %8, %6, %11 : vector<32x128xi1>, vector<32x128xf32>
    %13 = arith.truncf %12 : vector<32x128xf32> to vector<32x128xbf16>
    %c0_6 = arith.constant 0 : index
    %c0_7 = arith.constant 0 : index
    %14 = vector.load %arg4[%c0_6, %c0_7] : memref<32x128xbf16, #tpu.memory_space<vmem>>, vector<32x128xbf16>
    tpu.vector_store %arg4[%c0_6, %c0_7], %13 {strides = array<i32>} : memref<32x128xbf16, #tpu.memory_space<vmem>>, vector<32x128xbf16>,
    return
  }
  func.func @transform_0(%arg0: i32) -> (i32, i32) {
    %c0_i32 = arith.constant 0 : i32
    %c0_i32_0 = arith.constant 0 : i32
    return %arg0, %c0_i32 : i32, i32
  }
  func.func @transform_1(%arg0: i32) -> (i32, i32) {
    %c0_i32 = arith.constant 0 : i32
    %c0_i32_0 = arith.constant 0 : i32
    %c0_i32_1 = arith.constant 0 : i32
    return %c0_i32, %c0_i32_0 : i32, i32
  }
  func.func @transform_2(%arg0: i32) -> (i32, i32) {
    %c0_i32 = arith.constant 0 : i32
    %c0_i32_0 = arith.constant 0 : i32
    %c0_i32_1 = arith.constant 0 : i32
    return %c0_i32, %c0_i32_0 : i32, i32
  }
  func.func @transform_3(%arg0: i32) -> (i32, i32) {
    %c0_i32 = arith.constant 0 : i32
    %c0_i32_0 = arith.constant 0 : i32
    return %arg0, %c0_i32 : i32, i32
  }
}

module attributes {stable_mosaic.version = 11 : i64} {
  func.func @_matmul_bias_act_kernel(%arg0: i32, %arg1: memref<16x256xbf16, #tpu.memory_space<vmem>>, %arg2: memref<256x128xbf16, #tpu.memory_space<vmem>>, %arg3: memref<2x128xf32, #tpu.memory_space<vmem>>, %arg4: memref<16x128xbf16, #tpu.memory_space<vmem>>) attributes {dimension_semantics = [#tpu.dimension_semantics<parallel>], iteration_bounds = array<i64: 1>, scalar_prefetch = 0 : i64, scratch_operands = 0 : i64, tpu.core_type = #tpu.core_type<tc>, window_params = [{transform_indices = @transform_0, window_bounds = array<i64: 16, 256>}, {pipeline_mode = #tpu.pipeline_mode<synchronous>, transform_indices = @transform_1, window_bounds = array<i64: 256, 128>}, {pipeline_mode = #tpu.pipeline_mode<synchronous>, transform_indices = @transform_2, window_bounds = array<i64: 2, 128>}, {transform_indices = @transform_3, window_bounds = array<i64: 16, 128>}]} {
    %c0 = arith.constant 0 : index
    %c0_0 = arith.constant 0 : index
    %0 = vector.load %arg1[%c0, %c0_0] : memref<16x256xbf16, #tpu.memory_space<vmem>>, vector<16x256xbf16>
    %c0_1 = arith.constant 0 : index
    %c0_2 = arith.constant 0 : index
    %1 = vector.load %arg2[%c0_1, %c0_2] : memref<256x128xbf16, #tpu.memory_space<vmem>>, vector<256x128xbf16>
    %cst = arith.constant dense<0.000000e+00> : vector<16x128xf32>
    %2 = tpu.matmul %0, %1, %cst {dimension_numbers = #tpu.dot_dimension_numbers<[1], [0], [0], [1], [0, 0, 1, 1], [], []>} : vector<16x256xbf16>, vector<256x128xbf16>, vector<16x128xf32> -> vector<16x128xf32>
    %c0_3 = arith.constant 0 : index
    %c0_4 = arith.constant 0 : index
    %3 = vector.load %arg3[%c0_3, %c0_4] : memref<2x128xf32, #tpu.memory_space<vmem>>, vector<2x128xf32>
    %4 = vector.extract_strided_slice %3 {offsets = [0, 0], sizes = [1, 128], strides = [1, 1]} : vector<2x128xf32> to vector<1x128xf32>
    %5 = vector.broadcast %4 : vector<1x128xf32> to vector<16x128xf32>
    %6 = arith.addf %2, %5 : vector<16x128xf32>
    %cst_5 = arith.constant 0.000000e+00 : f32
    %7 = vector.broadcast %cst_5 : f32 to vector<16x128xf32>
    %8 = arith.cmpf oge, %6, %7 : vector<16x128xf32>
    %9 = vector.extract_strided_slice %3 {offsets = [1, 0], sizes = [1, 128], strides = [1, 1]} : vector<2x128xf32> to vector<1x128xf32>
    %10 = vector.broadcast %9 : vector<1x128xf32> to vector<16x128xf32>
    %11 = arith.mulf %10, %6 : vector<16x128xf32>
    %12 = arith.select %8, %6, %11 : vector<16x128xi1>, vector<16x128xf32>
    %13 = arith.truncf %12 : vector<16x128xf32> to vector<16x128xbf16>
    %c0_6 = arith.constant 0 : index
    %c0_7 = arith.constant 0 : index
    %14 = vector.load %arg4[%c0_6, %c0_7] : memref<16x128xbf16, #tpu.memory_space<vmem>>, vector<16x128xbf16>
    tpu.vector_store %arg4[%c0_6, %c0_7], %13 {strides = array<i32>} : memref<16x128xbf16, #tpu.memory_space<vmem>>, vector<16x128xbf16>,
    return
  }
  func.func @transform_0(%arg0: i32) -> (i32, i32) {
    %c0_i32 = arith.constant 0 : i32
    %c0_i32_0 = arith.constant 0 : i32
    return %arg0, %c0_i32 : i32, i32
  }
  func.func @transform_1(%arg0: i32) -> (i32, i32) {
    %c0_i32 = arith.constant 0 : i32
    %c0_i32_0 = arith.constant 0 : i32
    %c0_i32_1 = arith.constant 0 : i32
    return %c0_i32, %c0_i32_0 : i32, i32
  }
  func.func @transform_2(%arg0: i32) -> (i32, i32) {
    %c0_i32 = arith.constant 0 : i32
    %c0_i32_0 = arith.constant 0 : i32
    %c0_i32_1 = arith.constant 0 : i32
    return %c0_i32, %c0_i32_0 : i32, i32
  }
  func.func @transform_3(%arg0: i32) -> (i32, i32) {
    %c0_i32 = arith.constant 0 : i32
    %c0_i32_0 = arith.constant 0 : i32
    return %arg0, %c0_i32 : i32, i32
  }
}

module attributes {stable_mosaic.version = 11 : i64} {
  func.func @_convblock_kernel(%arg0: i32, %arg1: memref<1x4x128xbf16, #tpu.memory_space<vmem>>, %arg2: memref<18x384x128xbf16, #tpu.memory_space<vmem>>, %arg3: memref<6x2x128xf32, #tpu.memory_space<vmem>>, %arg4: memref<1x4x128xbf16, #tpu.memory_space<vmem>>, %arg5: memref<20x384xbf16, #tpu.memory_space<vmem>>) attributes {dimension_semantics = [#tpu.dimension_semantics<parallel>], iteration_bounds = array<i64: 2>, scalar_prefetch = 0 : i64, scratch_operands = 1 : i64, tpu.core_type = #tpu.core_type<tc>, window_params = [{transform_indices = @transform_0, window_bounds = array<i64: 1, 4, 128>}, {pipeline_mode = #tpu.pipeline_mode<synchronous>, transform_indices = @transform_1, window_bounds = array<i64: 18, 384, 128>}, {pipeline_mode = #tpu.pipeline_mode<synchronous>, transform_indices = @transform_2, window_bounds = array<i64: 6, 2, 128>}, {transform_indices = @transform_3, window_bounds = array<i64: 1, 4, 128>}]} {
    %0 = tpu.iota {dimensions = array<i32: 0>} : vector<4x128xi32>
    %c2_i32 = arith.constant 2 : i32
    %c0_i32 = arith.constant 0 : i32
    %1 = arith.cmpi eq, %c2_i32, %c0_i32 : i32
    %c1_i32 = arith.constant 1 : i32
    %2 = arith.select %1, %c1_i32, %c2_i32 : i32
    %3 = vector.broadcast %2 : i32 to vector<4x128xi32>
    %4 = arith.remsi %0, %3 : vector<4x128xi32>
    %c0_i32_0 = arith.constant 0 : i32
    %5 = vector.broadcast %c0_i32_0 : i32 to vector<4x128xi32>
    %6 = arith.cmpi ne, %4, %5 : vector<4x128xi32>
    %c0_i32_1 = arith.constant 0 : i32
    %7 = vector.broadcast %c0_i32_1 : i32 to vector<4x128xi32>
    %8 = arith.cmpi slt, %4, %7 : vector<4x128xi32>
    %c0_i32_2 = arith.constant 0 : i32
    %9 = arith.cmpi slt, %2, %c0_i32_2 : i32
    %10 = vector.broadcast %9 : i1 to vector<4x128xi1>
    %11 = vector.broadcast %10 : vector<4x128xi1> to vector<4x128xi1>
    %12 = arith.xori %8, %11 : vector<4x128xi1>
    %13 = arith.andi %12, %6 : vector<4x128xi1>
    %14 = vector.broadcast %2 : i32 to vector<4x128xi32>
    %15 = arith.addi %4, %14 : vector<4x128xi32>
    %16 = arith.select %13, %15, %4 : vector<4x128xi1>, vector<4x128xi32>
    %c1_i32_3 = arith.constant 1 : i32
    %17 = vector.broadcast %c1_i32_3 : i32 to vector<4x128xi32>
    %18 = arith.cmpi ne, %16, %17 : vector<4x128xi32>
    %c0_i32_4 = arith.constant 0 : i32
    %19 = vector.broadcast %c0_i32_4 : i32 to vector<4x128xi32>
    %20 = arith.cmpi ne, %16, %19 : vector<4x128xi32>
    %cst = arith.constant 0.000000e+00 : bf16
    %21 = vector.broadcast %cst : bf16 to vector<16x384xbf16>
    %c0 = arith.constant 0 : index
    %c0_5 = arith.constant 0 : index
    %22 = vector.load %arg5[%c0, %c0_5] : memref<20x384xbf16, #tpu.memory_space<vmem>>, vector<16x384xbf16>
    tpu.vector_store %arg5[%c0, %c0_5], %21 {strides = array<i32>} : memref<20x384xbf16, #tpu.memory_space<vmem>>, vector<16x384xbf16>,
    %c4 = arith.constant 4 : index
    %c0_6 = arith.constant 0 : index
    %23 = vector.load %arg5[%c4, %c0_6] : memref<20x384xbf16, #tpu.memory_space<vmem>>, vector<16x384xbf16>
    tpu.vector_store %arg5[%c4, %c0_6], %21 {strides = array<i32>} : memref<20x384xbf16, #tpu.memory_space<vmem>>, vector<16x384xbf16>,
    %c0_7 = arith.constant 0 : index
    %c0_8 = arith.constant 0 : index
    %c0_9 = arith.constant 0 : index
    %24 = vector.load %arg1[%c0_7, %c0_8, %c0_9] : memref<1x4x128xbf16, #tpu.memory_space<vmem>>, vector<1x4x128xbf16>
    %25 = vector.shape_cast %24 : vector<1x4x128xbf16> to vector<4x128xbf16>
    %26 = arith.extf %25 : vector<4x128xbf16> to vector<4x128xf32>
    %cst_10 = arith.constant 0.000000e+00 : f32
    %27 = vector.broadcast %cst_10 : f32 to vector<4x128xf32>
    %28 = arith.select %18, %26, %27 : vector<4x128xi1>, vector<4x128xf32>
    %29 = arith.truncf %28 : vector<4x128xf32> to vector<4x128xbf16>
    %c9 = arith.constant 9 : index
    %c0_11 = arith.constant 0 : index
    %30 = vector.load %arg5[%c9, %c0_11] : memref<20x384xbf16, #tpu.memory_space<vmem>>, vector<4x128xbf16>
    tpu.vector_store %arg5[%c9, %c0_11], %29 {strides = array<i32>} : memref<20x384xbf16, #tpu.memory_space<vmem>>, vector<4x128xbf16>,
    %31 = arith.truncf %26 : vector<4x128xf32> to vector<4x128xbf16>
    %c8 = arith.constant 8 : index
    %c128 = arith.constant 128 : index
    %32 = vector.load %arg5[%c8, %c128] : memref<20x384xbf16, #tpu.memory_space<vmem>>, vector<4x128xbf16>
    tpu.vector_store %arg5[%c8, %c128], %31 {strides = array<i32>} : memref<20x384xbf16, #tpu.memory_space<vmem>>, vector<4x128xbf16>,
    %cst_12 = arith.constant 0.000000e+00 : f32
    %33 = vector.broadcast %cst_12 : f32 to vector<4x128xf32>
    %34 = arith.select %20, %26, %33 : vector<4x128xi1>, vector<4x128xf32>
    %35 = arith.truncf %34 : vector<4x128xf32> to vector<4x128xbf16>
    %c7 = arith.constant 7 : index
    %c256 = arith.constant 256 : index
    %36 = vector.load %arg5[%c7, %c256] : memref<20x384xbf16, #tpu.memory_space<vmem>>, vector<4x128xbf16>
    tpu.vector_store %arg5[%c7, %c256], %35 {strides = array<i32>} : memref<20x384xbf16, #tpu.memory_space<vmem>>, vector<4x128xbf16>,
    %c6 = arith.constant 6 : index
    %c0_13 = arith.constant 0 : index
    %37 = vector.load %arg5[%c6, %c0_13] : memref<20x384xbf16, #tpu.memory_space<vmem>>, vector<4x384xbf16>
    %c0_14 = arith.constant 0 : index
    %c0_15 = arith.constant 0 : index
    %c0_16 = arith.constant 0 : index
    %38 = vector.load %arg2[%c0_14, %c0_15, %c0_16] : memref<18x384x128xbf16, #tpu.memory_space<vmem>>, vector<1x384x128xbf16>
    %39 = vector.shape_cast %38 : vector<1x384x128xbf16> to vector<384x128xbf16>
    %cst_17 = arith.constant dense<0.000000e+00> : vector<4x128xf32>
    %40 = tpu.matmul %37, %39, %cst_17 {dimension_numbers = #tpu.dot_dimension_numbers<[1], [0], [0], [1], [0, 0, 1, 1], [], []>} : vector<4x384xbf16>, vector<384x128xbf16>, vector<4x128xf32> -> vector<4x128xf32>
    %c8_18 = arith.constant 8 : index
    %c0_19 = arith.constant 0 : index
    %41 = vector.load %arg5[%c8_18, %c0_19] : memref<20x384xbf16, #tpu.memory_space<vmem>>, vector<4x384xbf16>
    %c1 = arith.constant 1 : index
    %c0_20 = arith.constant 0 : index
    %c0_21 = arith.constant 0 : index
    %42 = vector.load %arg2[%c1, %c0_20, %c0_21] : memref<18x384x128xbf16, #tpu.memory_space<vmem>>, vector<1x384x128xbf16>
    %43 = vector.shape_cast %42 : vector<1x384x128xbf16> to vector<384x128xbf16>
    %cst_22 = arith.constant dense<0.000000e+00> : vector<4x128xf32>
    %44 = tpu.matmul %41, %43, %cst_22 {dimension_numbers = #tpu.dot_dimension_numbers<[1], [0], [0], [1], [0, 0, 1, 1], [], []>} : vector<4x384xbf16>, vector<384x128xbf16>, vector<4x128xf32> -> vector<4x128xf32>
    %45 = arith.addf %40, %44 : vector<4x128xf32>
    %c10 = arith.constant 10 : index
    %c0_23 = arith.constant 0 : index
    %46 = vector.load %arg5[%c10, %c0_23] : memref<20x384xbf16, #tpu.memory_space<vmem>>, vector<4x384xbf16>
    %c2 = arith.constant 2 : index
    %c0_24 = arith.constant 0 : index
    %c0_25 = arith.constant 0 : index
    %47 = vector.load %arg2[%c2, %c0_24, %c0_25] : memref<18x384x128xbf16, #tpu.memory_space<vmem>>, vector<1x384x128xbf16>
    %48 = vector.shape_cast %47 : vector<1x384x128xbf16> to vector<384x128xbf16>
    %cst_26 = arith.constant dense<0.000000e+00> : vector<4x128xf32>
    %49 = tpu.matmul %46, %48, %cst_26 {dimension_numbers = #tpu.dot_dimension_numbers<[1], [0], [0], [1], [0, 0, 1, 1], [], []>} : vector<4x384xbf16>, vector<384x128xbf16>, vector<4x128xf32> -> vector<4x128xf32>
    %50 = arith.addf %45, %49 : vector<4x128xf32>
    %c0_27 = arith.constant 0 : index
    %c0_28 = arith.constant 0 : index
    %c0_29 = arith.constant 0 : index
    %51 = vector.load %arg3[%c0_27, %c0_28, %c0_29] : memref<6x2x128xf32, #tpu.memory_space<vmem>>, vector<1x2x128xf32>
    %52 = vector.shape_cast %51 : vector<1x2x128xf32> to vector<2x128xf32>
    %53 = vector.extract_strided_slice %52 {offsets = [0, 0], sizes = [1, 128], strides = [1, 1]} : vector<2x128xf32> to vector<1x128xf32>
    %54 = vector.broadcast %53 : vector<1x128xf32> to vector<4x128xf32>
    %55 = arith.addf %50, %54 : vector<4x128xf32>
    %cst_30 = arith.constant 0.000000e+00 : f32
    %56 = vector.broadcast %cst_30 : f32 to vector<4x128xf32>
    %57 = arith.cmpf oge, %55, %56 : vector<4x128xf32>
    %58 = vector.extract_strided_slice %52 {offsets = [1, 0], sizes = [1, 128], strides = [1, 1]} : vector<2x128xf32> to vector<1x128xf32>
    %59 = vector.broadcast %58 : vector<1x128xf32> to vector<4x128xf32>
    %60 = arith.mulf %59, %55 : vector<4x128xf32>
    %61 = arith.select %57, %55, %60 : vector<4x128xi1>, vector<4x128xf32>
    %cst_31 = arith.constant 0.000000e+00 : f32
    %62 = vector.broadcast %cst_31 : f32 to vector<4x128xf32>
    %63 = arith.select %18, %61, %62 : vector<4x128xi1>, vector<4x128xf32>
    %64 = arith.truncf %63 : vector<4x128xf32> to vector<4x128xbf16>
    %c9_32 = arith.constant 9 : index
    %c0_33 = arith.constant 0 : index
    %65 = vector.load %arg5[%c9_32, %c0_33] : memref<20x384xbf16, #tpu.memory_space<vmem>>, vector<4x128xbf16>
    tpu.vector_store %arg5[%c9_32, %c0_33], %64 {strides = array<i32>} : memref<20x384xbf16, #tpu.memory_space<vmem>>, vector<4x128xbf16>,
    %66 = arith.truncf %61 : vector<4x128xf32> to vector<4x128xbf16>
    %c8_34 = arith.constant 8 : index
    %c128_35 = arith.constant 128 : index
    %67 = vector.load %arg5[%c8_34, %c128_35] : memref<20x384xbf16, #tpu.memory_space<vmem>>, vector<4x128xbf16>
    tpu.vector_store %arg5[%c8_34, %c128_35], %66 {strides = array<i32>} : memref<20x384xbf16, #tpu.memory_space<vmem>>, vector<4x128xbf16>,
    %cst_36 = arith.constant 0.000000e+00 : f32
    %68 = vector.broadcast %cst_36 : f32 to vector<4x128xf32>
    %69 = arith.select %20, %61, %68 : vector<4x128xi1>, vector<4x128xf32>
    %70 = arith.truncf %69 : vector<4x128xf32> to vector<4x128xbf16>
    %c7_37 = arith.constant 7 : index
    %c256_38 = arith.constant 256 : index
    %71 = vector.load %arg5[%c7_37, %c256_38] : memref<20x384xbf16, #tpu.memory_space<vmem>>, vector<4x128xbf16>
    tpu.vector_store %arg5[%c7_37, %c256_38], %70 {strides = array<i32>} : memref<20x384xbf16, #tpu.memory_space<vmem>>, vector<4x128xbf16>,
    %c6_39 = arith.constant 6 : index
    %c0_40 = arith.constant 0 : index
    %72 = vector.load %arg5[%c6_39, %c0_40] : memref<20x384xbf16, #tpu.memory_space<vmem>>, vector<4x384xbf16>
    %c3 = arith.constant 3 : index
    %c0_41 = arith.constant 0 : index
    %c0_42 = arith.constant 0 : index
    %73 = vector.load %arg2[%c3, %c0_41, %c0_42] : memref<18x384x128xbf16, #tpu.memory_space<vmem>>, vector<1x384x128xbf16>
    %74 = vector.shape_cast %73 : vector<1x384x128xbf16> to vector<384x128xbf16>
    %cst_43 = arith.constant dense<0.000000e+00> : vector<4x128xf32>
    %75 = tpu.matmul %72, %74, %cst_43 {dimension_numbers = #tpu.dot_dimension_numbers<[1], [0], [0], [1], [0, 0, 1, 1], [], []>} : vector<4x384xbf16>, vector<384x128xbf16>, vector<4x128xf32> -> vector<4x128xf32>
    %c8_44 = arith.constant 8 : index
    %c0_45 = arith.constant 0 : index
    %76 = vector.load %arg5[%c8_44, %c0_45] : memref<20x384xbf16, #tpu.memory_space<vmem>>, vector<4x384xbf16>
    %c4_46 = arith.constant 4 : index
    %c0_47 = arith.constant 0 : index
    %c0_48 = arith.constant 0 : index
    %77 = vector.load %arg2[%c4_46, %c0_47, %c0_48] : memref<18x384x128xbf16, #tpu.memory_space<vmem>>, vector<1x384x128xbf16>
    %78 = vector.shape_cast %77 : vector<1x384x128xbf16> to vector<384x128xbf16>
    %cst_49 = arith.constant dense<0.000000e+00> : vector<4x128xf32>
    %79 = tpu.matmul %76, %78, %cst_49 {dimension_numbers = #tpu.dot_dimension_numbers<[1], [0], [0], [1], [0, 0, 1, 1], [], []>} : vector<4x384xbf16>, vector<384x128xbf16>, vector<4x128xf32> -> vector<4x128xf32>
    %80 = arith.addf %75, %79 : vector<4x128xf32>
    %c10_50 = arith.constant 10 : index
    %c0_51 = arith.constant 0 : index
    %81 = vector.load %arg5[%c10_50, %c0_51] : memref<20x384xbf16, #tpu.memory_space<vmem>>, vector<4x384xbf16>
    %c5 = arith.constant 5 : index
    %c0_52 = arith.constant 0 : index
    %c0_53 = arith.constant 0 : index
    %82 = vector.load %arg2[%c5, %c0_52, %c0_53] : memref<18x384x128xbf16, #tpu.memory_space<vmem>>, vector<1x384x128xbf16>
    %83 = vector.shape_cast %82 : vector<1x384x128xbf16> to vector<384x128xbf16>
    %cst_54 = arith.constant dense<0.000000e+00> : vector<4x128xf32>
    %84 = tpu.matmul %81, %83, %cst_54 {dimension_numbers = #tpu.dot_dimension_numbers<[1], [0], [0], [1], [0, 0, 1, 1], [], []>} : vector<4x384xbf16>, vector<384x128xbf16>, vector<4x128xf32> -> vector<4x128xf32>
    %85 = arith.addf %80, %84 : vector<4x128xf32>
    %c1_55 = arith.constant 1 : index
    %c0_56 = arith.constant 0 : index
    %c0_57 = arith.constant 0 : index
    %86 = vector.load %arg3[%c1_55, %c0_56, %c0_57] : memref<6x2x128xf32, #tpu.memory_space<vmem>>, vector<1x2x128xf32>
    %87 = vector.shape_cast %86 : vector<1x2x128xf32> to vector<2x128xf32>
    %88 = vector.extract_strided_slice %87 {offsets = [0, 0], sizes = [1, 128], strides = [1, 1]} : vector<2x128xf32> to vector<1x128xf32>
    %89 = vector.broadcast %88 : vector<1x128xf32> to vector<4x128xf32>
    %90 = arith.addf %85, %89 : vector<4x128xf32>
    %cst_58 = arith.constant 0.000000e+00 : f32
    %91 = vector.broadcast %cst_58 : f32 to vector<4x128xf32>
    %92 = arith.cmpf oge, %90, %91 : vector<4x128xf32>
    %93 = vector.extract_strided_slice %87 {offsets = [1, 0], sizes = [1, 128], strides = [1, 1]} : vector<2x128xf32> to vector<1x128xf32>
    %94 = vector.broadcast %93 : vector<1x128xf32> to vector<4x128xf32>
    %95 = arith.mulf %94, %90 : vector<4x128xf32>
    %96 = arith.select %92, %90, %95 : vector<4x128xi1>, vector<4x128xf32>
    %cst_59 = arith.constant 0.000000e+00 : f32
    %97 = vector.broadcast %cst_59 : f32 to vector<4x128xf32>
    %98 = arith.select %18, %96, %97 : vector<4x128xi1>, vector<4x128xf32>
    %99 = arith.truncf %98 : vector<4x128xf32> to vector<4x128xbf16>
    %c9_60 = arith.constant 9 : index
    %c0_61 = arith.constant 0 : index
    %100 = vector.load %arg5[%c9_60, %c0_61] : memref<20x384xbf16, #tpu.memory_space<vmem>>, vector<4x128xbf16>
    tpu.vector_store %arg5[%c9_60, %c0_61], %99 {strides = array<i32>} : memref<20x384xbf16, #tpu.memory_space<vmem>>, vector<4x128xbf16>,
    %101 = arith.truncf %96 : vector<4x128xf32> to vector<4x128xbf16>
    %c8_62 = arith.constant 8 : index
    %c128_63 = arith.constant 128 : index
    %102 = vector.load %arg5[%c8_62, %c128_63] : memref<20x384xbf16, #tpu.memory_space<vmem>>, vector<4x128xbf16>
    tpu.vector_store %arg5[%c8_62, %c128_63], %101 {strides = array<i32>} : memref<20x384xbf16, #tpu.memory_space<vmem>>, vector<4x128xbf16>,
    %cst_64 = arith.constant 0.000000e+00 : f32
    %103 = vector.broadcast %cst_64 : f32 to vector<4x128xf32>
    %104 = arith.select %20, %96, %103 : vector<4x128xi1>, vector<4x128xf32>
    %105 = arith.truncf %104 : vector<4x128xf32> to vector<4x128xbf16>
    %c7_65 = arith.constant 7 : index
    %c256_66 = arith.constant 256 : index
    %106 = vector.load %arg5[%c7_65, %c256_66] : memref<20x384xbf16, #tpu.memory_space<vmem>>, vector<4x128xbf16>
    tpu.vector_store %arg5[%c7_65, %c256_66], %105 {strides = array<i32>} : memref<20x384xbf16, #tpu.memory_space<vmem>>, vector<4x128xbf16>,
    %c6_67 = arith.constant 6 : index
    %c0_68 = arith.constant 0 : index
    %107 = vector.load %arg5[%c6_67, %c0_68] : memref<20x384xbf16, #tpu.memory_space<vmem>>, vector<4x384xbf16>
    %c6_69 = arith.constant 6 : index
    %c0_70 = arith.constant 0 : index
    %c0_71 = arith.constant 0 : index
    %108 = vector.load %arg2[%c6_69, %c0_70, %c0_71] : memref<18x384x128xbf16, #tpu.memory_space<vmem>>, vector<1x384x128xbf16>
    %109 = vector.shape_cast %108 : vector<1x384x128xbf16> to vector<384x128xbf16>
    %cst_72 = arith.constant dense<0.000000e+00> : vector<4x128xf32>
    %110 = tpu.matmul %107, %109, %cst_72 {dimension_numbers = #tpu.dot_dimension_numbers<[1], [0], [0], [1], [0, 0, 1, 1], [], []>} : vector<4x384xbf16>, vector<384x128xbf16>, vector<4x128xf32> -> vector<4x128xf32>
    %c8_73 = arith.constant 8 : index
    %c0_74 = arith.constant 0 : index
    %111 = vector.load %arg5[%c8_73, %c0_74] : memref<20x384xbf16, #tpu.memory_space<vmem>>, vector<4x384xbf16>
    %c7_75 = arith.constant 7 : index
    %c0_76 = arith.constant 0 : index
    %c0_77 = arith.constant 0 : index
    %112 = vector.load %arg2[%c7_75, %c0_76, %c0_77] : memref<18x384x128xbf16, #tpu.memory_space<vmem>>, vector<1x384x128xbf16>
    %113 = vector.shape_cast %112 : vector<1x384x128xbf16> to vector<384x128xbf16>
    %cst_78 = arith.constant dense<0.000000e+00> : vector<4x128xf32>
    %114 = tpu.matmul %111, %113, %cst_78 {dimension_numbers = #tpu.dot_dimension_numbers<[1], [0], [0], [1], [0, 0, 1, 1], [], []>} : vector<4x384xbf16>, vector<384x128xbf16>, vector<4x128xf32> -> vector<4x128xf32>
    %115 = arith.addf %110, %114 : vector<4x128xf32>
    %c10_79 = arith.constant 10 : index
    %c0_80 = arith.constant 0 : index
    %116 = vector.load %arg5[%c10_79, %c0_80] : memref<20x384xbf16, #tpu.memory_space<vmem>>, vector<4x384xbf16>
    %c8_81 = arith.constant 8 : index
    %c0_82 = arith.constant 0 : index
    %c0_83 = arith.constant 0 : index
    %117 = vector.load %arg2[%c8_81, %c0_82, %c0_83] : memref<18x384x128xbf16, #tpu.memory_space<vmem>>, vector<1x384x128xbf16>
    %118 = vector.shape_cast %117 : vector<1x384x128xbf16> to vector<384x128xbf16>
    %cst_84 = arith.constant dense<0.000000e+00> : vector<4x128xf32>
    %119 = tpu.matmul %116, %118, %cst_84 {dimension_numbers = #tpu.dot_dimension_numbers<[1], [0], [0], [1], [0, 0, 1, 1], [], []>} : vector<4x384xbf16>, vector<384x128xbf16>, vector<4x128xf32> -> vector<4x128xf32>
    %120 = arith.addf %115, %119 : vector<4x128xf32>
    %c2_85 = arith.constant 2 : index
    %c0_86 = arith.constant 0 : index
    %c0_87 = arith.constant 0 : index
    %121 = vector.load %arg3[%c2_85, %c0_86, %c0_87] : memref<6x2x128xf32, #tpu.memory_space<vmem>>, vector<1x2x128xf32>
    %122 = vector.shape_cast %121 : vector<1x2x128xf32> to vector<2x128xf32>
    %123 = vector.extract_strided_slice %122 {offsets = [0, 0], sizes = [1, 128], strides = [1, 1]} : vector<2x128xf32> to vector<1x128xf32>
    %124 = vector.broadcast %123 : vector<1x128xf32> to vector<4x128xf32>
    %125 = arith.addf %120, %124 : vector<4x128xf32>
    %cst_88 = arith.constant 0.000000e+00 : f32
    %126 = vector.broadcast %cst_88 : f32 to vector<4x128xf32>
    %127 = arith.cmpf oge, %125, %126 : vector<4x128xf32>
    %128 = vector.extract_strided_slice %122 {offsets = [1, 0], sizes = [1, 128], strides = [1, 1]} : vector<2x128xf32> to vector<1x128xf32>
    %129 = vector.broadcast %128 : vector<1x128xf32> to vector<4x128xf32>
    %130 = arith.mulf %129, %125 : vector<4x128xf32>
    %131 = arith.select %127, %125, %130 : vector<4x128xi1>, vector<4x128xf32>
    %cst_89 = arith.constant 0.000000e+00 : f32
    %132 = vector.broadcast %cst_89 : f32 to vector<4x128xf32>
    %133 = arith.select %18, %131, %132 : vector<4x128xi1>, vector<4x128xf32>
    %134 = arith.truncf %133 : vector<4x128xf32> to vector<4x128xbf16>
    %c9_90 = arith.constant 9 : index
    %c0_91 = arith.constant 0 : index
    %135 = vector.load %arg5[%c9_90, %c0_91] : memref<20x384xbf16, #tpu.memory_space<vmem>>, vector<4x128xbf16>
    tpu.vector_store %arg5[%c9_90, %c0_91], %134 {strides = array<i32>} : memref<20x384xbf16, #tpu.memory_space<vmem>>, vector<4x128xbf16>,
    %136 = arith.truncf %131 : vector<4x128xf32> to vector<4x128xbf16>
    %c8_92 = arith.constant 8 : index
    %c128_93 = arith.constant 128 : index
    %137 = vector.load %arg5[%c8_92, %c128_93] : memref<20x384xbf16, #tpu.memory_space<vmem>>, vector<4x128xbf16>
    tpu.vector_store %arg5[%c8_92, %c128_93], %136 {strides = array<i32>} : memref<20x384xbf16, #tpu.memory_space<vmem>>, vector<4x128xbf16>,
    %cst_94 = arith.constant 0.000000e+00 : f32
    %138 = vector.broadcast %cst_94 : f32 to vector<4x128xf32>
    %139 = arith.select %20, %131, %138 : vector<4x128xi1>, vector<4x128xf32>
    %140 = arith.truncf %139 : vector<4x128xf32> to vector<4x128xbf16>
    %c7_95 = arith.constant 7 : index
    %c256_96 = arith.constant 256 : index
    %141 = vector.load %arg5[%c7_95, %c256_96] : memref<20x384xbf16, #tpu.memory_space<vmem>>, vector<4x128xbf16>
    tpu.vector_store %arg5[%c7_95, %c256_96], %140 {strides = array<i32>} : memref<20x384xbf16, #tpu.memory_space<vmem>>, vector<4x128xbf16>,
    %c6_97 = arith.constant 6 : index
    %c0_98 = arith.constant 0 : index
    %142 = vector.load %arg5[%c6_97, %c0_98] : memref<20x384xbf16, #tpu.memory_space<vmem>>, vector<4x384xbf16>
    %c9_99 = arith.constant 9 : index
    %c0_100 = arith.constant 0 : index
    %c0_101 = arith.constant 0 : index
    %143 = vector.load %arg2[%c9_99, %c0_100, %c0_101] : memref<18x384x128xbf16, #tpu.memory_space<vmem>>, vector<1x384x128xbf16>
    %144 = vector.shape_cast %143 : vector<1x384x128xbf16> to vector<384x128xbf16>
    %cst_102 = arith.constant dense<0.000000e+00> : vector<4x128xf32>
    %145 = tpu.matmul %142, %144, %cst_102 {dimension_numbers = #tpu.dot_dimension_numbers<[1], [0], [0], [1], [0, 0, 1, 1], [], []>} : vector<4x384xbf16>, vector<384x128xbf16>, vector<4x128xf32> -> vector<4x128xf32>
    %c8_103 = arith.constant 8 : index
    %c0_104 = arith.constant 0 : index
    %146 = vector.load %arg5[%c8_103, %c0_104] : memref<20x384xbf16, #tpu.memory_space<vmem>>, vector<4x384xbf16>
    %c10_105 = arith.constant 10 : index
    %c0_106 = arith.constant 0 : index
    %c0_107 = arith.constant 0 : index
    %147 = vector.load %arg2[%c10_105, %c0_106, %c0_107] : memref<18x384x128xbf16, #tpu.memory_space<vmem>>, vector<1x384x128xbf16>
    %148 = vector.shape_cast %147 : vector<1x384x128xbf16> to vector<384x128xbf16>
    %cst_108 = arith.constant dense<0.000000e+00> : vector<4x128xf32>
    %149 = tpu.matmul %146, %148, %cst_108 {dimension_numbers = #tpu.dot_dimension_numbers<[1], [0], [0], [1], [0, 0, 1, 1], [], []>} : vector<4x384xbf16>, vector<384x128xbf16>, vector<4x128xf32> -> vector<4x128xf32>
    %150 = arith.addf %145, %149 : vector<4x128xf32>
    %c10_109 = arith.constant 10 : index
    %c0_110 = arith.constant 0 : index
    %151 = vector.load %arg5[%c10_109, %c0_110] : memref<20x384xbf16, #tpu.memory_space<vmem>>, vector<4x384xbf16>
    %c11 = arith.constant 11 : index
    %c0_111 = arith.constant 0 : index
    %c0_112 = arith.constant 0 : index
    %152 = vector.load %arg2[%c11, %c0_111, %c0_112] : memref<18x384x128xbf16, #tpu.memory_space<vmem>>, vector<1x384x128xbf16>
    %153 = vector.shape_cast %152 : vector<1x384x128xbf16> to vector<384x128xbf16>
    %cst_113 = arith.constant dense<0.000000e+00> : vector<4x128xf32>
    %154 = tpu.matmul %151, %153, %cst_113 {dimension_numbers = #tpu.dot_dimension_numbers<[1], [0], [0], [1], [0, 0, 1, 1], [], []>} : vector<4x384xbf16>, vector<384x128xbf16>, vector<4x128xf32> -> vector<4x128xf32>
    %155 = arith.addf %150, %154 : vector<4x128xf32>
    %c3_114 = arith.constant 3 : index
    %c0_115 = arith.constant 0 : index
    %c0_116 = arith.constant 0 : index
    %156 = vector.load %arg3[%c3_114, %c0_115, %c0_116] : memref<6x2x128xf32, #tpu.memory_space<vmem>>, vector<1x2x128xf32>
    %157 = vector.shape_cast %156 : vector<1x2x128xf32> to vector<2x128xf32>
    %158 = vector.extract_strided_slice %157 {offsets = [0, 0], sizes = [1, 128], strides = [1, 1]} : vector<2x128xf32> to vector<1x128xf32>
    %159 = vector.broadcast %158 : vector<1x128xf32> to vector<4x128xf32>
    %160 = arith.addf %155, %159 : vector<4x128xf32>
    %cst_117 = arith.constant 0.000000e+00 : f32
    %161 = vector.broadcast %cst_117 : f32 to vector<4x128xf32>
    %162 = arith.cmpf oge, %160, %161 : vector<4x128xf32>
    %163 = vector.extract_strided_slice %157 {offsets = [1, 0], sizes = [1, 128], strides = [1, 1]} : vector<2x128xf32> to vector<1x128xf32>
    %164 = vector.broadcast %163 : vector<1x128xf32> to vector<4x128xf32>
    %165 = arith.mulf %164, %160 : vector<4x128xf32>
    %166 = arith.select %162, %160, %165 : vector<4x128xi1>, vector<4x128xf32>
    %cst_118 = arith.constant 0.000000e+00 : f32
    %167 = vector.broadcast %cst_118 : f32 to vector<4x128xf32>
    %168 = arith.select %18, %166, %167 : vector<4x128xi1>, vector<4x128xf32>
    %169 = arith.truncf %168 : vector<4x128xf32> to vector<4x128xbf16>
    %c9_119 = arith.constant 9 : index
    %c0_120 = arith.constant 0 : index
    %170 = vector.load %arg5[%c9_119, %c0_120] : memref<20x384xbf16, #tpu.memory_space<vmem>>, vector<4x128xbf16>
    tpu.vector_store %arg5[%c9_119, %c0_120], %169 {strides = array<i32>} : memref<20x384xbf16, #tpu.memory_space<vmem>>, vector<4x128xbf16>,
    %171 = arith.truncf %166 : vector<4x128xf32> to vector<4x128xbf16>
    %c8_121 = arith.constant 8 : index
    %c128_122 = arith.constant 128 : index
    %172 = vector.load %arg5[%c8_121, %c128_122] : memref<20x384xbf16, #tpu.memory_space<vmem>>, vector<4x128xbf16>
    tpu.vector_store %arg5[%c8_121, %c128_122], %171 {strides = array<i32>} : memref<20x384xbf16, #tpu.memory_space<vmem>>, vector<4x128xbf16>,
    %cst_123 = arith.constant 0.000000e+00 : f32
    %173 = vector.broadcast %cst_123 : f32 to vector<4x128xf32>
    %174 = arith.select %20, %166, %173 : vector<4x128xi1>, vector<4x128xf32>
    %175 = arith.truncf %174 : vector<4x128xf32> to vector<4x128xbf16>
    %c7_124 = arith.constant 7 : index
    %c256_125 = arith.constant 256 : index
    %176 = vector.load %arg5[%c7_124, %c256_125] : memref<20x384xbf16, #tpu.memory_space<vmem>>, vector<4x128xbf16>
    tpu.vector_store %arg5[%c7_124, %c256_125], %175 {strides = array<i32>} : memref<20x384xbf16, #tpu.memory_space<vmem>>, vector<4x128xbf16>,
    %c6_126 = arith.constant 6 : index
    %c0_127 = arith.constant 0 : index
    %177 = vector.load %arg5[%c6_126, %c0_127] : memref<20x384xbf16, #tpu.memory_space<vmem>>, vector<4x384xbf16>
    %c12 = arith.constant 12 : index
    %c0_128 = arith.constant 0 : index
    %c0_129 = arith.constant 0 : index
    %178 = vector.load %arg2[%c12, %c0_128, %c0_129] : memref<18x384x128xbf16, #tpu.memory_space<vmem>>, vector<1x384x128xbf16>
    %179 = vector.shape_cast %178 : vector<1x384x128xbf16> to vector<384x128xbf16>
    %cst_130 = arith.constant dense<0.000000e+00> : vector<4x128xf32>
    %180 = tpu.matmul %177, %179, %cst_130 {dimension_numbers = #tpu.dot_dimension_numbers<[1], [0], [0], [1], [0, 0, 1, 1], [], []>} : vector<4x384xbf16>, vector<384x128xbf16>, vector<4x128xf32> -> vector<4x128xf32>
    %c8_131 = arith.constant 8 : index
    %c0_132 = arith.constant 0 : index
    %181 = vector.load %arg5[%c8_131, %c0_132] : memref<20x384xbf16, #tpu.memory_space<vmem>>, vector<4x384xbf16>
    %c13 = arith.constant 13 : index
    %c0_133 = arith.constant 0 : index
    %c0_134 = arith.constant 0 : index
    %182 = vector.load %arg2[%c13, %c0_133, %c0_134] : memref<18x384x128xbf16, #tpu.memory_space<vmem>>, vector<1x384x128xbf16>
    %183 = vector.shape_cast %182 : vector<1x384x128xbf16> to vector<384x128xbf16>
    %cst_135 = arith.constant dense<0.000000e+00> : vector<4x128xf32>
    %184 = tpu.matmul %181, %183, %cst_135 {dimension_numbers = #tpu.dot_dimension_numbers<[1], [0], [0], [1], [0, 0, 1, 1], [], []>} : vector<4x384xbf16>, vector<384x128xbf16>, vector<4x128xf32> -> vector<4x128xf32>
    %185 = arith.addf %180, %184 : vector<4x128xf32>
    %c10_136 = arith.constant 10 : index
    %c0_137 = arith.constant 0 : index
    %186 = vector.load %arg5[%c10_136, %c0_137] : memref<20x384xbf16, #tpu.memory_space<vmem>>, vector<4x384xbf16>
    %c14 = arith.constant 14 : index
    %c0_138 = arith.constant 0 : index
    %c0_139 = arith.constant 0 : index
    %187 = vector.load %arg2[%c14, %c0_138, %c0_139] : memref<18x384x128xbf16, #tpu.memory_space<vmem>>, vector<1x384x128xbf16>
    %188 = vector.shape_cast %187 : vector<1x384x128xbf16> to vector<384x128xbf16>
    %cst_140 = arith.constant dense<0.000000e+00> : vector<4x128xf32>
    %189 = tpu.matmul %186, %188, %cst_140 {dimension_numbers = #tpu.dot_dimension_numbers<[1], [0], [0], [1], [0, 0, 1, 1], [], []>} : vector<4x384xbf16>, vector<384x128xbf16>, vector<4x128xf32> -> vector<4x128xf32>
    %190 = arith.addf %185, %189 : vector<4x128xf32>
    %c4_141 = arith.constant 4 : index
    %c0_142 = arith.constant 0 : index
    %c0_143 = arith.constant 0 : index
    %191 = vector.load %arg3[%c4_141, %c0_142, %c0_143] : memref<6x2x128xf32, #tpu.memory_space<vmem>>, vector<1x2x128xf32>
    %192 = vector.shape_cast %191 : vector<1x2x128xf32> to vector<2x128xf32>
    %193 = vector.extract_strided_slice %192 {offsets = [0, 0], sizes = [1, 128], strides = [1, 1]} : vector<2x128xf32> to vector<1x128xf32>
    %194 = vector.broadcast %193 : vector<1x128xf32> to vector<4x128xf32>
    %195 = arith.addf %190, %194 : vector<4x128xf32>
    %cst_144 = arith.constant 0.000000e+00 : f32
    %196 = vector.broadcast %cst_144 : f32 to vector<4x128xf32>
    %197 = arith.cmpf oge, %195, %196 : vector<4x128xf32>
    %198 = vector.extract_strided_slice %192 {offsets = [1, 0], sizes = [1, 128], strides = [1, 1]} : vector<2x128xf32> to vector<1x128xf32>
    %199 = vector.broadcast %198 : vector<1x128xf32> to vector<4x128xf32>
    %200 = arith.mulf %199, %195 : vector<4x128xf32>
    %201 = arith.select %197, %195, %200 : vector<4x128xi1>, vector<4x128xf32>
    %cst_145 = arith.constant 0.000000e+00 : f32
    %202 = vector.broadcast %cst_145 : f32 to vector<4x128xf32>
    %203 = arith.select %18, %201, %202 : vector<4x128xi1>, vector<4x128xf32>
    %204 = arith.truncf %203 : vector<4x128xf32> to vector<4x128xbf16>
    %c9_146 = arith.constant 9 : index
    %c0_147 = arith.constant 0 : index
    %205 = vector.load %arg5[%c9_146, %c0_147] : memref<20x384xbf16, #tpu.memory_space<vmem>>, vector<4x128xbf16>
    tpu.vector_store %arg5[%c9_146, %c0_147], %204 {strides = array<i32>} : memref<20x384xbf16, #tpu.memory_space<vmem>>, vector<4x128xbf16>,
    %206 = arith.truncf %201 : vector<4x128xf32> to vector<4x128xbf16>
    %c8_148 = arith.constant 8 : index
    %c128_149 = arith.constant 128 : index
    %207 = vector.load %arg5[%c8_148, %c128_149] : memref<20x384xbf16, #tpu.memory_space<vmem>>, vector<4x128xbf16>
    tpu.vector_store %arg5[%c8_148, %c128_149], %206 {strides = array<i32>} : memref<20x384xbf16, #tpu.memory_space<vmem>>, vector<4x128xbf16>,
    %cst_150 = arith.constant 0.000000e+00 : f32
    %208 = vector.broadcast %cst_150 : f32 to vector<4x128xf32>
    %209 = arith.select %20, %201, %208 : vector<4x128xi1>, vector<4x128xf32>
    %210 = arith.truncf %209 : vector<4x128xf32> to vector<4x128xbf16>
    %c7_151 = arith.constant 7 : index
    %c256_152 = arith.constant 256 : index
    %211 = vector.load %arg5[%c7_151, %c256_152] : memref<20x384xbf16, #tpu.memory_space<vmem>>, vector<4x128xbf16>
    tpu.vector_store %arg5[%c7_151, %c256_152], %210 {strides = array<i32>} : memref<20x384xbf16, #tpu.memory_space<vmem>>, vector<4x128xbf16>,
    %c6_153 = arith.constant 6 : index
    %c0_154 = arith.constant 0 : index
    %212 = vector.load %arg5[%c6_153, %c0_154] : memref<20x384xbf16, #tpu.memory_space<vmem>>, vector<4x384xbf16>
    %c15 = arith.constant 15 : index
    %c0_155 = arith.constant 0 : index
    %c0_156 = arith.constant 0 : index
    %213 = vector.load %arg2[%c15, %c0_155, %c0_156] : memref<18x384x128xbf16, #tpu.memory_space<vmem>>, vector<1x384x128xbf16>
    %214 = vector.shape_cast %213 : vector<1x384x128xbf16> to vector<384x128xbf16>
    %cst_157 = arith.constant dense<0.000000e+00> : vector<4x128xf32>
    %215 = tpu.matmul %212, %214, %cst_157 {dimension_numbers = #tpu.dot_dimension_numbers<[1], [0], [0], [1], [0, 0, 1, 1], [], []>} : vector<4x384xbf16>, vector<384x128xbf16>, vector<4x128xf32> -> vector<4x128xf32>
    %c8_158 = arith.constant 8 : index
    %c0_159 = arith.constant 0 : index
    %216 = vector.load %arg5[%c8_158, %c0_159] : memref<20x384xbf16, #tpu.memory_space<vmem>>, vector<4x384xbf16>
    %c16 = arith.constant 16 : index
    %c0_160 = arith.constant 0 : index
    %c0_161 = arith.constant 0 : index
    %217 = vector.load %arg2[%c16, %c0_160, %c0_161] : memref<18x384x128xbf16, #tpu.memory_space<vmem>>, vector<1x384x128xbf16>
    %218 = vector.shape_cast %217 : vector<1x384x128xbf16> to vector<384x128xbf16>
    %cst_162 = arith.constant dense<0.000000e+00> : vector<4x128xf32>
    %219 = tpu.matmul %216, %218, %cst_162 {dimension_numbers = #tpu.dot_dimension_numbers<[1], [0], [0], [1], [0, 0, 1, 1], [], []>} : vector<4x384xbf16>, vector<384x128xbf16>, vector<4x128xf32> -> vector<4x128xf32>
    %220 = arith.addf %215, %219 : vector<4x128xf32>
    %c10_163 = arith.constant 10 : index
    %c0_164 = arith.constant 0 : index
    %221 = vector.load %arg5[%c10_163, %c0_164] : memref<20x384xbf16, #tpu.memory_space<vmem>>, vector<4x384xbf16>
    %c17 = arith.constant 17 : index
    %c0_165 = arith.constant 0 : index
    %c0_166 = arith.constant 0 : index
    %222 = vector.load %arg2[%c17, %c0_165, %c0_166] : memref<18x384x128xbf16, #tpu.memory_space<vmem>>, vector<1x384x128xbf16>
    %223 = vector.shape_cast %222 : vector<1x384x128xbf16> to vector<384x128xbf16>
    %cst_167 = arith.constant dense<0.000000e+00> : vector<4x128xf32>
    %224 = tpu.matmul %221, %223, %cst_167 {dimension_numbers = #tpu.dot_dimension_numbers<[1], [0], [0], [1], [0, 0, 1, 1], [], []>} : vector<4x384xbf16>, vector<384x128xbf16>, vector<4x128xf32> -> vector<4x128xf32>
    %225 = arith.addf %220, %224 : vector<4x128xf32>
    %c5_168 = arith.constant 5 : index
    %c0_169 = arith.constant 0 : index
    %c0_170 = arith.constant 0 : index
    %226 = vector.load %arg3[%c5_168, %c0_169, %c0_170] : memref<6x2x128xf32, #tpu.memory_space<vmem>>, vector<1x2x128xf32>
    %227 = vector.shape_cast %226 : vector<1x2x128xf32> to vector<2x128xf32>
    %228 = vector.extract_strided_slice %227 {offsets = [0, 0], sizes = [1, 128], strides = [1, 1]} : vector<2x128xf32> to vector<1x128xf32>
    %229 = vector.broadcast %228 : vector<1x128xf32> to vector<4x128xf32>
    %230 = arith.addf %225, %229 : vector<4x128xf32>
    %cst_171 = arith.constant 0.000000e+00 : f32
    %231 = vector.broadcast %cst_171 : f32 to vector<4x128xf32>
    %232 = arith.cmpf oge, %230, %231 : vector<4x128xf32>
    %233 = vector.extract_strided_slice %227 {offsets = [1, 0], sizes = [1, 128], strides = [1, 1]} : vector<2x128xf32> to vector<1x128xf32>
    %234 = vector.broadcast %233 : vector<1x128xf32> to vector<4x128xf32>
    %235 = arith.mulf %234, %230 : vector<4x128xf32>
    %236 = arith.select %232, %230, %235 : vector<4x128xi1>, vector<4x128xf32>
    %c0_172 = arith.constant 0 : index
    %c0_173 = arith.constant 0 : index
    %c0_174 = arith.constant 0 : index
    %237 = vector.load %arg1[%c0_172, %c0_173, %c0_174] : memref<1x4x128xbf16, #tpu.memory_space<vmem>>, vector<1x4x128xbf16>
    %238 = vector.shape_cast %237 : vector<1x4x128xbf16> to vector<4x128xbf16>
    %239 = arith.extf %238 : vector<4x128xbf16> to vector<4x128xf32>
    %240 = arith.addf %236, %239 : vector<4x128xf32>
    %241 = arith.truncf %240 : vector<4x128xf32> to vector<4x128xbf16>
    %c0_175 = arith.constant 0 : index
    %c0_176 = arith.constant 0 : index
    %c0_177 = arith.constant 0 : index
    %242 = vector.load %arg4[%c0_175, %c0_176, %c0_177] : memref<1x4x128xbf16, #tpu.memory_space<vmem>>, vector<1x4x128xbf16>
    %243 = vector.shape_cast %242 : vector<1x4x128xbf16> to vector<4x128xbf16>
    %244 = vector.shape_cast %241 : vector<4x128xbf16> to vector<1x4x128xbf16>
    tpu.vector_store %arg4[%c0_175, %c0_176, %c0_177], %244 {strides = array<i32>} : memref<1x4x128xbf16, #tpu.memory_space<vmem>>, vector<1x4x128xbf16>,
    return
  }
  func.func @transform_0(%arg0: i32) -> (i32, i32, i32) {
    %c0_i32 = arith.constant 0 : i32
    %c0_i32_0 = arith.constant 0 : i32
    %c0_i32_1 = arith.constant 0 : i32
    return %arg0, %c0_i32, %c0_i32_0 : i32, i32, i32
  }
  func.func @transform_1(%arg0: i32) -> (i32, i32, i32) {
    %c0_i32 = arith.constant 0 : i32
    %c0_i32_0 = arith.constant 0 : i32
    %c0_i32_1 = arith.constant 0 : i32
    %c0_i32_2 = arith.constant 0 : i32
    return %c0_i32, %c0_i32_0, %c0_i32_1 : i32, i32, i32
  }
  func.func @transform_2(%arg0: i32) -> (i32, i32, i32) {
    %c0_i32 = arith.constant 0 : i32
    %c0_i32_0 = arith.constant 0 : i32
    %c0_i32_1 = arith.constant 0 : i32
    %c0_i32_2 = arith.constant 0 : i32
    return %c0_i32, %c0_i32_0, %c0_i32_1 : i32, i32, i32
  }
  func.func @transform_3(%arg0: i32) -> (i32, i32, i32) {
    %c0_i32 = arith.constant 0 : i32
    %c0_i32_0 = arith.constant 0 : i32
    %c0_i32_1 = arith.constant 0 : i32
    return %arg0, %c0_i32, %c0_i32_0 : i32, i32, i32
  }
}

module attributes {stable_mosaic.version = 11 : i64} {
  func.func @_matmul_bias_act_kernel(%arg0: i32, %arg1: memref<16x384xbf16, #tpu.memory_space<vmem>>, %arg2: memref<384x128xbf16, #tpu.memory_space<vmem>>, %arg3: memref<2x128xf32, #tpu.memory_space<vmem>>, %arg4: memref<16x128xf32, #tpu.memory_space<vmem>>) attributes {dimension_semantics = [#tpu.dimension_semantics<parallel>], iteration_bounds = array<i64: 1>, scalar_prefetch = 0 : i64, scratch_operands = 0 : i64, tpu.core_type = #tpu.core_type<tc>, window_params = [{transform_indices = @transform_0, window_bounds = array<i64: 16, 384>}, {pipeline_mode = #tpu.pipeline_mode<synchronous>, transform_indices = @transform_1, window_bounds = array<i64: 384, 128>}, {pipeline_mode = #tpu.pipeline_mode<synchronous>, transform_indices = @transform_2, window_bounds = array<i64: 2, 128>}, {transform_indices = @transform_3, window_bounds = array<i64: 16, 128>}]} {
    %c0 = arith.constant 0 : index
    %c0_0 = arith.constant 0 : index
    %0 = vector.load %arg1[%c0, %c0_0] : memref<16x384xbf16, #tpu.memory_space<vmem>>, vector<16x384xbf16>
    %c0_1 = arith.constant 0 : index
    %c0_2 = arith.constant 0 : index
    %1 = vector.load %arg2[%c0_1, %c0_2] : memref<384x128xbf16, #tpu.memory_space<vmem>>, vector<384x128xbf16>
    %cst = arith.constant dense<0.000000e+00> : vector<16x128xf32>
    %2 = tpu.matmul %0, %1, %cst {dimension_numbers = #tpu.dot_dimension_numbers<[1], [0], [0], [1], [0, 0, 1, 1], [], []>} : vector<16x384xbf16>, vector<384x128xbf16>, vector<16x128xf32> -> vector<16x128xf32>
    %c0_3 = arith.constant 0 : index
    %c0_4 = arith.constant 0 : index
    %3 = vector.load %arg3[%c0_3, %c0_4] : memref<2x128xf32, #tpu.memory_space<vmem>>, vector<2x128xf32>
    %4 = vector.extract_strided_slice %3 {offsets = [0, 0], sizes = [1, 128], strides = [1, 1]} : vector<2x128xf32> to vector<1x128xf32>
    %5 = vector.broadcast %4 : vector<1x128xf32> to vector<16x128xf32>
    %6 = arith.addf %2, %5 : vector<16x128xf32>
    %c0_5 = arith.constant 0 : index
    %c0_6 = arith.constant 0 : index
    %7 = vector.load %arg4[%c0_5, %c0_6] : memref<16x128xf32, #tpu.memory_space<vmem>>, vector<16x128xf32>
    tpu.vector_store %arg4[%c0_5, %c0_6], %6 {strides = array<i32>} : memref<16x128xf32, #tpu.memory_space<vmem>>, vector<16x128xf32>,
    return
  }
  func.func @transform_0(%arg0: i32) -> (i32, i32) {
    %c0_i32 = arith.constant 0 : i32
    %c0_i32_0 = arith.constant 0 : i32
    return %arg0, %c0_i32 : i32, i32
  }
  func.func @transform_1(%arg0: i32) -> (i32, i32) {
    %c0_i32 = arith.constant 0 : i32
    %c0_i32_0 = arith.constant 0 : i32
    %c0_i32_1 = arith.constant 0 : i32
    return %c0_i32, %c0_i32_0 : i32, i32
  }
  func.func @transform_2(%arg0: i32) -> (i32, i32) {
    %c0_i32 = arith.constant 0 : i32
    %c0_i32_0 = arith.constant 0 : i32
    %c0_i32_1 = arith.constant 0 : i32
    return %c0_i32, %c0_i32_0 : i32, i32
  }
  func.func @transform_3(%arg0: i32) -> (i32, i32) {
    %c0_i32 = arith.constant 0 : i32
    %c0_i32_0 = arith.constant 0 : i32
    return %arg0, %c0_i32 : i32, i32
  }
}

</mosaic_0001>

<bundles_post_ra>
// kernel: flow_block_forward.5
= control target key start
LH: loop header
LB: loop body
LE: loop exit
PB: predicated region body
PF: predicated region fallthrough
CT: control target
= control target key end

     0   :  { %v48_v16 = vlaneseq  ;;  %s693_s1 = inlined_call_operand.vmem [shape: bf16[128,128], index: 1, kind: input, shape index: {}]   ;;  %s694_s0 = inlined_call_operand.vmem [shape: bf16[128,128], index: 0, kind: input, shape index: {}]   ;;  %s695_s2 = inlined_call_operand.vmem [shape: f32[2,128], index: 2, kind: input, shape index: {}]   ;;  %s696_s3 = inlined_call_operand.vmem [shape: bf16[128,128], index: 3, kind: output, shape index: {}]  }
   0x1   :  { %v540_v0 = vld [vmem:[%s693_s1 + $0x38] sm:$0xff]   ;;  %v541_v1 = vld [vmem:[%s693_s1 + $0x30] sm:$0xff]   ;;  %v542_v2 = vld [vmem:[%s693_s1 + $0x28] sm:$0xff]  }
   0x2   :  { %492 = vmatprep.subr.bf16.mxu0 %v540_v0  ;;  %524 = vmatprep.subr.bf16.mxu1 %v540_v0  ;;  %v543_v3 = vld [vmem:[%s693_s1 + $0x20] sm:$0xff]   ;;  %v544_v6 = vld [vmem:[%s693_s1 + $0x18] sm:$0xff]   ;;  %v545_v7 = vld [vmem:[%s693_s1 + $0x10] sm:$0xff]   ;;  %v49_v17 = vshrl.u32 %v48_v16, 7 }
   0x3   :  { %493 = vmatpush3.bf16.msra.mxu0 %v540_v0  ;;  %532 = vmatpush3.bf16.msra.mxu1 %v540_v0  ;;  %v548_v4 = vld [vmem:[%s694_s0] sm:$0xff]   ;;  %v546_v8 = vld [vmem:[%s693_s1 + $0x8] sm:$0xff]   ;;  %v552_v12 = vld [vmem:[%s694_s0 + $0x10] sm:$0xff]  }
   0x4   :  { %494 = vmatprep.subr.bf16.mxu0 %v541_v1  ;;  %525 = vmatprep.subr.bf16.mxu1 %v541_v1  ;;  %v549_v5 = vld [vmem:[%s694_s0 + $0x20] sm:$0xff]   ;;  %v550_v10 = vld [vmem:[%s694_s0 + $0x8] sm:$0xff]   ;;  %v553_v13 = vld [vmem:[%s694_s0 + $0x30] sm:$0xff]   ;;  %v50_v18 = vsub.s32 0, %v49_v17  ;;  %v263_v20 = vsub.s32 1, %v49_v17 }
   0x5   :  { %508 = vmatprep.mubr.bf16.mxu0 %v548_v4  ;;  %516 = vmatprep.mubr.bf16.mxu1 %v549_v5  ;;  %v547_v9 = vld [vmem:[%s693_s1] sm:$0xff]   ;;  %v551_v11 = vld [vmem:[%s694_s0 + $0x28] sm:$0xff]   ;;  %v554_v14 = vld [vmem:[%s694_s0 + $0x18] sm:$0xff]  }
   0x6   :  { %v555_v15 = vld [vmem:[%s694_s0 + $0x38] sm:$0xff]   ;;  %v47_v19 = vld [vmem:[%s695_s2] sm:$0x3] }
   0x7   :  { %495 = vmatpush3.bf16.msra.mxu0 %v541_v1  ;;  %533 = vmatpush3.bf16.msra.mxu1 %v541_v1  ;;  %v627_v21 = vrot.slane %v47_v19, %v50_v18  ;;  %v629_v22 = vrot.slane %v47_v19, %v263_v20 }
   0x8   :  { %496 = vmatprep.subr.bf16.mxu0 %v542_v2  ;;  %526 = vmatprep.subr.bf16.mxu1 %v542_v2 }
   0xb   :  { %497 = vmatpush3.bf16.msra.mxu0 %v542_v2  ;;  %534 = vmatpush3.bf16.msra.mxu1 %v542_v2 }
   0xc   :  { %498 = vmatprep.subr.bf16.mxu0 %v543_v3  ;;  %527 = vmatprep.subr.bf16.mxu1 %v543_v3 }
   0xf   :  { %499 = vmatpush3.bf16.msra.mxu0 %v543_v3  ;;  %535 = vmatpush3.bf16.msra.mxu1 %v543_v3 }
  0x10   :  { %500 = vmatprep.subr.bf16.mxu0 %v544_v6  ;;  %528 = vmatprep.subr.bf16.mxu1 %v544_v6 }
  0x13   :  { %501 = vmatpush3.bf16.msra.mxu0 %v544_v6  ;;  %536 = vmatpush3.bf16.msra.mxu1 %v544_v6 }
  0x14   :  { %502 = vmatprep.subr.bf16.mxu0 %v545_v7  ;;  %529 = vmatprep.subr.bf16.mxu1 %v545_v7 }
  0x17   :  { %503 = vmatpush3.bf16.msra.mxu0 %v545_v7  ;;  %537 = vmatpush3.bf16.msra.mxu1 %v545_v7 }
  0x18   :  { %504 = vmatprep.subr.bf16.mxu0 %v546_v8  ;;  %530 = vmatprep.subr.bf16.mxu1 %v546_v8 }
  0x1b   :  { %505 = vmatpush3.bf16.msra.mxu0 %v546_v8  ;;  %538 = vmatpush3.bf16.msra.mxu1 %v546_v8 }
  0x1c   :  { %506 = vmatprep.subr.bf16.mxu0 %v547_v9  ;;  %531 = vmatprep.subr.bf16.mxu1 %v547_v9 }
  0x1f   :  { %507 = vmatpush3.bf16.msra.mxu0 %v547_v9  ;;  %539 = vmatpush3.bf16.msra.mxu1 %v547_v9 }
  0x22   :  { %509 = vmatmul.mubr.bf16.vlgmr.msra.gmra.mxu0 %v550_v10  ;;  %517 = vmatmul.mubr.bf16.vlgmr.msra.gmra.mxu1 %v551_v11 }
  0x23   :  { %512 = vmatprep.mubr.bf16.mxu0 %v552_v12  ;;  %520 = vmatprep.mubr.bf16.mxu1 %v553_v13 }
  0x2a   :  { %513 = vmatmul.mubr.bf16.gmra.mxu0 %v554_v14  ;;  %521 = vmatmul.mubr.bf16.gmra.mxu1 %v555_v15 }
  0xe2   :  { %v510_v23 = vpop.f32.mrf.mxu0  ;;  %v518_v24 = vpop.f32.mrf.mxu1 }
  0xe3   :  { %v191_v25 = vadd.f32 %v510_v23, %v627_v21  ;;  %v223_v26 = vadd.f32 %v518_v24, %v627_v21 }
  0xe4   :  { %v182_v27 = vpop.f32.mrf.mxu0  ;;  %v214_v28 = vpop.f32.mrf.mxu1 }
  0xe5   :  { %vm247_vm0 = vcmp.ge.f32.partialorder %v191_v25, 0.0  ;;  %v267_v29 = vmul.f32 %v629_v22, %v191_v25  ;;  %vm255_vm1 = vcmp.ge.f32.partialorder %v223_v26, 0.0  ;;  %v275_v30 = vmul.f32 %v629_v22, %v223_v26 }
  0xe6   :  { %v183_v31 = vadd.f32 %v182_v27, %v627_v21  ;;  %v215_v32 = vadd.f32 %v214_v28, %v627_v21  ;;  %v511_v33 = vpop.f32.mrf.mxu0  ;;  %v519_v34 = vpop.f32.mrf.mxu1 }
  0xe7   :  { %v194_v35 = vadd.f32 %v511_v33, %v627_v21  ;;  %v226_v36 = vadd.f32 %v519_v34, %v627_v21  ;;  %v283_v37 = vsel %vm247_vm0, %v191_v25, %v267_v29  ;;  %v291_v38 = vsel %vm255_vm1, %v223_v26, %v275_v30 }
  0xe8   :  { %vm245_vm2 = vcmp.ge.f32.partialorder %v183_v31, 0.0  ;;  %v265_v39 = vmul.f32 %v629_v22, %v183_v31  ;;  %v185_v40 = vpop.f32.mrf.mxu0  ;;  %v217_v41 = vpop.f32.mrf.mxu1  ;;  %vm253_vm5 = vcmp.ge.f32.partialorder %v215_v32, 0.0  ;;  %v273_v44 = vmul.f32 %v629_v22, %v215_v32 }
  0xe9   :  { %vm248_vm3 = vcmp.ge.f32.partialorder %v194_v35, 0.0  ;;  %v268_v42 = vmul.f32 %v629_v22, %v194_v35  ;;  %vm256_vm4 = vcmp.ge.f32.partialorder %v226_v36, 0.0  ;;  %v276_v43 = vmul.f32 %v629_v22, %v226_v36 }
  0xea   :  { %v186_v45 = vadd.f32 %v185_v40, %v627_v21  ;;  %v218_v46 = vadd.f32 %v217_v41, %v627_v21  ;;  %v514_v47 = vpop.f32.mrf.mxu0  ;;  %v522_v48 = vpop.f32.mrf.mxu1  ;;  %v281_v59 = vsel %vm245_vm2, %v183_v31, %v265_v39  ;;  %v289_v0 = vsel %vm253_vm5, %v215_v32, %v273_v44 }
  0xeb   :  { %v284_v49 = vsel %vm248_vm3, %v194_v35, %v268_v42  ;;  %v292_v50 = vsel %vm256_vm4, %v226_v36, %v276_v43  ;;  %v207_v51 = vadd.f32 %v514_v47, %v627_v21  ;;  %v239_v52 = vadd.f32 %v522_v48, %v627_v21 }
  0xec   :  { %v437_v53 = vpack.c.bf16 %v284_v49, %v283_v37  ;;  %v457_v54 = vpack.c.bf16 %v292_v50, %v291_v38  ;;  %vm246_vm6 = vcmp.ge.f32.partialorder %v186_v45, 0.0  ;;  %v266_v55 = vmul.f32 %v629_v22, %v186_v45  ;;  %v198_v56 = vpop.f32.mrf.mxu0  ;;  %v230_v57 = vpop.f32.mrf.mxu1 }
  0xed   :  { %vm254_vm7 = vcmp.ge.f32.partialorder %v218_v46, 0.0  ;;  %v274_v58 = vmul.f32 %v629_v22, %v218_v46  ;;  %v199_v61 = vadd.f32 %v198_v56, %v627_v21  ;;  %v231_v3 = vadd.f32 %v230_v57, %v627_v21 }
  0xee   :  { %469 = vst [vmem:[%s696_s3 + $0x8] sm:$0xff] %v437_v53   ;;  %473 = vst [vmem:[%s696_s3 + $0x28] sm:$0xff] %v457_v54   ;;  %v282_v60 = vsel %vm246_vm6, %v186_v45, %v266_v55  ;;  %v515_v62 = vpop.f32.mrf.mxu0  ;;  %v523_v63 = vpop.f32.mrf.mxu1  ;;  %vm251_vm8 = vcmp.ge.f32.partialorder %v207_v51, 0.0  ;;  %v271_v5 = vmul.f32 %v629_v22, %v207_v51  ;;  %vm259_vm9 = vcmp.ge.f32.partialorder %v239_v52, 0.0 }
  0xef   :  { %v432_v1 = vpack.c.bf16 %v282_v60, %v281_v59  ;;  %v290_v2 = vsel %vm254_vm7, %v218_v46, %v274_v58  ;;  %v279_v8 = vmul.f32 %v629_v22, %v239_v52  ;;  %vm249_vm10 = vcmp.ge.f32.partialorder %v199_v61, 0.0 }
  0xf0   :  { %v452_v4 = vpack.c.bf16 %v290_v2, %v289_v0  ;;  %v201_v6 = vpop.f32.mrf.mxu0  ;;  %v233_v7 = vpop.f32.mrf.mxu1  ;;  %v210_v9 = vadd.f32 %v515_v62, %v627_v21  ;;  %v242_v10 = vadd.f32 %v523_v63, %v627_v21  ;;  %v269_v11 = vmul.f32 %v629_v22, %v199_v61 }
  0xf1   :  { %433 = vst [vmem:[%s696_s3] sm:$0xff] %v432_v1   ;;  %vm257_vm11 = vcmp.ge.f32.partialorder %v231_v3, 0.0  ;;  %v202_v12 = vadd.f32 %v201_v6, %v627_v21  ;;  %v234_v13 = vadd.f32 %v233_v7, %v627_v21  ;;  %v277_v14 = vmul.f32 %v629_v22, %v231_v3 }
  0xf2   :  { %472 = vst [vmem:[%s696_s3 + $0x20] sm:$0xff] %v452_v4   ;;  %vm252_vm12 = vcmp.ge.f32.partialorder %v210_v9, 0.0  ;;  %v272_v15 = vmul.f32 %v629_v22, %v210_v9  ;;  %vm260_vm13 = vcmp.ge.f32.partialorder %v242_v10, 0.0  ;;  %v280_v16 = vmul.f32 %v629_v22, %v242_v10 }
  0xf3   :  { %vm250_vm14 = vcmp.ge.f32.partialorder %v202_v12, 0.0  ;;  %v270_v17 = vmul.f32 %v629_v22, %v202_v12  ;;  %vm258_vm15 = vcmp.ge.f32.partialorder %v234_v13, 0.0  ;;  %v287_v18 = vsel %vm251_vm8, %v207_v51, %v271_v5 }
  0xf4   :  { %v295_v19 = vsel %vm259_vm9, %v239_v52, %v279_v8  ;;  %v288_v20 = vsel %vm252_vm12, %v210_v9, %v272_v15  ;;  %v278_v23 = vmul.f32 %v629_v22, %v234_v13  ;;  %v285_v21 = vsel %vm249_vm10, %v199_v61, %v269_v11 }
  0xf5   :  { %v447_v24 = vpack.c.bf16 %v288_v20, %v287_v18  ;;  %v296_v25 = vsel %vm260_vm13, %v242_v10, %v280_v16  ;;  %v286_v26 = vsel %vm250_vm14, %v202_v12, %v270_v17  ;;  %v293_v27 = vsel %vm257_vm11, %v231_v3, %v277_v14 }
  0xf6   :  { %v467_v28 = vpack.c.bf16 %v296_v25, %v295_v19  ;;  %v442_v29 = vpack.c.bf16 %v286_v26, %v285_v21  ;;  %v294_v30 = vsel %vm258_vm15, %v234_v13, %v278_v23 }
  0xf7   :  { %471 = vst [vmem:[%s696_s3 + $0x18] sm:$0xff] %v447_v24   ;;  %v462_v31 = vpack.c.bf16 %v294_v30, %v293_v27 }
  0xf8   :  { %475 = vst [vmem:[%s696_s3 + $0x38] sm:$0xff] %v467_v28   ;;  %470 = vst [vmem:[%s696_s3 + $0x10] sm:$0xff] %v442_v29  }
  0xf9   :  { %474 = vst [vmem:[%s696_s3 + $0x30] sm:$0xff] %v462_v31  }

// kernel: flow_block_forward.6
= control target key start
LH: loop header
LB: loop body
LE: loop exit
PB: predicated region body
PF: predicated region fallthrough
CT: control target
= control target key end

     0   :  { %v36_v10 = vlaneseq  ;;  %s317_s1 = inlined_call_operand.vmem [shape: bf16[128,128], index: 1, kind: input, shape index: {}]   ;;  %s318_s0 = inlined_call_operand.vmem [shape: bf16[32,128], index: 0, kind: input, shape index: {}]   ;;  %s319_s2 = inlined_call_operand.vmem [shape: f32[2,128], index: 2, kind: input, shape index: {}]   ;;  %s320_s3 = inlined_call_operand.vmem [shape: bf16[32,128], index: 3, kind: output, shape index: {}]  }
   0x1   :  { %v248_v0 = vld [vmem:[%s317_s1 + $0x38] sm:$0xff]   ;;  %v249_v1 = vld [vmem:[%s317_s1 + $0x30] sm:$0xff]   ;;  %v250_v2 = vld [vmem:[%s317_s1 + $0x28] sm:$0xff]  }
   0x2   :  { %228 = vmatprep.subr.bf16.mxu0 %v248_v0  ;;  %v251_v3 = vld [vmem:[%s317_s1 + $0x20] sm:$0xff]   ;;  %v252_v5 = vld [vmem:[%s317_s1 + $0x18] sm:$0xff]   ;;  %v253_v6 = vld [vmem:[%s317_s1 + $0x10] sm:$0xff]   ;;  %v37_v11 = vshrl.u32 %v36_v10, 7 }
   0x3   :  { %229 = vmatpush3.bf16.msra.mxu0 %v248_v0  ;;  %v256_v4 = vld [vmem:[%s318_s0] sm:$0xff]   ;;  %v254_v7 = vld [vmem:[%s317_s1 + $0x8] sm:$0xff]  }
   0x4   :  { %230 = vmatprep.subr.bf16.mxu0 %v249_v1  ;;  %244 = vmatprep.mubr.bf16.mxu0 %v256_v4  ;;  %v255_v8 = vld [vmem:[%s317_s1] sm:$0xff]   ;;  %v257_v9 = vld [vmem:[%s318_s0 + $0x8] sm:$0xff]   ;;  %v38_v12 = vsub.s32 0, %v37_v11  ;;  %v155_v15 = vsub.s32 1, %v37_v11 }
   0x5   :  { %v35_v13 = vld [vmem:[%s319_s2] sm:$0x3] }
   0x6   :  { %v39_v14 = vrot.slane %v35_v13, %v38_v12  ;;  %v156_v18 = vrot.slane %v35_v13, %v155_v15 }
   0x7   :  { %231 = vmatpush3.bf16.msra.mxu0 %v249_v1 }
   0x8   :  { %232 = vmatprep.subr.bf16.mxu0 %v250_v2 }
   0xb   :  { %233 = vmatpush3.bf16.msra.mxu0 %v250_v2 }
   0xc   :  { %234 = vmatprep.subr.bf16.mxu0 %v251_v3 }
   0xf   :  { %235 = vmatpush3.bf16.msra.mxu0 %v251_v3 }
  0x10   :  { %236 = vmatprep.subr.bf16.mxu0 %v252_v5 }
  0x13   :  { %237 = vmatpush3.bf16.msra.mxu0 %v252_v5 }
  0x14   :  { %238 = vmatprep.subr.bf16.mxu0 %v253_v6 }
  0x17   :  { %239 = vmatpush3.bf16.msra.mxu0 %v253_v6 }
  0x18   :  { %240 = vmatprep.subr.bf16.mxu0 %v254_v7 }
  0x1b   :  { %241 = vmatpush3.bf16.msra.mxu0 %v254_v7 }
  0x1c   :  { %242 = vmatprep.subr.bf16.mxu0 %v255_v8 }
  0x1f   :  { %243 = vmatpush3.bf16.msra.mxu0 %v255_v8 }
  0x22   :  { %245 = vmatmul.mubr.bf16.vlgmr.msra.gmra.mxu0 %v257_v9 }
  0xe2   :  { %v246_v16 = vpop.f32.mrf.mxu0 }
  0xe3   :  { %v143_v17 = vadd.f32 %v246_v16, %v39_v14 }
  0xe4   :  { %v134_v19 = vpop.f32.mrf.mxu0 }
  0xe5   :  { %v135_v20 = vadd.f32 %v134_v19, %v39_v14  ;;  %v159_v22 = vmul.f32 %v156_v18, %v143_v17  ;;  %vm151_vm0 = vcmp.ge.f32.partialorder %v143_v17, 0.0 }
  0xe6   :  { %v247_v21 = vpop.f32.mrf.mxu0 }
  0xe7   :  { %v146_v23 = vadd.f32 %v247_v21, %v39_v14  ;;  %v157_v25 = vmul.f32 %v156_v18, %v135_v20  ;;  %vm149_vm2 = vcmp.ge.f32.partialorder %v135_v20, 0.0  ;;  %v163_v28 = vsel %vm151_vm0, %v143_v17, %v159_v22 }
  0xe8   :  { %v137_v24 = vpop.f32.mrf.mxu0 }
  0xe9   :  { %vm152_vm1 = vcmp.ge.f32.partialorder %v146_v23, 0.0  ;;  %v160_v26 = vmul.f32 %v156_v18, %v146_v23  ;;  %v138_v27 = vadd.f32 %v137_v24, %v39_v14  ;;  %v161_v32 = vsel %vm149_vm2, %v135_v20, %v157_v25 }
  0xeb   :  { %v164_v29 = vsel %vm152_vm1, %v146_v23, %v160_v26  ;;  %vm150_vm3 = vcmp.ge.f32.partialorder %v138_v27, 0.0  ;;  %v158_v30 = vmul.f32 %v156_v18, %v138_v27 }
  0xec   :  { %v215_v31 = vpack.c.bf16 %v164_v29, %v163_v28 }
  0xed   :  { %v162_v33 = vsel %vm150_vm3, %v138_v27, %v158_v30 }
  0xee   :  { %217 = vst [vmem:[%s320_s3 + $0x8] sm:$0xff] %v215_v31   ;;  %v210_v34 = vpack.c.bf16 %v162_v33, %v161_v32 }
  0xf0   :  { %211 = vst [vmem:[%s320_s3] sm:$0xff] %v210_v34  }

// kernel: flow_block_forward.7
= control target key start
LH: loop header
LB: loop body
LE: loop exit
PB: predicated region body
PF: predicated region fallthrough
CT: control target
= control target key end

     0   :  { %v50_v18 = vlaneseq  ;;  %s373_s1 = inlined_call_operand.vmem [shape: bf16[256,128], index: 1, kind: input, shape index: {}]   ;;  %s374_s0 = inlined_call_operand.vmem [shape: bf16[16,256], index: 0, kind: input, shape index: {}]   ;;  %s375_s2 = inlined_call_operand.vmem [shape: f32[2,128], index: 2, kind: input, shape index: {}]   ;;  %s376_s3 = inlined_call_operand.vmem [shape: bf16[16,128], index: 3, kind: output, shape index: {}]  }
   0x1   :  { %v274_v0 = vld [vmem:[%s373_s1 + $0x78] sm:$0xff]   ;;  %v276_v2 = vld [vmem:[%s373_s1 + $0x70] sm:$0xff]   ;;  %v278_v4 = vld [vmem:[%s373_s1 + $0x68] sm:$0xff]  }
   0x2   :  { %v275_v1 = vld [vmem:[%s373_s1 + $0x38] sm:$0xff]   ;;  %252 = vmatprep.subr.bf16.mxu0 %v274_v0  ;;  %v277_v3 = vld [vmem:[%s373_s1 + $0x30] sm:$0xff]   ;;  %v279_v5 = vld [vmem:[%s373_s1 + $0x28] sm:$0xff]   ;;  %v51_v19 = vshrl.u32 %v50_v18, 7 }
   0x3   :  { %253 = vmatpush3.bf16.msra.mxu0 %v275_v1  ;;  %v280_v6 = vld [vmem:[%s373_s1 + $0x60] sm:$0xff]   ;;  %v282_v8 = vld [vmem:[%s373_s1 + $0x58] sm:$0xff]   ;;  %v284_v10 = vld [vmem:[%s373_s1 + $0x50] sm:$0xff]  }
   0x4   :  { %254 = vmatprep.subr.bf16.mxu0 %v276_v2  ;;  %v281_v7 = vld [vmem:[%s373_s1 + $0x20] sm:$0xff]   ;;  %v283_v9 = vld [vmem:[%s373_s1 + $0x18] sm:$0xff]   ;;  %v285_v12 = vld [vmem:[%s373_s1 + $0x10] sm:$0xff]   ;;  %v52_v20 = vsub.s32 0, %v51_v19  ;;  %v205_v24 = vsub.s32 1, %v51_v19 }
   0x5   :  { %v292_v11 = vld [vmem:[%s374_s0 + $0x4] ss:$8 sps:$4 sm:$0xff]   ;;  %v290_v17 = vld [vmem:[%s374_s0] ss:$8 sps:$4 sm:$0xff]  }
   0x6   :  { %192 = vmatprep.mubr.bf16.mxu0 %v292_v11  ;;  %v286_v13 = vld [vmem:[%s373_s1 + $0x48] sm:$0xff]   ;;  %v288_v15 = vld [vmem:[%s373_s1 + $0x40] sm:$0xff]  }
   0x7   :  { %255 = vmatpush3.bf16.msra.mxu0 %v277_v3  ;;  %v287_v14 = vld [vmem:[%s373_s1 + $0x8] sm:$0xff]   ;;  %v289_v16 = vld [vmem:[%s373_s1] sm:$0xff]  }
   0x8   :  { %256 = vmatprep.subr.bf16.mxu0 %v278_v4  ;;  %v49_v21 = vld [vmem:[%s375_s2] sm:$0x3] }
   0x9   :  { %v53_v23 = vrot.slane %v49_v21, %v52_v20  ;;  %v206_v29 = vrot.slane %v49_v21, %v205_v24 }
   0xb   :  { %257 = vmatpush3.bf16.msra.mxu0 %v279_v5 }
   0xc   :  { %258 = vmatprep.subr.bf16.mxu0 %v280_v6 }
   0xf   :  { %259 = vmatpush3.bf16.msra.mxu0 %v281_v7 }
  0x10   :  { %260 = vmatprep.subr.bf16.mxu0 %v282_v8 }
  0x13   :  { %261 = vmatpush3.bf16.msra.mxu0 %v283_v9 }
  0x14   :  { %262 = vmatprep.subr.bf16.mxu0 %v284_v10 }
  0x17   :  { %263 = vmatpush3.bf16.msra.mxu0 %v285_v12 }
  0x18   :  { %264 = vmatprep.subr.bf16.mxu0 %v286_v13 }
  0x1b   :  { %265 = vmatpush3.bf16.msra.mxu0 %v287_v14 }
  0x1c   :  { %266 = vmatprep.subr.bf16.mxu0 %v288_v15 }
  0x1f   :  { %267 = vmatpush3.bf16.msra.mxu0 %v289_v16 }
  0x22   :  { %193 = vmatmul.mubr.bf16.vlgmr.msra.gmra.mxu0 %v290_v17 }
  0xe2   :  { %v268_v22 = vpop.f32.mrf.mxu0 }
  0xe4   :  { %v269_v25 = vpop.f32.mrf.mxu0 }
  0xe5   :  { %v270_v26 = vadd.f32 %v269_v25, %v268_v22 }
  0xe6   :  { %v271_v27 = vpop.f32.mrf.mxu0 }
  0xe7   :  { %v195_v28 = vadd.f32 %v270_v26, %v53_v23 }
  0xe8   :  { %v272_v30 = vpop.f32.mrf.mxu0 }
  0xe9   :  { %v273_v31 = vadd.f32 %v272_v30, %v271_v27  ;;  %v207_v32 = vmul.f32 %v206_v29, %v195_v28  ;;  %vm201_vm0 = vcmp.ge.f32.partialorder %v195_v28, 0.0 }
  0xeb   :  { %v198_v33 = vadd.f32 %v273_v31, %v53_v23  ;;  %v209_v35 = vsel %vm201_vm0, %v195_v28, %v207_v32 }
  0xed   :  { %vm202_vm1 = vcmp.ge.f32.partialorder %v198_v33, 0.0  ;;  %v208_v34 = vmul.f32 %v206_v29, %v198_v33 }
  0xef   :  { %v210_v36 = vsel %vm202_vm1, %v198_v33, %v208_v34 }
  0xf0   :  { %v250_v37 = vpack.c.bf16 %v210_v36, %v209_v35 }
  0xf2   :  { %251 = vst [vmem:[%s376_s3] sm:$0xff] %v250_v37  }

// kernel: flow_block_forward.8
= control target key start
LH: loop header
LB: loop body
LE: loop exit
PB: predicated region body
PF: predicated region fallthrough
CT: control target
= control target key end

     0   :  { %s8606_s12 = smov 0   ;;  %s10265_s0 = inlined_call_operand.vmem [shape: bf16[2,4,128], index: 0, kind: input, shape index: {}]   ;;  %s10266_s1 = inlined_call_operand.vmem [shape: bf16[18,384,128], index: 1, kind: input, shape index: {}]   ;;  %s10267_s2 = inlined_call_operand.vmem [shape: f32[6,2,128], index: 2, kind: input, shape index: {}]   ;;  %s10268_s3 = inlined_call_operand.vmem [shape: bf16[2,4,128], index: 3, kind: output, shape index: {}]  }
   0x1 LB: > { %s5815_s13 = sadd.s32 4294967295, %s8581_s12   ;;  %p5819_p0 = scmp.ge.s32.totalorder %s8581_s12, 1  ;;  %s8581_s12 = sphi %s8606_s12, %s13_s12  }
   0x2   : > { %p136_p1 = scmp.lt.s32.totalorder %s8581_s12, 3 }
   0x4   : > { %p137_p2 = pnand %p5819_p0, %p136_p1 }
   0x5   : > { %p158_p3 = scmp.lt.s32.totalorder (!%p137_p2), %s5815_s13, 1 }
   0x6   : > { %140 = sbr.rel (%p137_p2) target bundleno = 1775 (0x6ef), region = 32 }
   0xb   : > { %v8084_v0 = vld [vmem:[%s10266_s1 + $0x138] sm:$0xff]   ;;  %v8583_v1 = vmov 0.0   ;;  %vm8584_vm0 = vmmov 0   ;;  %v8087_v4 = vld [vmem:[%s10266_s1 + $0x130] sm:$0xff]   ;;  %v8090_v7 = vld [vmem:[%s10266_s1 + $0x128] sm:$0xff]   ;;  %v8585_v11 = vmov 0   ;;  %v167_v14 = vlaneseq }
   0xc   : > { %7713 = vmatprep.subr.bf16.mxu1 %v8583_v1  ;;  %v8085_v2 = vld [vmem:[%s10266_s1 + $0x178] sm:$0xff]   ;;  %7155 = vmatprep.subr.bf16.mxu0 %v8084_v0  ;;  %v8088_v5 = vld [vmem:[%s10266_s1 + $0x170] sm:$0xff]   ;;  %v8091_v8 = vld [vmem:[%s10266_s1 + $0x168] sm:$0xff]   ;;  %189 = vst [vmem:[#allocation2 + $0xc] sm:$0xff] %v8585_v11  ;;  %s10280_s13 = smov (!%p158_p3, %s5815_s13), 1  ;;  %vm208_vm5 = vcmask 1042432  }
   0xd   : > { %v8086_v3 = vld [vmem:[%s10266_s1 + $0xf8] sm:$0xff]   ;;  %7729 = vmatprep.mubr.msk.bf16.mxu1 %vm8584_vm0, %v8583_v1  ;;  %7714 = vmatpush3.bf16.msra.mxu1 %v8085_v2  ;;  %v8089_v6 = vld [vmem:[%s10266_s1 + $0xf0] sm:$0xff]   ;;  %v8092_v9 = vld [vmem:[%s10266_s1 + $0xe8] sm:$0xff]   ;;  %183 = vst [vmem:[#allocation2] sm:$0xff] %v8585_v11  ;;  %v8672_v18 = vshrl.u32 %v167_v14, 7  ;;  %s5820_s21 = sshll.u32 %s10280_s13, 1 }
   0xe   : > { %7156 = vmatpush3.bf16.msra.mxu0 %v8086_v3  ;;  %7715 = vmatprep.subr.bf16.mxu1 %v8583_v1  ;;  %v8093_v10 = vld [vmem:[%s10266_s1 + $0x120] sm:$0xff]   ;;  %184 = vst [vmem:[#allocation2 + $0x8] sm:$0xf] %v8585_v11  ;;  %186 = vst [vmem:[#allocation2 + $0x14] sm:$0xf] %v8585_v11  ;;  %v8096_v15 = vld [vmem:[%s10266_s1 + $0x118] sm:$0xff]   ;;  %s8694_s30 = scalar_lea.vmem %s10265_s0, %s5820_s21  ;;  %s165_s18 = scalar_lea.vmem %s10268_s3, %s5820_s21 }
   0xf   : > { %7157 = vmatprep.subr.bf16.mxu0 %v8087_v4  ;;  %190 = vst [vmem:[#allocation2 + $0x14] sm:$0xf] %v8585_v11  ;;  %187 = vst [vmem:[#allocation2] sm:$0xcc] %v8585_v11  ;;  %v8094_v12 = vld [vmem:[%s10266_s1 + $0x160] sm:$0xff]   ;;  %v8097_v16 = vld [vmem:[%s10266_s1 + $0x158] sm:$0xff]  }
  0x10   : > { %188 = vst [vmem:[#allocation2 + $0x8] sm:$0xc] %v8585_v11  ;;  %v8095_v13 = vld [vmem:[%s10266_s1 + $0xe0] sm:$0xff]   ;;  %v8098_v17 = vld [vmem:[%s10266_s1 + $0xd8] sm:$0xff]   ;;  %v8099_v19 = vld [vmem:[%s10266_s1 + $0x110] sm:$0xff]   ;;  %v173_v22 = vand.u32 1, %v8672_v18 }
  0x11   : > { %7716 = vmatpush3.bf16.msra.mxu1 %v8088_v5  ;;  %v8100_v20 = vld [vmem:[%s10266_s1 + $0x150] sm:$0xff]   ;;  %v8102_v23 = vld [vmem:[%s10266_s1 + $0x108] sm:$0xff]   ;;  %v193_v27 = vld [vmem:[%s8694_s30] sm:$0x3]  ;;  %vm209_vm3 = vsmask.f32 2306 }
  0x12   : > { %7158 = vmatpush3.bf16.msra.mxu0 %v8089_v6  ;;  %7717 = vmatprep.subr.bf16.mxu1 %v8583_v1  ;;  %v8101_v21 = vld [vmem:[%s10266_s1 + $0xd0] sm:$0xff]   ;;  %v8103_v24 = vld [vmem:[%s10266_s1 + $0x148] sm:$0xff]   ;;  %vm8703_vm1 = vcmp.ne.s32.totalorder %v173_v22, 1  ;;  %vm8708_vm2 = vcmp.ne.s32.totalorder %v173_v22, 0  ;;  %v8105_v29 = vld [vmem:[%s10266_s1 + $0x100] sm:$0xff]   ;;  %v194_v30 = vunpack.c.l.bf16 %v193_v27  ;;  %vm237_vm6 = vcmask 1041408  }
  0x13   : > { %7159 = vmatprep.subr.bf16.mxu0 %v8090_v7  ;;  %v8104_v25 = vld [vmem:[%s10266_s1 + $0xc8] sm:$0xff]   ;;  %214 = vst [vmem:[#allocation2 + $0x10] sm:$0x3] %v193_v27  ;;  %v8106_v31 = vld [vmem:[%s10266_s1 + $0x140] sm:$0xff]   ;;  %vm238_vm4 = vsmask.f32 1280  ;;  %vm8731_vm7 = vmand %vm208_vm5, %vm209_vm3 }
  0x14   : > { %v8107_v32 = vld [vmem:[%s10266_s1 + $0xc0] sm:$0xff]   ;;  %v195_v33 = vsel %vm8703_vm1, %v194_v30, 0.0  ;;  %v215_v34 = vsel %vm8708_vm2, %v194_v30, 0.0  ;;  %v8110_v37 = vld [vmem:[%s10266_s1 + $0x78] sm:$0xff]   ;;  %v211_v42 = vld [vmem:[#allocation2 + $0xc] sm:$0x7] }
  0x15   : > { %7718 = vmatpush3.bf16.msra.mxu1 %v8091_v8  ;;  %v7143_v35 = vpack.c.bf16 %v195_v33, %v195_v33  ;;  %v7144_v36 = vpack.c.bf16 %v215_v34, %v215_v34  ;;  %vm8736_vm8 = vmand %vm237_vm6, %vm238_vm4  ;;  %vm232_vm9 = vsmask.f32 7950  ;;  %v8111_v54 = vld [vmem:[%s10266_s1 + $0xb8] sm:$0xff]   ;;  %vm231_vm10 = vcmask 1043459   ;;  %v8113_v60 = vld [vmem:[%s10266_s1 + $0x70] sm:$0xff]  }
  0x16   : > { %7160 = vmatpush3.bf16.msra.mxu0 %v8092_v9  ;;  %7719 = vmatprep.subr.bf16.mxu1 %v8583_v1  ;;  %v240_v49 = vld [vmem:[#allocation2 + $0x14] sm:$0x3]  ;;  %v8112_v58 = vld [vmem:[%s10266_s1 + $0x38] sm:$0xff]   ;;  %vm8753_vm11 = vmand %vm231_vm10, %vm232_vm9 }
  0x17   : > { %7161 = vmatprep.subr.bf16.mxu0 %v8093_v10  ;;  %v201_v38 = vshrl.u32 %v7143_v35, 16  ;;  %v204_v39 = vshll.u32 %v7143_v35, 16  ;;  %v221_v40 = vshll.u32 %v7144_v36, 16  ;;  %v224_v41 = vshrl.u32 %v7144_v36, 16  ;;  %v8114_v62 = vld [vmem:[%s10266_s1 + $0xb0] sm:$0xff]   ;;  %v8116_v0 = vld [vmem:[%s10266_s1 + $0x68] sm:$0xff]  }
  0x18   : > { %v8115_v63 = vld [vmem:[%s10266_s1 + $0x30] sm:$0xff]   ;;  %v8117_v2 = vld [vmem:[%s10266_s1 + $0xa8] sm:$0xff]   ;;  %v8119_v5 = vld [vmem:[%s10266_s1 + $0x60] sm:$0xff]  }
  0x19   : > { %7720 = vmatpush3.bf16.msra.mxu1 %v8094_v12  ;;  %v203_v43 = vrot.slane %v201_v38, 7  ;;  %v223_v44 = vrot.slane %v221_v40, 5  ;;  %v226_v45 = vrot.slane %v224_v41, 4  ;;  %v234_v3 = vld [vmem:[#allocation2 + $0x8] sm:$0x8]  ;;  %v8120_v8 = vld [vmem:[%s10266_s1 + $0xa0] sm:$0xff]  }
  0x1a   : > { %7162 = vmatpush3.bf16.msra.mxu0 %v8095_v13  ;;  %7721 = vmatprep.subr.bf16.mxu1 %v8583_v1  ;;  %v8118_v4 = vld [vmem:[%s10266_s1 + $0x28] sm:$0xff]   ;;  %v8136_v6 = vld [vmem:[#allocation2 + $0x4] ss:$12 sps:$4 sm:$0x18]   ;;  %v8122_v11 = vld [vmem:[%s10266_s1 + $0x58] sm:$0xff]  }
  0x1b   : > { %7163 = vmatprep.subr.bf16.mxu0 %v8096_v15  ;;  %v206_v47 = vor.u32 %v204_v39, %v203_v43  ;;  %v227_v48 = vor.u32 %v226_v45, %v223_v44  ;;  %v235_v7 = vsel %vm8753_vm11, %v223_v44, %v234_v3  ;;  %v595_v9 = vrot.slane %v8136_v6, 3  ;;  %v8121_v10 = vld [vmem:[%s10266_s1 + $0x20] sm:$0xff]   ;;  %v8123_v12 = vld [vmem:[%s10266_s1 + $0x98] sm:$0xff]   ;;  %v8125_v14 = vld [vmem:[%s10266_s1 + $0x50] sm:$0xff]  }
  0x1c   : > { %236 = vst [vmem:[#allocation2 + $0x8] sm:$0x8] %v235_v7  ;;  %v8124_v13 = vld [vmem:[%s10266_s1 + $0x18] sm:$0xff]   ;;  %v8126_v15 = vld [vmem:[%s10266_s1 + $0x90] sm:$0xff]   ;;  %v8131_v22 = vld [vmem:[%s10266_s1 + $0x40] sm:$0xff]  }
  0x1d   : > { %7722 = vmatpush3.bf16.msra.mxu1 %v8097_v16  ;;  %v212_v51 = vsel %vm8731_vm7, %v206_v47, %v211_v42  ;;  %v228_v52 = vrot.slane %v227_v48, 4  ;;  %v8127_v16 = vld [vmem:[%s10266_s1 + $0x10] sm:$0xff]   ;;  %v8138_v27 = vld [vmem:[%s10266_s1 + $0x1f8] sm:$0xff]   ;;  %v8144_v40 = vld [vmem:[%s10266_s1 + $0x1e8] sm:$0xff]  }
  0x1e   : > { %7164 = vmatpush3.bf16.msra.mxu0 %v8098_v17  ;;  %7723 = vmatprep.subr.bf16.mxu1 %v8583_v1  ;;  %213 = vst [vmem:[#allocation2 + $0xc] sm:$0x7] %v212_v51  ;;  %v8128_v17 = vld [vmem:[%s10266_s1 + $0x48] sm:$0xff]   ;;  %v8141_v33 = vld [vmem:[%s10266_s1 + $0x1f0] sm:$0xff]   ;;  %v8147_v47 = vld [vmem:[%s10266_s1 + $0x1e0] sm:$0xff]  }
  0x1f   : > { %7165 = vmatprep.subr.bf16.mxu0 %v8099_v19  ;;  %v241_v53 = vsel %vm8736_vm8, %v228_v52, %v240_v49  ;;  %v8129_v19 = vld [vmem:[%s10266_s1 + $0x88] sm:$0xff]   ;;  %v8142_v34 = vld [vmem:[%s10266_s1 + $0x230] sm:$0xff]   ;;  %v8148_v48 = vld [vmem:[%s10266_s1 + $0x220] sm:$0xff]  }
  0x20   : > { %242 = vst [vmem:[#allocation2 + $0x14] sm:$0x3] %v241_v53  ;;  %v8143_v36 = vld [vmem:[%s10266_s1 + $0x1b0] sm:$0xff]   ;;  %v8145_v44 = vld [vmem:[%s10266_s1 + $0x228] sm:$0xff]   ;;  %v8149_v49 = vld [vmem:[%s10266_s1 + $0x1a0] sm:$0xff]  }
  0x21   : > { %7724 = vmatpush3.bf16.msra.mxu1 %v8100_v20  ;;  %v8130_v20 = vld [vmem:[%s10266_s1 + $0x8] sm:$0xff]   ;;  %v8150_v51 = vld [vmem:[%s10266_s1 + $0x1d8] sm:$0xff]   ;;  %v8170_v6 = vld [vmem:[%s10266_s1 + $0x3b0] sm:$0xff]  }
  0x22   : > { %7166 = vmatpush3.bf16.msra.mxu0 %v8101_v21  ;;  %7725 = vmatprep.subr.bf16.mxu1 %v8583_v1  ;;  %v8146_v45 = vld [vmem:[%s10266_s1 + $0x1a8] sm:$0xff]   ;;  %v8151_v52 = vld [vmem:[%s10266_s1 + $0x218] sm:$0xff]  }
  0x23   : > { %7167 = vmatprep.subr.bf16.mxu0 %v8102_v23  ;;  %v8152_v53 = vld [vmem:[%s10266_s1 + $0x198] sm:$0xff]   ;;  %v8171_v7 = vld [vmem:[%s10266_s1 + $0x368] sm:$0xff]  }
  0x24   : > { %v8167_v3 = vld [vmem:[%s10266_s1 + $0x3b8] sm:$0xff]  }
  0x25   : > { %7726 = vmatpush3.bf16.msra.mxu1 %v8103_v24  ;;  %v295_v55 = vld [vmem:[#allocation2 + $0xc] sm:$0x33]  ;;  %v8132_v24 = vld [vmem:[%s10266_s1 + $0x80] sm:$0xff]   ;;  %v8520_v61 = vld [vmem:[%s10266_s1 + $0xb78] sm:$0xff]  }
  0x26   : > { %7168 = vmatpush3.bf16.msra.mxu0 %v8104_v25  ;;  %7727 = vmatprep.subr.bf16.mxu1 %v8583_v1  ;;  %v5873_v56 = vcombine.high %v295_v55, %v295_v55  ;;  %v5872_v57 = vcombine.low %v295_v55, %v295_v55  ;;  %v8134_v21 = vld [vmem:[#allocation2] ss:$12 sps:$4 sm:$0x18]   ;;  %v824_v35 = vld [vmem:[#allocation2 + $0xc] sm:$0x66]  ;;  %v8525_v46 = vld [vmem:[%s10266_s1 + $0xbf8] sm:$0xff]  }
  0x27   : > { %7169 = vmatprep.subr.bf16.mxu0 %v8105_v29  ;;  %v8109_v59 = vld [vmem:[#allocation2 + $0x14] ss:$0 sps:$4 sm:$0x33]   ;;  %v8133_v25 = vld [vmem:[%s10266_s1] sm:$0xff]   ;;  %v594_v29 = vrot.slane %v8134_v21, 3  ;;  %v5974_v39 = vcombine.low %v824_v35, %v824_v35  ;;  %v8184_v21 = vld [vmem:[%s10266_s1 + $0x308] sm:$0xff]  }
  0x28   : > { %533 = vmatprep.mubr.bf16.mxu0 %v5873_v56  ;;  %v8137_v23 = vld [vmem:[#allocation2 + $0x8] ss:$12 sps:$4 sm:$0x18]  }
  0x29   : > { %7728 = vmatpush3.bf16.msra.mxu1 %v8106_v31  ;;  %v596_v30 = vrot.slane %v8137_v23, 3  ;;  %v8139_v31 = vld [vmem:[%s10266_s1 + $0x238] sm:$0xff]   ;;  %v8163_v38 = vld [vmem:[#allocation2 + $0x14] ss:$0 sps:$4 sm:$0x66]   ;;  %v883_v43 = vrot.slane %v5974_v39, 1 }
  0x2a   : > { %7170 = vmatpush3.bf16.msra.mxu0 %v8107_v32  ;;  %7733 = vmatprep.subr.bf16.mxu1 %v8583_v1  ;;  %v8140_v32 = vld [vmem:[%s10266_s1 + $0x1b8] sm:$0xff]   ;;  %v885_v42 = vrot.slane %v8163_v38, 1  ;;  %v8154_v55 = vld [vmem:[%s10266_s1 + $0x210] sm:$0xff]   ;;  %v8186_v23 = vld [vmem:[%s10266_s1 + $0x340] sm:$0xff]   ;;  %v9000_v38 = vsub.s32 1, %v8672_v18 }
  0x2b   : > { %7186 = vmatprep.subr.bf16.mxu0 %v8110_v37  ;;  %v5975_v37 = vcombine.high %v824_v35, %v824_v35  ;;  %v8155_v56 = vld [vmem:[%s10266_s1 + $0x190] sm:$0xff]  }
  0x2c   : > { %7730 = vmatmul.mubr.bf16.vlgmr.msra.gmra.mxu1 %v8109_v59  ;;  %v8158_v59 = vld [vmem:[%s10266_s1 + $0x188] sm:$0xff]  }
  0x2d   : > { %534 = vmatmul.mubr.bf16.vlgmr.msra.gmra.mxu0 %v5872_v57  ;;  %7734 = vmatpush3.bf16.msra.mxu1 %v8111_v54  ;;  %v884_v41 = vrot.slane %v5975_v37, 1  ;;  %v8153_v54 = vld [vmem:[%s10266_s1 + $0x1d0] sm:$0xff]   ;;  %v8156_v57 = vld [vmem:[%s10266_s1 + $0x1c8] sm:$0xff]   ;;  %v8997_v37 = vsub.s32 0, %v8672_v18 }
  0x2e   : > { %7187 = vmatpush3.bf16.msra.mxu0 %v8112_v58  ;;  %7735 = vmatprep.subr.bf16.mxu1 %v8583_v1  ;;  %v8157_v58 = vld [vmem:[%s10266_s1 + $0x208] sm:$0xff]  }
  0x2f   : > { %7188 = vmatprep.subr.bf16.mxu0 %v8113_v60  ;;  %7749 = vmatprep.mubr.msk.bf16.mxu1 %vm8584_vm0, %v8583_v1  ;;  %v8159_v60 = vld [vmem:[%s10266_s1 + $0x1c0] sm:$0xff]  }
  0x30   : > { %776 = vmatprep.mubr.bf16.mxu0 %v595_v9  ;;  %v8173_v9 = vld [vmem:[%s10266_s1 + $0x3a8] sm:$0xff]  }
  0x31   : > { %7736 = vmatpush3.bf16.msra.mxu1 %v8114_v62  ;;  %v8160_v62 = vld [vmem:[%s10266_s1 + $0x200] sm:$0xff]  }
  0x32   : > { %7189 = vmatpush3.bf16.msra.mxu0 %v8115_v63  ;;  %7737 = vmatprep.subr.bf16.mxu1 %v8583_v1  ;;  %v8161_v63 = vld [vmem:[%s10266_s1 + $0x180] sm:$0xff]  }
  0x33   : > { %7190 = vmatprep.subr.bf16.mxu0 %v8116_v0  ;;  %v8165_v0 = vld [vmem:[%s10266_s1 + $0x378] sm:$0xff]  }
  0x35   : > { %7738 = vmatpush3.bf16.msra.mxu1 %v8117_v2  ;;  %v8166_v2 = vld [vmem:[%s10266_s1 + $0x338] sm:$0xff]  }
  0x36   : > { %7191 = vmatpush3.bf16.msra.mxu0 %v8118_v4  ;;  %7739 = vmatprep.subr.bf16.mxu1 %v8583_v1  ;;  %v8168_v4 = vld [vmem:[%s10266_s1 + $0x370] sm:$0xff]  }
  0x37   : > { %7192 = vmatprep.subr.bf16.mxu0 %v8119_v5  ;;  %v8169_v5 = vld [vmem:[%s10266_s1 + $0x330] sm:$0xff]  }
  0x39   : > { %7740 = vmatpush3.bf16.msra.mxu1 %v8120_v8  ;;  %v8172_v8 = vld [vmem:[%s10266_s1 + $0x328] sm:$0xff]  }
  0x3a   : > { %7193 = vmatpush3.bf16.msra.mxu0 %v8121_v10  ;;  %7741 = vmatprep.subr.bf16.mxu1 %v8583_v1  ;;  %v8174_v10 = vld [vmem:[%s10266_s1 + $0x360] sm:$0xff]  }
  0x3b   : > { %7194 = vmatprep.subr.bf16.mxu0 %v8122_v11  ;;  %v8175_v11 = vld [vmem:[%s10266_s1 + $0x320] sm:$0xff]  }
  0x3d   : > { %7742 = vmatpush3.bf16.msra.mxu1 %v8123_v12  ;;  %v8176_v12 = vld [vmem:[%s10266_s1 + $0x3a0] sm:$0xff]  }
  0x3e   : > { %7195 = vmatpush3.bf16.msra.mxu0 %v8124_v13  ;;  %7743 = vmatprep.subr.bf16.mxu1 %v8583_v1  ;;  %v8177_v13 = vld [vmem:[%s10266_s1 + $0x358] sm:$0xff]  }
  0x3f   : > { %7196 = vmatprep.subr.bf16.mxu0 %v8125_v14  ;;  %v8178_v14 = vld [vmem:[%s10266_s1 + $0x318] sm:$0xff]  }
  0x41   : > { %7744 = vmatpush3.bf16.msra.mxu1 %v8126_v15  ;;  %v8179_v15 = vld [vmem:[%s10266_s1 + $0x398] sm:$0xff]  }
  0x42   : > { %7197 = vmatpush3.bf16.msra.mxu0 %v8127_v16  ;;  %7745 = vmatprep.subr.bf16.mxu1 %v8583_v1  ;;  %v8180_v16 = vld [vmem:[%s10266_s1 + $0x350] sm:$0xff]  }
  0x43   : > { %7198 = vmatprep.subr.bf16.mxu0 %v8128_v17  ;;  %v8181_v17 = vld [vmem:[%s10266_s1 + $0x310] sm:$0xff]  }
  0x45   : > { %7746 = vmatpush3.bf16.msra.mxu1 %v8129_v19  ;;  %v8182_v19 = vld [vmem:[%s10266_s1 + $0x390] sm:$0xff]  }
  0x46   : > { %7199 = vmatpush3.bf16.msra.mxu0 %v8130_v20  ;;  %7747 = vmatprep.subr.bf16.mxu1 %v8583_v1  ;;  %v8183_v20 = vld [vmem:[%s10266_s1 + $0x348] sm:$0xff]  }
  0x47   : > { %7200 = vmatprep.subr.bf16.mxu0 %v8131_v22  ;;  %v8185_v22 = vld [vmem:[%s10266_s1 + $0x388] sm:$0xff]  }
  0x49   : > { %7748 = vmatpush3.bf16.msra.mxu1 %v8132_v24  ;;  %v8187_v24 = vld [vmem:[%s10266_s1 + $0x300] sm:$0xff]  }
  0x4a   : > { %7201 = vmatpush3.bf16.msra.mxu0 %v8133_v25  ;;  %7753 = vmatprep.subr.bf16.mxu1 %v8583_v1  ;;  %v8188_v25 = vld [vmem:[%s10266_s1 + $0x380] sm:$0xff]  }
  0x4b   : > { %7217 = vmatprep.subr.bf16.mxu0 %v8138_v27  ;;  %v8190_v27 = vld [vmem:[%s10266_s1 + $0x2b8] sm:$0xff]  }
  0x4c   : > { %7750 = vmatmul.mubr.bf16.vlgmr.msra.gmra.mxu1 %v596_v30 }
  0x4d   : > { %777 = vmatmul.mubr.bf16.vlgmr.msra.gmra.mxu0 %v594_v29  ;;  %7754 = vmatpush3.bf16.msra.mxu1 %v8139_v31 }
  0x4e   : > { %7218 = vmatpush3.bf16.msra.mxu0 %v8140_v32  ;;  %7755 = vmatprep.subr.bf16.mxu1 %v8583_v1 }
  0x4f   : > { %7219 = vmatprep.subr.bf16.mxu0 %v8141_v33  ;;  %7769 = vmatprep.mubr.msk.bf16.mxu1 %vm8584_vm0, %v8583_v1 }
  0x50   : > { %1065 = vmatprep.mubr.bf16.mxu0 %v884_v41 }
  0x51   : > { %7756 = vmatpush3.bf16.msra.mxu1 %v8142_v34 }
  0x52   : > { %7220 = vmatpush3.bf16.msra.mxu0 %v8143_v36  ;;  %7757 = vmatprep.subr.bf16.mxu1 %v8583_v1 }
  0x53   : > { %7221 = vmatprep.subr.bf16.mxu0 %v8144_v40 }
  0x55   : > { %7758 = vmatpush3.bf16.msra.mxu1 %v8145_v44 }
  0x56   : > { %7222 = vmatpush3.bf16.msra.mxu0 %v8146_v45  ;;  %7759 = vmatprep.subr.bf16.mxu1 %v8583_v1 }
  0x57   : > { %7223 = vmatprep.subr.bf16.mxu0 %v8147_v47 }
  0x59   : > { %7760 = vmatpush3.bf16.msra.mxu1 %v8148_v48 }
  0x5a   : > { %7224 = vmatpush3.bf16.msra.mxu0 %v8149_v49  ;;  %7761 = vmatprep.subr.bf16.mxu1 %v8583_v1 }
  0x5b   : > { %7225 = vmatprep.subr.bf16.mxu0 %v8150_v51 }
  0x5d   : > { %7762 = vmatpush3.bf16.msra.mxu1 %v8151_v52 }
  0x5e   : > { %7226 = vmatpush3.bf16.msra.mxu0 %v8152_v53  ;;  %7763 = vmatprep.subr.bf16.mxu1 %v8583_v1 }
  0x5f   : > { %7227 = vmatprep.subr.bf16.mxu0 %v8153_v54  ;;  %v1114_v54 = vld [vmem:[%s10267_s2] sm:$0x3] }
  0x61   : > { %7764 = vmatpush3.bf16.msra.mxu1 %v8154_v55 }
  0x62   : > { %7228 = vmatpush3.bf16.msra.mxu0 %v8155_v56  ;;  %7765 = vmatprep.subr.bf16.mxu1 %v8583_v1 }
  0x63   : > { %7229 = vmatprep.subr.bf16.mxu0 %v8156_v57 }
  0x65   : > { %7766 = vmatpush3.bf16.msra.mxu1 %v8157_v58 }
  0x66   : > { %7230 = vmatpush3.bf16.msra.mxu0 %v8158_v59  ;;  %7767 = vmatprep.subr.bf16.mxu1 %v8583_v1 }
  0x67   : > { %7231 = vmatprep.subr.bf16.mxu0 %v8159_v60 }
  0x69   : > { %7768 = vmatpush3.bf16.msra.mxu1 %v8160_v62 }
  0x6a   : > { %7232 = vmatpush3.bf16.msra.mxu0 %v8161_v63  ;;  %7773 = vmatprep.subr.bf16.mxu1 %v8583_v1  ;;  %v1118_v63 = vrot.slane %v1114_v54, %v8997_v37 }
  0x6b   : > { %7248 = vmatprep.subr.bf16.mxu0 %v8165_v0 }
  0x6c   : > { %7770 = vmatmul.mubr.bf16.vlgmr.msra.gmra.mxu1 %v885_v42 }
  0x6d   : > { %1066 = vmatmul.mubr.bf16.vlgmr.msra.gmra.mxu0 %v883_v43  ;;  %7789 = vmatprep.mubr.msk.bf16.mxu1 %vm8584_vm0, %v8583_v1 }
  0x6e   : > { %7249 = vmatpush3.bf16.msra.mxu0 %v8166_v2  ;;  %7774 = vmatpush3.bf16.msra.mxu1 %v8167_v3 }
  0x6f   : > { %7775 = vmatprep.subr.bf16.mxu1 %v8583_v1  ;;  %7250 = vmatprep.subr.bf16.mxu0 %v8168_v4  ;;  %v1124_v4 = vrot.slane %v1114_v54, %v9000_v38  ;;  %v8208_v54 = vld [vmem:[%s10266_s1 + $0x258] sm:$0xff]  }
  0x72   : > { %7251 = vmatpush3.bf16.msra.mxu0 %v8169_v5  ;;  %7776 = vmatpush3.bf16.msra.mxu1 %v8170_v6 }
  0x73   : > { %7777 = vmatprep.subr.bf16.mxu1 %v8583_v1  ;;  %7252 = vmatprep.subr.bf16.mxu0 %v8171_v7 }
  0x76   : > { %7253 = vmatpush3.bf16.msra.mxu0 %v8172_v8  ;;  %7778 = vmatpush3.bf16.msra.mxu1 %v8173_v9 }
  0x77   : > { %7779 = vmatprep.subr.bf16.mxu1 %v8583_v1  ;;  %7254 = vmatprep.subr.bf16.mxu0 %v8174_v10 }
  0x7a   : > { %7255 = vmatpush3.bf16.msra.mxu0 %v8175_v11  ;;  %7780 = vmatpush3.bf16.msra.mxu1 %v8176_v12 }
  0x7b   : > { %7781 = vmatprep.subr.bf16.mxu1 %v8583_v1  ;;  %7256 = vmatprep.subr.bf16.mxu0 %v8177_v13  ;;  %v1161_v13 = vld [vmem:[#allocation2 + $0x8] sm:$0x8] }
  0x7e   : > { %7257 = vmatpush3.bf16.msra.mxu0 %v8178_v14  ;;  %7782 = vmatpush3.bf16.msra.mxu1 %v8179_v15 }
  0x7f   : > { %7783 = vmatprep.subr.bf16.mxu1 %v8583_v1  ;;  %7258 = vmatprep.subr.bf16.mxu0 %v8180_v16 }
  0x82   : > { %7259 = vmatpush3.bf16.msra.mxu0 %v8181_v17  ;;  %7784 = vmatpush3.bf16.msra.mxu1 %v8182_v19  ;;  %v1140_v17 = vld [vmem:[#allocation2 + $0xc] sm:$0x7] }
  0x83   : > { %7785 = vmatprep.subr.bf16.mxu1 %v8583_v1  ;;  %7260 = vmatprep.subr.bf16.mxu0 %v8183_v20 }
  0x86   : > { %7261 = vmatpush3.bf16.msra.mxu0 %v8184_v21  ;;  %7786 = vmatpush3.bf16.msra.mxu1 %v8185_v22 }
  0x87   : > { %7262 = vmatprep.subr.bf16.mxu0 %v8186_v23  ;;  %7787 = vmatprep.subr.bf16.mxu1 %v8583_v1  ;;  %v1164_v23 = vld [vmem:[#allocation2 + $0x14] sm:$0x3] }
  0x8a   : > { %7263 = vmatpush3.bf16.msra.mxu0 %v8187_v24  ;;  %7788 = vmatpush3.bf16.msra.mxu1 %v8188_v25 }
  0x8b   : > { %7793 = vmatprep.subr.bf16.mxu1 %v8583_v1  ;;  %7279 = vmatprep.subr.bf16.mxu0 %v8190_v27 }
  0xec   : > { %v575_v29 = vpop.f32.mrf.mxu1 }
  0xed   : > { %v7171_v30 = vpop.f32.mrf.mxu0 }
  0xee   : > { %v7731_v31 = vpop.f32.mrf.mxu1 }
  0xef   : > { %v7172_v32 = vpop.f32.mrf.mxu0 }
  0xf0   : > { %v578_v33 = vpop.f32.mrf.mxu1  ;;  %v7173_v48 = vadd.f32 %v7172_v32, %v7171_v30 }
  0xf1   : > { %v7174_v34 = vpop.f32.mrf.mxu0 }
  0xf2   : > { %v7732_v35 = vpop.f32.mrf.mxu1  ;;  %v576_v51 = vadd.f32 %v7173_v48, %v575_v29  ;;  %v8203_v48 = vld [vmem:[%s10266_s1 + $0x2e8] sm:$0xff]  }
  0xf3   : > { %v7175_v36 = vpop.f32.mrf.mxu0  ;;  %v8192_v35 = vld [vmem:[%s10266_s1 + $0x278] sm:$0xff]  }
 0x10c   : > { %v818_v39 = vpop.f32.mrf.mxu1 }
 0x10d   : > { %v7202_v40 = vpop.f32.mrf.mxu0 }
 0x10e   : > { %v7751_v41 = vpop.f32.mrf.mxu1 }
 0x10f   : > { %v7203_v42 = vpop.f32.mrf.mxu0  ;;  %v8198_v41 = vld [vmem:[%s10266_s1 + $0x2b0] sm:$0xff]  }
 0x110   : > { %v821_v43 = vpop.f32.mrf.mxu1  ;;  %v7204_v49 = vadd.f32 %v7203_v42, %v7202_v40 }
 0x111   : > { %v7205_v44 = vpop.f32.mrf.mxu0  ;;  %v8199_v43 = vld [vmem:[%s10266_s1 + $0x270] sm:$0xff]  }
 0x112   : > { %v7752_v45 = vpop.f32.mrf.mxu1  ;;  %v779_v55 = vadd.f32 %v7204_v49, %v576_v51  ;;  %v8200_v44 = vld [vmem:[%s10266_s1 + $0x2f0] sm:$0xff]   ;;  %v8204_v49 = vld [vmem:[%s10266_s1 + $0x2a0] sm:$0xff]  }
 0x113   : > { %v7206_v47 = vpop.f32.mrf.mxu0  ;;  %v8201_v45 = vld [vmem:[%s10266_s1 + $0x2a8] sm:$0xff]   ;;  %v8205_v51 = vld [vmem:[%s10266_s1 + $0x260] sm:$0xff]  }
 0x114   : > { %v819_v60 = vadd.f32 %v818_v39, %v779_v55  ;;  %v8197_v39 = vld [vmem:[%s10266_s1 + $0x2f8] sm:$0xff]   ;;  %v8202_v47 = vld [vmem:[%s10266_s1 + $0x268] sm:$0xff]  }
 0x115   : > { %v8209_v55 = vld [vmem:[%s10266_s1 + $0x2d8] sm:$0xff]  }
 0x12c   : > { %v1107_v52 = vpop.f32.mrf.mxu1 }
 0x12d   : > { %v7233_v53 = vpop.f32.mrf.mxu0 }
 0x12e   : > { %v7771_v18 = vpop.f32.mrf.mxu1 }
 0x12f   : > { %v7234_v56 = vpop.f32.mrf.mxu0  ;;  %v8210_v18 = vld [vmem:[%s10266_s1 + $0x290] sm:$0xff]  }
 0x130   : > { %v7235_v57 = vadd.f32 %v7234_v56, %v7233_v53  ;;  %v1110_v58 = vpop.f32.mrf.mxu1  ;;  %v8207_v53 = vld [vmem:[%s10266_s1 + $0x298] sm:$0xff]   ;;  %v8211_v56 = vld [vmem:[%s10266_s1 + $0x250] sm:$0xff]  }
 0x131   : > { %v7236_v59 = vpop.f32.mrf.mxu0  ;;  %v8213_v58 = vld [vmem:[%s10266_s1 + $0x288] sm:$0xff]  }
 0x132   : > { %v1108_v62 = vadd.f32 %v7235_v57, %v1107_v52  ;;  %v7772_v0 = vpop.f32.mrf.mxu1  ;;  %v8206_v52 = vld [vmem:[%s10266_s1 + $0x2e0] sm:$0xff]   ;;  %v8212_v57 = vld [vmem:[%s10266_s1 + $0x2d0] sm:$0xff]   ;;  %v8214_v59 = vld [vmem:[%s10266_s1 + $0x248] sm:$0xff]  }
 0x133   : > { %v7237_v2 = vpop.f32.mrf.mxu0 }
 0x134   : > { %v1113_v3 = vadd.f32 %v1108_v62, %v819_v60  ;;  %v8215_v60 = vld [vmem:[%s10266_s1 + $0x2c8] sm:$0xff]   ;;  %v8216_v62 = vld [vmem:[%s10266_s1 + $0x280] sm:$0xff]  }
 0x136   : > { %v1119_v5 = vadd.f32 %v1118_v63, %v1113_v3  ;;  %v8217_v63 = vld [vmem:[%s10266_s1 + $0x240] sm:$0xff]  }
 0x137   : > { %v8218_v3 = vld [vmem:[%s10266_s1 + $0x2c0] sm:$0xff]  }
 0x138   : > { %vm1120_vm12 = vcmp.ge.f32.partialorder %v1119_v5, 0.0  ;;  %v1125_v6 = vmul.f32 %v1124_v4, %v1119_v5  ;;  %v8219_v4 = vld [vmem:[%s10266_s1 + $0x438] sm:$0xff]  }
 0x13a   : > { %v1126_v7 = vsel %vm1120_vm12, %v1119_v5, %v1125_v6 }
 0x13b   : > { %v1127_v8 = vsel %vm8703_vm1, %v1126_v7, 0.0  ;;  %v1143_v9 = vpack.c.bf16 %v1126_v7, %v1126_v7  ;;  %v1145_v10 = vsel %vm8708_vm2, %v1126_v7, 0.0  ;;  %v8221_v7 = vld [vmem:[%s10266_s1 + $0x3f8] sm:$0xff]  }
 0x13c   : > { %v7145_v11 = vpack.c.bf16 %v1127_v8, %v1127_v8  ;;  %v7146_v12 = vpack.c.bf16 %v1145_v10, %v1145_v10 }
 0x13d   : > { %1144 = vst [vmem:[#allocation2 + $0x10] sm:$0x3] %v1143_v9  ;;  %v8223_v9 = vld [vmem:[%s10266_s1 + $0x478] sm:$0xff]  }
 0x13e   : > { %v1133_v14 = vshrl.u32 %v7145_v11, 16  ;;  %v1151_v15 = vshll.u32 %v7146_v12, 16  ;;  %v1154_v16 = vshrl.u32 %v7146_v12, 16  ;;  %v1136_v20 = vshll.u32 %v7145_v11, 16  ;;  %v8224_v11 = vld [vmem:[%s10266_s1 + $0x430] sm:$0xff]  }
 0x140   : > { %v1135_v19 = vrot.slane %v1133_v14, 7  ;;  %v1153_v21 = vrot.slane %v1151_v15, 5  ;;  %v1156_v22 = vrot.slane %v1154_v16, 4  ;;  %v8226_v14 = vld [vmem:[%s10266_s1 + $0x470] sm:$0xff]   ;;  %v8227_v15 = vld [vmem:[%s10266_s1 + $0x428] sm:$0xff]  }
 0x141   : > { %v8228_v16 = vld [vmem:[%s10266_s1 + $0x3e8] sm:$0xff]  }
 0x142   : > { %v1138_v24 = vor.u32 %v1136_v20, %v1135_v19  ;;  %v1157_v25 = vor.u32 %v1156_v22, %v1153_v21  ;;  %v1162_v27 = vsel %vm8753_vm11, %v1153_v21, %v1161_v13  ;;  %v8225_v13 = vld [vmem:[%s10266_s1 + $0x3f0] sm:$0xff]   ;;  %v8230_v19 = vld [vmem:[%s10266_s1 + $0x420] sm:$0xff]   ;;  %v8233_v22 = vld [vmem:[%s10266_s1 + $0x418] sm:$0xff]  }
 0x143   : > { %1163 = vst [vmem:[#allocation2 + $0x8] sm:$0x8] %v1162_v27  ;;  %v8231_v20 = vld [vmem:[%s10266_s1 + $0x3e0] sm:$0xff]   ;;  %v8237_v27 = vld [vmem:[%s10266_s1 + $0x3d0] sm:$0xff]  }
 0x144   : > { %v1141_v29 = vsel %vm8731_vm7, %v1138_v24, %v1140_v17  ;;  %v1158_v30 = vrot.slane %v1157_v25, 4  ;;  %v8196_v36 = vld [vmem:[#allocation2 + $0x4] ss:$12 sps:$4 sm:$0x18]   ;;  %v8229_v17 = vld [vmem:[%s10266_s1 + $0x468] sm:$0xff]   ;;  %v8235_v24 = vld [vmem:[%s10266_s1 + $0x458] sm:$0xff]  }
 0x145   : > { %1142 = vst [vmem:[#allocation2 + $0xc] sm:$0x7] %v1141_v29  ;;  %v1520_v42 = vrot.slane %v8196_v36, 3  ;;  %v8232_v21 = vld [vmem:[%s10266_s1 + $0x460] sm:$0xff]   ;;  %v8236_v25 = vld [vmem:[%s10266_s1 + $0x410] sm:$0xff]  }
 0x146   : > { %v1165_v31 = vsel %vm8736_vm8, %v1158_v30, %v1164_v23  ;;  %v8234_v23 = vld [vmem:[%s10266_s1 + $0x3d8] sm:$0xff]   ;;  %v8238_v29 = vld [vmem:[%s10266_s1 + $0x450] sm:$0xff]   ;;  %v8239_v30 = vld [vmem:[%s10266_s1 + $0x408] sm:$0xff]  }
 0x147   : > { %1166 = vst [vmem:[#allocation2 + $0x14] sm:$0x3] %v1165_v31  ;;  %v8240_v31 = vld [vmem:[%s10266_s1 + $0x3c8] sm:$0xff]  }
 0x14c   : > { %v1220_v32 = vld [vmem:[#allocation2 + $0xc] sm:$0x33] }
 0x14d   : > { %v6100_v33 = vcombine.high %v1220_v32, %v1220_v32  ;;  %v6099_v34 = vcombine.low %v1220_v32, %v1220_v32  ;;  %v9091_v0 = vld [vmem:[#allocation2 + $0xc] sm:$0x66]  ;;  %v8194_v2 = vld [vmem:[#allocation2] ss:$12 sps:$4 sm:$0x18]  }
 0x14e   : > { %v8193_v40 = vld [vmem:[#allocation2 + $0x14] ss:$0 sps:$4 sm:$0x33]   ;;  %v6202_v6 = vcombine.high %v9091_v0, %v9091_v0  ;;  %v1519_v8 = vrot.slane %v8194_v2, 3  ;;  %v8241_v32 = vld [vmem:[%s10266_s1 + $0x448] sm:$0xff]   ;;  %v6201_v36 = vcombine.low %v9091_v0, %v9091_v0  ;;  %v8268_v2 = vld [vmem:[%s10266_s1 + $0x580] sm:$0xff]  }
 0x14f   : > { %1458 = vmatprep.mubr.bf16.mxu0 %v6100_v33  ;;  %7790 = vmatmul.mubr.bf16.vlgmr.msra.gmra.mxu1 %v8193_v40  ;;  %v8220_v5 = vld [vmem:[#allocation2 + $0x8] ss:$12 sps:$4 sm:$0x18]   ;;  %v8242_v33 = vld [vmem:[%s10266_s1 + $0x400] sm:$0xff]  }
 0x150   : > { %1459 = vmatmul.mubr.bf16.vlgmr.msra.gmra.mxu0 %v6099_v34  ;;  %7794 = vmatpush3.bf16.msra.mxu1 %v8197_v39  ;;  %v1521_v10 = vrot.slane %v8220_v5, 3  ;;  %v1809_v12 = vrot.slane %v6202_v6, 1  ;;  %v8243_v34 = vld [vmem:[%s10266_s1 + $0x3c0] sm:$0xff]   ;;  %v8246_v39 = vld [vmem:[#allocation2 + $0x14] ss:$0 sps:$4 sm:$0x66]  }
 0x151   : > { %7280 = vmatpush3.bf16.msra.mxu0 %v8192_v35  ;;  %1701 = vmatprep.mubr.bf16.mxu0 %v1520_v42  ;;  %v8244_v35 = vld [vmem:[%s10266_s1 + $0x440] sm:$0xff]   ;;  %v1808_v40 = vrot.slane %v6201_v36, 1  ;;  %v8247_v42 = vld [vmem:[%s10266_s1 + $0x5b8] sm:$0xff]   ;;  %v8267_v0 = vld [vmem:[%s10266_s1 + $0x5c8] sm:$0xff]  }
 0x152   : > { %7281 = vmatprep.subr.bf16.mxu0 %v8198_v41  ;;  %7795 = vmatprep.subr.bf16.mxu1 %v8583_v1  ;;  %v1810_v41 = vrot.slane %v8246_v39, 1  ;;  %v8272_v5 = vld [vmem:[%s10266_s1 + $0x4f8] sm:$0xff]  }
 0x153   : > { %7809 = vmatprep.mubr.msk.bf16.mxu1 %vm8584_vm0, %v8583_v1 }
 0x154   : > { %7796 = vmatpush3.bf16.msra.mxu1 %v8200_v44  ;;  %v8249_v44 = vld [vmem:[%s10266_s1 + $0x5f8] sm:$0xff]  }
 0x155   : > { %7282 = vmatpush3.bf16.msra.mxu0 %v8199_v43  ;;  %7797 = vmatprep.subr.bf16.mxu1 %v8583_v1  ;;  %v8248_v43 = vld [vmem:[%s10266_s1 + $0x578] sm:$0xff]  }
 0x156   : > { %7283 = vmatprep.subr.bf16.mxu0 %v8201_v45  ;;  %v8250_v45 = vld [vmem:[%s10266_s1 + $0x5b0] sm:$0xff]  }
 0x158   : > { %7798 = vmatpush3.bf16.msra.mxu1 %v8203_v48  ;;  %v8252_v48 = vld [vmem:[%s10266_s1 + $0x5f0] sm:$0xff]  }
 0x159   : > { %7284 = vmatpush3.bf16.msra.mxu0 %v8202_v47  ;;  %7799 = vmatprep.subr.bf16.mxu1 %v8583_v1  ;;  %v8251_v47 = vld [vmem:[%s10266_s1 + $0x570] sm:$0xff]  }
 0x15a   : > { %7285 = vmatprep.subr.bf16.mxu0 %v8204_v49  ;;  %v8253_v49 = vld [vmem:[%s10266_s1 + $0x5a8] sm:$0xff]  }
 0x15c   : > { %7800 = vmatpush3.bf16.msra.mxu1 %v8206_v52  ;;  %v8255_v52 = vld [vmem:[%s10266_s1 + $0x5e8] sm:$0xff]  }
 0x15d   : > { %7286 = vmatpush3.bf16.msra.mxu0 %v8205_v51  ;;  %7801 = vmatprep.subr.bf16.mxu1 %v8583_v1  ;;  %v8254_v51 = vld [vmem:[%s10266_s1 + $0x568] sm:$0xff]  }
 0x15e   : > { %7287 = vmatprep.subr.bf16.mxu0 %v8207_v53  ;;  %v8256_v53 = vld [vmem:[%s10266_s1 + $0x5a0] sm:$0xff]  }
 0x160   : > { %7802 = vmatpush3.bf16.msra.mxu1 %v8209_v55  ;;  %v8258_v55 = vld [vmem:[%s10266_s1 + $0x5e0] sm:$0xff]  }
 0x161   : > { %7288 = vmatpush3.bf16.msra.mxu0 %v8208_v54  ;;  %7803 = vmatprep.subr.bf16.mxu1 %v8583_v1  ;;  %v8257_v54 = vld [vmem:[%s10266_s1 + $0x560] sm:$0xff]  }
 0x162   : > { %7289 = vmatprep.subr.bf16.mxu0 %v8210_v18  ;;  %v8259_v18 = vld [vmem:[%s10266_s1 + $0x598] sm:$0xff]  }
 0x164   : > { %7804 = vmatpush3.bf16.msra.mxu1 %v8212_v57  ;;  %v8261_v57 = vld [vmem:[%s10266_s1 + $0x5d8] sm:$0xff]  }
 0x165   : > { %7290 = vmatpush3.bf16.msra.mxu0 %v8211_v56  ;;  %7805 = vmatprep.subr.bf16.mxu1 %v8583_v1  ;;  %v8260_v56 = vld [vmem:[%s10266_s1 + $0x558] sm:$0xff]  }
 0x166   : > { %7291 = vmatprep.subr.bf16.mxu0 %v8213_v58  ;;  %v8262_v58 = vld [vmem:[%s10266_s1 + $0x590] sm:$0xff]  }
 0x168   : > { %7806 = vmatpush3.bf16.msra.mxu1 %v8215_v60  ;;  %v8264_v60 = vld [vmem:[%s10266_s1 + $0x5d0] sm:$0xff]  }
 0x169   : > { %7292 = vmatpush3.bf16.msra.mxu0 %v8214_v59  ;;  %7807 = vmatprep.subr.bf16.mxu1 %v8583_v1  ;;  %v8263_v59 = vld [vmem:[%s10266_s1 + $0x550] sm:$0xff]  }
 0x16a   : > { %7293 = vmatprep.subr.bf16.mxu0 %v8216_v62  ;;  %v8265_v62 = vld [vmem:[%s10266_s1 + $0x588] sm:$0xff]  }
 0x16c   : > { %7808 = vmatpush3.bf16.msra.mxu1 %v8218_v3  ;;  %v8269_v3 = vld [vmem:[%s10266_s1 + $0x540] sm:$0xff]  }
 0x16d   : > { %7294 = vmatpush3.bf16.msra.mxu0 %v8217_v63  ;;  %7813 = vmatprep.subr.bf16.mxu1 %v8583_v1  ;;  %v8266_v63 = vld [vmem:[%s10266_s1 + $0x548] sm:$0xff]  }
 0x16e   : > { %7310 = vmatprep.subr.bf16.mxu0 %v8219_v4  ;;  %v8270_v4 = vld [vmem:[%s10266_s1 + $0x5c0] sm:$0xff]  }
 0x16f   : > { %7810 = vmatmul.mubr.bf16.vlgmr.msra.gmra.mxu1 %v1521_v10 }
 0x170   : > { %1702 = vmatmul.mubr.bf16.vlgmr.msra.gmra.mxu0 %v1519_v8  ;;  %7814 = vmatpush3.bf16.msra.mxu1 %v8223_v9 }
 0x171   : > { %7311 = vmatpush3.bf16.msra.mxu0 %v8221_v7  ;;  %1990 = vmatprep.mubr.bf16.mxu0 %v1809_v12 }
 0x172   : > { %7312 = vmatprep.subr.bf16.mxu0 %v8224_v11  ;;  %7815 = vmatprep.subr.bf16.mxu1 %v8583_v1 }
 0x173   : > { %7829 = vmatprep.mubr.msk.bf16.mxu1 %vm8584_vm0, %v8583_v1 }
 0x174   : > { %7816 = vmatpush3.bf16.msra.mxu1 %v8226_v14 }
 0x175   : > { %7313 = vmatpush3.bf16.msra.mxu0 %v8225_v13  ;;  %7817 = vmatprep.subr.bf16.mxu1 %v8583_v1 }
 0x176   : > { %7314 = vmatprep.subr.bf16.mxu0 %v8227_v15 }
 0x178   : > { %7818 = vmatpush3.bf16.msra.mxu1 %v8229_v17 }
 0x179   : > { %7315 = vmatpush3.bf16.msra.mxu0 %v8228_v16  ;;  %7819 = vmatprep.subr.bf16.mxu1 %v8583_v1 }
 0x17a   : > { %7316 = vmatprep.subr.bf16.mxu0 %v8230_v19 }
 0x17c   : > { %7820 = vmatpush3.bf16.msra.mxu1 %v8232_v21 }
 0x17d   : > { %7317 = vmatpush3.bf16.msra.mxu0 %v8231_v20  ;;  %7821 = vmatprep.subr.bf16.mxu1 %v8583_v1 }
 0x17e   : > { %7318 = vmatprep.subr.bf16.mxu0 %v8233_v22 }
 0x180   : > { %7822 = vmatpush3.bf16.msra.mxu1 %v8235_v24 }
 0x181   : > { %7319 = vmatpush3.bf16.msra.mxu0 %v8234_v23  ;;  %7823 = vmatprep.subr.bf16.mxu1 %v8583_v1 }
 0x182   : > { %7320 = vmatprep.subr.bf16.mxu0 %v8236_v25 }
 0x184   : > { %7824 = vmatpush3.bf16.msra.mxu1 %v8238_v29 }
 0x185   : > { %7321 = vmatpush3.bf16.msra.mxu0 %v8237_v27  ;;  %7825 = vmatprep.subr.bf16.mxu1 %v8583_v1 }
 0x186   : > { %7322 = vmatprep.subr.bf16.mxu0 %v8239_v30 }
 0x188   : > { %7826 = vmatpush3.bf16.msra.mxu1 %v8241_v32  ;;  %v6228_v32 = vld [vmem:[%s10267_s2 + $0x2] sm:$0x3] }
 0x189   : > { %7323 = vmatpush3.bf16.msra.mxu0 %v8240_v31  ;;  %7827 = vmatprep.subr.bf16.mxu1 %v8583_v1 }
 0x18a   : > { %7324 = vmatprep.subr.bf16.mxu0 %v8242_v33 }
 0x18c   : > { %7828 = vmatpush3.bf16.msra.mxu1 %v8244_v35 }
 0x18d   : > { %7325 = vmatpush3.bf16.msra.mxu0 %v8243_v34  ;;  %7833 = vmatprep.subr.bf16.mxu1 %v8583_v1 }
 0x18e   : > { %7341 = vmatprep.subr.bf16.mxu0 %v8247_v42 }
 0x18f   : > { %7830 = vmatmul.mubr.bf16.vlgmr.msra.gmra.mxu1 %v1810_v41 }
 0x190   : > { %1991 = vmatmul.mubr.bf16.vlgmr.msra.gmra.mxu0 %v1808_v40  ;;  %7849 = vmatprep.mubr.msk.bf16.mxu1 %vm8584_vm0, %v8583_v1  ;;  %v2044_v40 = vrot.slane %v6228_v32, %v8997_v37 }
 0x191   : > { %7342 = vmatpush3.bf16.msra.mxu0 %v8248_v43  ;;  %7834 = vmatpush3.bf16.msra.mxu1 %v8249_v44  ;;  %v2050_v44 = vrot.slane %v6228_v32, %v9000_v38  ;;  %v8292_v32 = vld [vmem:[%s10266_s1 + $0x4d0] sm:$0xff]  }
 0x192   : > { %7835 = vmatprep.subr.bf16.mxu1 %v8583_v1  ;;  %7343 = vmatprep.subr.bf16.mxu0 %v8250_v45 }
 0x195   : > { %7344 = vmatpush3.bf16.msra.mxu0 %v8251_v47  ;;  %7836 = vmatpush3.bf16.msra.mxu1 %v8252_v48 }
 0x196   : > { %7837 = vmatprep.subr.bf16.mxu1 %v8583_v1  ;;  %7345 = vmatprep.subr.bf16.mxu0 %v8253_v49 }
 0x199   : > { %7346 = vmatpush3.bf16.msra.mxu0 %v8254_v51  ;;  %7838 = vmatpush3.bf16.msra.mxu1 %v8255_v52 }
 0x19a   : > { %7839 = vmatprep.subr.bf16.mxu1 %v8583_v1  ;;  %7347 = vmatprep.subr.bf16.mxu0 %v8256_v53 }
 0x19d   : > { %7348 = vmatpush3.bf16.msra.mxu0 %v8257_v54  ;;  %7840 = vmatpush3.bf16.msra.mxu1 %v8258_v55 }
 0x19e   : > { %7841 = vmatprep.subr.bf16.mxu1 %v8583_v1  ;;  %7349 = vmatprep.subr.bf16.mxu0 %v8259_v18 }
 0x1a1   : > { %7350 = vmatpush3.bf16.msra.mxu0 %v8260_v56  ;;  %7842 = vmatpush3.bf16.msra.mxu1 %v8261_v57 }
 0x1a2   : > { %7843 = vmatprep.subr.bf16.mxu1 %v8583_v1  ;;  %7351 = vmatprep.subr.bf16.mxu0 %v8262_v58 }
 0x1a5   : > { %7352 = vmatpush3.bf16.msra.mxu0 %v8263_v59  ;;  %7844 = vmatpush3.bf16.msra.mxu1 %v8264_v60 }
 0x1a6   : > { %7353 = vmatprep.subr.bf16.mxu0 %v8265_v62  ;;  %7845 = vmatprep.subr.bf16.mxu1 %v8583_v1 }
 0x1a9   : > { %7354 = vmatpush3.bf16.msra.mxu0 %v8266_v63  ;;  %7846 = vmatpush3.bf16.msra.mxu1 %v8267_v0  ;;  %v2087_v63 = vld [vmem:[#allocation2 + $0x8] sm:$0x8] }
 0x1aa   : > { %7355 = vmatprep.subr.bf16.mxu0 %v8268_v2  ;;  %7847 = vmatprep.subr.bf16.mxu1 %v8583_v1 }
 0x1ad   : > { %7356 = vmatpush3.bf16.msra.mxu0 %v8269_v3  ;;  %7848 = vmatpush3.bf16.msra.mxu1 %v8270_v4  ;;  %v2066_v4 = vld [vmem:[#allocation2 + $0xc] sm:$0x7] }
 0x1ae   : > { %7372 = vmatprep.subr.bf16.mxu0 %v8272_v5  ;;  %7853 = vmatprep.subr.bf16.mxu1 %v8583_v1 }
 0x20f   : > { %v1500_v7 = vpop.f32.mrf.mxu1 }
 0x210   : > { %v7264_v6 = vpop.f32.mrf.mxu0 }
 0x211   : > { %v7791_v9 = vpop.f32.mrf.mxu1 }
 0x212   : > { %v7265_v8 = vpop.f32.mrf.mxu0 }
 0x213   : > { %v1503_v11 = vpop.f32.mrf.mxu1  ;;  %v7266_v23 = vadd.f32 %v7265_v8, %v7264_v6 }
 0x214   : > { %v7267_v10 = vpop.f32.mrf.mxu0 }
 0x215   : > { %v7792_v13 = vpop.f32.mrf.mxu1  ;;  %v1501_v25 = vadd.f32 %v7266_v23, %v1500_v7  ;;  %v2090_v7 = vld [vmem:[#allocation2 + $0x14] sm:$0x3]  ;;  %v8285_v23 = vld [vmem:[%s10266_s1 + $0x528] sm:$0xff]  }
 0x216   : > { %v7268_v12 = vpop.f32.mrf.mxu0 }
 0x217   : > { %v8274_v12 = vld [vmem:[%s10266_s1 + $0x4b8] sm:$0xff]  }
 0x22f   : > { %v1743_v15 = vpop.f32.mrf.mxu1 }
 0x230   : > { %v7295_v14 = vpop.f32.mrf.mxu0 }
 0x231   : > { %v7811_v17 = vpop.f32.mrf.mxu1 }
 0x232   : > { %v7296_v16 = vpop.f32.mrf.mxu0 }
 0x233   : > { %v1746_v20 = vpop.f32.mrf.mxu1  ;;  %v7297_v24 = vadd.f32 %v7296_v16, %v7295_v14  ;;  %v8279_v14 = vld [vmem:[%s10266_s1 + $0x538] sm:$0xff]   ;;  %v8280_v16 = vld [vmem:[%s10266_s1 + $0x4f0] sm:$0xff]  }
 0x234   : > { %v7298_v19 = vpop.f32.mrf.mxu0  ;;  %v8282_v20 = vld [vmem:[%s10266_s1 + $0x530] sm:$0xff]  }
 0x235   : > { %v7812_v22 = vpop.f32.mrf.mxu1  ;;  %v1704_v29 = vadd.f32 %v7297_v24, %v1501_v25  ;;  %v8281_v19 = vld [vmem:[%s10266_s1 + $0x4b0] sm:$0xff]   ;;  %v8286_v24 = vld [vmem:[%s10266_s1 + $0x4e0] sm:$0xff]  }
 0x236   : > { %v7299_v21 = vpop.f32.mrf.mxu0  ;;  %v8284_v22 = vld [vmem:[%s10266_s1 + $0x4a8] sm:$0xff]   ;;  %v8287_v25 = vld [vmem:[%s10266_s1 + $0x4a0] sm:$0xff]  }
 0x237   : > { %v1744_v36 = vadd.f32 %v1743_v15, %v1704_v29  ;;  %v8283_v21 = vld [vmem:[%s10266_s1 + $0x4e8] sm:$0xff]   ;;  %v8289_v29 = vld [vmem:[%s10266_s1 + $0x4d8] sm:$0xff]  }
 0x24f   : > { %v2032_v30 = vpop.f32.mrf.mxu1 }
 0x250   : > { %v7326_v27 = vpop.f32.mrf.mxu0 }
 0x251   : > { %v7831_v34 = vpop.f32.mrf.mxu1 }
 0x252   : > { %v7327_v31 = vpop.f32.mrf.mxu0  ;;  %v8294_v34 = vld [vmem:[%s10266_s1 + $0x510] sm:$0xff]  }
 0x253   : > { %v7328_v33 = vadd.f32 %v7327_v31, %v7326_v27  ;;  %v2035_v41 = vpop.f32.mrf.mxu1  ;;  %v8288_v27 = vld [vmem:[%s10266_s1 + $0x520] sm:$0xff]   ;;  %v8291_v31 = vld [vmem:[%s10266_s1 + $0x518] sm:$0xff]  }
 0x254   : > { %v7329_v35 = vpop.f32.mrf.mxu0  ;;  %v8299_v41 = vld [vmem:[%s10266_s1 + $0x480] sm:$0xff]  }
 0x255   : > { %v2033_v39 = vadd.f32 %v7328_v33, %v2032_v30  ;;  %v7832_v45 = vpop.f32.mrf.mxu1  ;;  %v8290_v30 = vld [vmem:[%s10266_s1 + $0x498] sm:$0xff]   ;;  %v8293_v33 = vld [vmem:[%s10266_s1 + $0x490] sm:$0xff]   ;;  %v8295_v35 = vld [vmem:[%s10266_s1 + $0x4c8] sm:$0xff]  }
 0x256   : > { %v7330_v42 = vpop.f32.mrf.mxu0  ;;  %v8301_v45 = vld [vmem:[%s10266_s1 + $0x678] sm:$0xff]  }
 0x257   : > { %v2038_v43 = vadd.f32 %v2033_v39, %v1744_v36  ;;  %v8296_v36 = vld [vmem:[%s10266_s1 + $0x488] sm:$0xff]  }
 0x258   : > { %v8297_v39 = vld [vmem:[%s10266_s1 + $0x508] sm:$0xff]  }
 0x259   : > { %v2045_v47 = vadd.f32 %v2044_v40, %v2038_v43  ;;  %v8298_v40 = vld [vmem:[%s10266_s1 + $0x4c0] sm:$0xff]  }
 0x25b   : > { %vm2046_vm13 = vcmp.ge.f32.partialorder %v2045_v47, 0.0  ;;  %v2051_v48 = vmul.f32 %v2050_v44, %v2045_v47  ;;  %v8300_v44 = vld [vmem:[%s10266_s1 + $0x500] sm:$0xff]  }
 0x25d   : > { %v2052_v49 = vsel %vm2046_vm13, %v2045_v47, %v2051_v48 }
 0x25e   : > { %v2053_v51 = vsel %vm8703_vm1, %v2052_v49, 0.0  ;;  %v2069_v52 = vpack.c.bf16 %v2052_v49, %v2052_v49  ;;  %v2071_v53 = vsel %vm8708_vm2, %v2052_v49, 0.0  ;;  %v8303_v49 = vld [vmem:[%s10266_s1 + $0x638] sm:$0xff]  }
 0x25f   : > { %v7147_v54 = vpack.c.bf16 %v2053_v51, %v2053_v51  ;;  %v7148_v55 = vpack.c.bf16 %v2071_v53, %v2071_v53 }
 0x260   : > { %2070 = vst [vmem:[#allocation2 + $0x10] sm:$0x3] %v2069_v52  ;;  %v8305_v52 = vld [vmem:[%s10266_s1 + $0x6b8] sm:$0xff]  }
 0x261   : > { %v2059_v18 = vshrl.u32 %v7147_v54, 16  ;;  %v2077_v56 = vshll.u32 %v7148_v55, 16  ;;  %v2080_v57 = vshrl.u32 %v7148_v55, 16  ;;  %v2062_v59 = vshll.u32 %v7147_v54, 16  ;;  %v8306_v54 = vld [vmem:[%s10266_s1 + $0x670] sm:$0xff]  }
 0x263   : > { %v2061_v58 = vrot.slane %v2059_v18, 7  ;;  %v2079_v60 = vrot.slane %v2077_v56, 5  ;;  %v2082_v62 = vrot.slane %v2080_v57, 4  ;;  %v8307_v18 = vld [vmem:[%s10266_s1 + $0x630] sm:$0xff]   ;;  %v8309_v57 = vld [vmem:[%s10266_s1 + $0x668] sm:$0xff]  }
 0x264   : > { %v8308_v56 = vld [vmem:[%s10266_s1 + $0x6b0] sm:$0xff]  }
 0x265   : > { %v2064_v0 = vor.u32 %v2062_v59, %v2061_v58  ;;  %v2083_v2 = vor.u32 %v2082_v62, %v2079_v60  ;;  %v2088_v3 = vsel %vm8753_vm11, %v2079_v60, %v2087_v63  ;;  %v8310_v58 = vld [vmem:[%s10266_s1 + $0x628] sm:$0xff]   ;;  %v8312_v60 = vld [vmem:[%s10266_s1 + $0x660] sm:$0xff]  }
 0x266   : > { %2089 = vst [vmem:[#allocation2 + $0x8] sm:$0x8] %v2088_v3  ;;  %v8311_v59 = vld [vmem:[%s10266_s1 + $0x6a8] sm:$0xff]   ;;  %v8313_v62 = vld [vmem:[%s10266_s1 + $0x620] sm:$0xff]   ;;  %v8317_v3 = vld [vmem:[%s10266_s1 + $0x698] sm:$0xff]  }
 0x267   : > { %v2067_v5 = vsel %vm8731_vm7, %v2064_v0, %v2066_v4  ;;  %v2084_v6 = vrot.slane %v2083_v2, 4  ;;  %v8278_v13 = vld [vmem:[#allocation2 + $0x4] ss:$12 sps:$4 sm:$0x18]   ;;  %v8315_v0 = vld [vmem:[%s10266_s1 + $0x658] sm:$0xff]  }
 0x268   : > { %2068 = vst [vmem:[#allocation2 + $0xc] sm:$0x7] %v2067_v5  ;;  %v2446_v17 = vrot.slane %v8278_v13, 3  ;;  %v8314_v63 = vld [vmem:[%s10266_s1 + $0x6a0] sm:$0xff]   ;;  %v8316_v2 = vld [vmem:[%s10266_s1 + $0x618] sm:$0xff]   ;;  %v8318_v4 = vld [vmem:[%s10266_s1 + $0x650] sm:$0xff]  }
 0x269   : > { %v2091_v8 = vsel %vm8736_vm8, %v2084_v6, %v2090_v7  ;;  %v8319_v5 = vld [vmem:[%s10266_s1 + $0x610] sm:$0xff]   ;;  %v8321_v7 = vld [vmem:[%s10266_s1 + $0x648] sm:$0xff]  }
 0x26a   : > { %2092 = vst [vmem:[#allocation2 + $0x14] sm:$0x3] %v2091_v8  ;;  %v8320_v6 = vld [vmem:[%s10266_s1 + $0x690] sm:$0xff]   ;;  %v8322_v8 = vld [vmem:[%s10266_s1 + $0x608] sm:$0xff]  }
 0x26f   : > { %v2146_v9 = vld [vmem:[#allocation2 + $0xc] sm:$0x33] }
 0x270   : > { %v6328_v10 = vcombine.high %v2146_v9, %v2146_v9  ;;  %v6327_v11 = vcombine.low %v2146_v9, %v2146_v9  ;;  %v9358_v42 = vld [vmem:[#allocation2 + $0xc] sm:$0x66]  ;;  %v8276_v43 = vld [vmem:[#allocation2] ss:$12 sps:$4 sm:$0x18]  }
 0x271   : > { %v8275_v15 = vld [vmem:[#allocation2 + $0x14] ss:$0 sps:$4 sm:$0x33]   ;;  %v6430_v48 = vcombine.high %v9358_v42, %v9358_v42  ;;  %v2445_v51 = vrot.slane %v8276_v43, 3  ;;  %v8323_v9 = vld [vmem:[%s10266_s1 + $0x688] sm:$0xff]   ;;  %v6429_v13 = vcombine.low %v9358_v42, %v9358_v42  ;;  %v8350_v43 = vld [vmem:[%s10266_s1 + $0x7c0] sm:$0xff]  }
 0x272   : > { %2384 = vmatprep.mubr.bf16.mxu0 %v6328_v10  ;;  %7850 = vmatmul.mubr.bf16.vlgmr.msra.gmra.mxu1 %v8275_v15  ;;  %v8302_v47 = vld [vmem:[#allocation2 + $0x8] ss:$12 sps:$4 sm:$0x18]   ;;  %v8324_v10 = vld [vmem:[%s10266_s1 + $0x640] sm:$0xff]  }
 0x273   : > { %2385 = vmatmul.mubr.bf16.vlgmr.msra.gmra.mxu0 %v6327_v11  ;;  %7854 = vmatpush3.bf16.msra.mxu1 %v8279_v14  ;;  %v2447_v53 = vrot.slane %v8302_v47, 3  ;;  %v2735_v55 = vrot.slane %v6430_v48, 1  ;;  %v8325_v11 = vld [vmem:[%s10266_s1 + $0x600] sm:$0xff]   ;;  %v8328_v14 = vld [vmem:[#allocation2 + $0x14] ss:$0 sps:$4 sm:$0x66]  }
 0x274   : > { %7373 = vmatpush3.bf16.msra.mxu0 %v8274_v12  ;;  %2627 = vmatprep.mubr.bf16.mxu0 %v2446_v17  ;;  %v8326_v12 = vld [vmem:[%s10266_s1 + $0x680] sm:$0xff]   ;;  %v2734_v15 = vrot.slane %v6429_v13, 1  ;;  %v8329_v17 = vld [vmem:[%s10266_s1 + $0x7f8] sm:$0xff]   ;;  %v8349_v42 = vld [vmem:[%s10266_s1 + $0x808] sm:$0xff]  }
 0x275   : > { %7374 = vmatprep.subr.bf16.mxu0 %v8280_v16  ;;  %7855 = vmatprep.subr.bf16.mxu1 %v8583_v1  ;;  %v2736_v16 = vrot.slane %v8328_v14, 1  ;;  %v8354_v47 = vld [vmem:[%s10266_s1 + $0x738] sm:$0xff]  }
 0x276   : > { %7869 = vmatprep.mubr.msk.bf16.mxu1 %vm8584_vm0, %v8583_v1 }
 0x277   : > { %7856 = vmatpush3.bf16.msra.mxu1 %v8282_v20  ;;  %v8331_v20 = vld [vmem:[%s10266_s1 + $0x838] sm:$0xff]  }
 0x278   : > { %7375 = vmatpush3.bf16.msra.mxu0 %v8281_v19  ;;  %7857 = vmatprep.subr.bf16.mxu1 %v8583_v1  ;;  %v8330_v19 = vld [vmem:[%s10266_s1 + $0x7b8] sm:$0xff]  }
 0x279   : > { %7376 = vmatprep.subr.bf16.mxu0 %v8283_v21  ;;  %v8332_v21 = vld [vmem:[%s10266_s1 + $0x7f0] sm:$0xff]  }
 0x27b   : > { %7858 = vmatpush3.bf16.msra.mxu1 %v8285_v23  ;;  %v8334_v23 = vld [vmem:[%s10266_s1 + $0x830] sm:$0xff]  }
 0x27c   : > { %7377 = vmatpush3.bf16.msra.mxu0 %v8284_v22  ;;  %7859 = vmatprep.subr.bf16.mxu1 %v8583_v1  ;;  %v8333_v22 = vld [vmem:[%s10266_s1 + $0x7b0] sm:$0xff]  }
 0x27d   : > { %7378 = vmatprep.subr.bf16.mxu0 %v8286_v24  ;;  %v8335_v24 = vld [vmem:[%s10266_s1 + $0x7e8] sm:$0xff]  }
 0x27f   : > { %7860 = vmatpush3.bf16.msra.mxu1 %v8288_v27  ;;  %v8337_v27 = vld [vmem:[%s10266_s1 + $0x828] sm:$0xff]  }
 0x280   : > { %7379 = vmatpush3.bf16.msra.mxu0 %v8287_v25  ;;  %7861 = vmatprep.subr.bf16.mxu1 %v8583_v1  ;;  %v8336_v25 = vld [vmem:[%s10266_s1 + $0x7a8] sm:$0xff]  }
 0x281   : > { %7380 = vmatprep.subr.bf16.mxu0 %v8289_v29  ;;  %v8338_v29 = vld [vmem:[%s10266_s1 + $0x7e0] sm:$0xff]  }
 0x283   : > { %7862 = vmatpush3.bf16.msra.mxu1 %v8291_v31  ;;  %v8340_v31 = vld [vmem:[%s10266_s1 + $0x820] sm:$0xff]  }
 0x284   : > { %7381 = vmatpush3.bf16.msra.mxu0 %v8290_v30  ;;  %7863 = vmatprep.subr.bf16.mxu1 %v8583_v1  ;;  %v8339_v30 = vld [vmem:[%s10266_s1 + $0x7a0] sm:$0xff]  }
 0x285   : > { %7382 = vmatprep.subr.bf16.mxu0 %v8292_v32  ;;  %v8341_v32 = vld [vmem:[%s10266_s1 + $0x7d8] sm:$0xff]  }
 0x287   : > { %7864 = vmatpush3.bf16.msra.mxu1 %v8294_v34  ;;  %v8343_v34 = vld [vmem:[%s10266_s1 + $0x818] sm:$0xff]  }
 0x288   : > { %7383 = vmatpush3.bf16.msra.mxu0 %v8293_v33  ;;  %7865 = vmatprep.subr.bf16.mxu1 %v8583_v1  ;;  %v8342_v33 = vld [vmem:[%s10266_s1 + $0x798] sm:$0xff]  }
 0x289   : > { %7384 = vmatprep.subr.bf16.mxu0 %v8295_v35  ;;  %v8344_v35 = vld [vmem:[%s10266_s1 + $0x7d0] sm:$0xff]  }
 0x28b   : > { %7866 = vmatpush3.bf16.msra.mxu1 %v8297_v39  ;;  %v8346_v39 = vld [vmem:[%s10266_s1 + $0x810] sm:$0xff]  }
 0x28c   : > { %7385 = vmatpush3.bf16.msra.mxu0 %v8296_v36  ;;  %7867 = vmatprep.subr.bf16.mxu1 %v8583_v1  ;;  %v8345_v36 = vld [vmem:[%s10266_s1 + $0x790] sm:$0xff]  }
 0x28d   : > { %7386 = vmatprep.subr.bf16.mxu0 %v8298_v40  ;;  %v8347_v40 = vld [vmem:[%s10266_s1 + $0x7c8] sm:$0xff]  }
 0x28f   : > { %7868 = vmatpush3.bf16.msra.mxu1 %v8300_v44  ;;  %v8351_v44 = vld [vmem:[%s10266_s1 + $0x780] sm:$0xff]  }
 0x290   : > { %7387 = vmatpush3.bf16.msra.mxu0 %v8299_v41  ;;  %7873 = vmatprep.subr.bf16.mxu1 %v8583_v1  ;;  %v8348_v41 = vld [vmem:[%s10266_s1 + $0x788] sm:$0xff]  }
 0x291   : > { %7403 = vmatprep.subr.bf16.mxu0 %v8301_v45  ;;  %v8352_v45 = vld [vmem:[%s10266_s1 + $0x800] sm:$0xff]  }
 0x292   : > { %7870 = vmatmul.mubr.bf16.vlgmr.msra.gmra.mxu1 %v2447_v53 }
 0x293   : > { %2628 = vmatmul.mubr.bf16.vlgmr.msra.gmra.mxu0 %v2445_v51  ;;  %7874 = vmatpush3.bf16.msra.mxu1 %v8305_v52 }
 0x294   : > { %7404 = vmatpush3.bf16.msra.mxu0 %v8303_v49  ;;  %2916 = vmatprep.mubr.bf16.mxu0 %v2735_v55 }
 0x295   : > { %7405 = vmatprep.subr.bf16.mxu0 %v8306_v54  ;;  %7875 = vmatprep.subr.bf16.mxu1 %v8583_v1 }
 0x296   : > { %7889 = vmatprep.mubr.msk.bf16.mxu1 %vm8584_vm0, %v8583_v1 }
 0x297   : > { %7876 = vmatpush3.bf16.msra.mxu1 %v8308_v56 }
 0x298   : > { %7406 = vmatpush3.bf16.msra.mxu0 %v8307_v18  ;;  %7877 = vmatprep.subr.bf16.mxu1 %v8583_v1 }
 0x299   : > { %7407 = vmatprep.subr.bf16.mxu0 %v8309_v57 }
 0x29b   : > { %7878 = vmatpush3.bf16.msra.mxu1 %v8311_v59 }
 0x29c   : > { %7408 = vmatpush3.bf16.msra.mxu0 %v8310_v58  ;;  %7879 = vmatprep.subr.bf16.mxu1 %v8583_v1 }
 0x29d   : > { %7409 = vmatprep.subr.bf16.mxu0 %v8312_v60 }
 0x29f   : > { %7880 = vmatpush3.bf16.msra.mxu1 %v8314_v63 }
 0x2a0   : > { %7410 = vmatpush3.bf16.msra.mxu0 %v8313_v62  ;;  %7881 = vmatprep.subr.bf16.mxu1 %v8583_v1 }
 0x2a1   : > { %7411 = vmatprep.subr.bf16.mxu0 %v8315_v0 }
 0x2a3   : > { %7882 = vmatpush3.bf16.msra.mxu1 %v8317_v3 }
 0x2a4   : > { %7412 = vmatpush3.bf16.msra.mxu0 %v8316_v2  ;;  %7883 = vmatprep.subr.bf16.mxu1 %v8583_v1 }
 0x2a5   : > { %7413 = vmatprep.subr.bf16.mxu0 %v8318_v4 }
 0x2a7   : > { %7884 = vmatpush3.bf16.msra.mxu1 %v8320_v6 }
 0x2a8   : > { %7414 = vmatpush3.bf16.msra.mxu0 %v8319_v5  ;;  %7885 = vmatprep.subr.bf16.mxu1 %v8583_v1 }
 0x2a9   : > { %7415 = vmatprep.subr.bf16.mxu0 %v8321_v7 }
 0x2ab   : > { %7886 = vmatpush3.bf16.msra.mxu1 %v8323_v9  ;;  %v6456_v9 = vld [vmem:[%s10267_s2 + $0x4] sm:$0x3] }
 0x2ac   : > { %7416 = vmatpush3.bf16.msra.mxu0 %v8322_v8  ;;  %7887 = vmatprep.subr.bf16.mxu1 %v8583_v1 }
 0x2ad   : > { %7417 = vmatprep.subr.bf16.mxu0 %v8324_v10 }
 0x2af   : > { %7888 = vmatpush3.bf16.msra.mxu1 %v8326_v12 }
 0x2b0   : > { %7418 = vmatpush3.bf16.msra.mxu0 %v8325_v11  ;;  %7893 = vmatprep.subr.bf16.mxu1 %v8583_v1 }
 0x2b1   : > { %7434 = vmatprep.subr.bf16.mxu0 %v8329_v17 }
 0x2b2   : > { %7890 = vmatmul.mubr.bf16.vlgmr.msra.gmra.mxu1 %v2736_v16 }
 0x2b3   : > { %2917 = vmatmul.mubr.bf16.vlgmr.msra.gmra.mxu0 %v2734_v15  ;;  %7909 = vmatprep.mubr.msk.bf16.mxu1 %vm8584_vm0, %v8583_v1  ;;  %v2970_v15 = vrot.slane %v6456_v9, %v8997_v37 }
 0x2b4   : > { %7435 = vmatpush3.bf16.msra.mxu0 %v8330_v19  ;;  %7894 = vmatpush3.bf16.msra.mxu1 %v8331_v20  ;;  %v2976_v20 = vrot.slane %v6456_v9, %v9000_v38  ;;  %v8374_v9 = vld [vmem:[%s10266_s1 + $0x710] sm:$0xff]  }
 0x2b5   : > { %7895 = vmatprep.subr.bf16.mxu1 %v8583_v1  ;;  %7436 = vmatprep.subr.bf16.mxu0 %v8332_v21 }
 0x2b8   : > { %7437 = vmatpush3.bf16.msra.mxu0 %v8333_v22  ;;  %7896 = vmatpush3.bf16.msra.mxu1 %v8334_v23 }
 0x2b9   : > { %7897 = vmatprep.subr.bf16.mxu1 %v8583_v1  ;;  %7438 = vmatprep.subr.bf16.mxu0 %v8335_v24 }
 0x2bc   : > { %7439 = vmatpush3.bf16.msra.mxu0 %v8336_v25  ;;  %7898 = vmatpush3.bf16.msra.mxu1 %v8337_v27 }
 0x2bd   : > { %7899 = vmatprep.subr.bf16.mxu1 %v8583_v1  ;;  %7440 = vmatprep.subr.bf16.mxu0 %v8338_v29 }
 0x2c0   : > { %7441 = vmatpush3.bf16.msra.mxu0 %v8339_v30  ;;  %7900 = vmatpush3.bf16.msra.mxu1 %v8340_v31 }
 0x2c1   : > { %7901 = vmatprep.subr.bf16.mxu1 %v8583_v1  ;;  %7442 = vmatprep.subr.bf16.mxu0 %v8341_v32 }
 0x2c4   : > { %7443 = vmatpush3.bf16.msra.mxu0 %v8342_v33  ;;  %7902 = vmatpush3.bf16.msra.mxu1 %v8343_v34 }
 0x2c5   : > { %7903 = vmatprep.subr.bf16.mxu1 %v8583_v1  ;;  %7444 = vmatprep.subr.bf16.mxu0 %v8344_v35 }
 0x2c8   : > { %7445 = vmatpush3.bf16.msra.mxu0 %v8345_v36  ;;  %7904 = vmatpush3.bf16.msra.mxu1 %v8346_v39 }
 0x2c9   : > { %7446 = vmatprep.subr.bf16.mxu0 %v8347_v40  ;;  %7905 = vmatprep.subr.bf16.mxu1 %v8583_v1 }
 0x2cc   : > { %7447 = vmatpush3.bf16.msra.mxu0 %v8348_v41  ;;  %7906 = vmatpush3.bf16.msra.mxu1 %v8349_v42  ;;  %v3013_v41 = vld [vmem:[#allocation2 + $0x8] sm:$0x8] }
 0x2cd   : > { %7448 = vmatprep.subr.bf16.mxu0 %v8350_v43  ;;  %7907 = vmatprep.subr.bf16.mxu1 %v8583_v1 }
 0x2d0   : > { %7449 = vmatpush3.bf16.msra.mxu0 %v8351_v44  ;;  %7908 = vmatpush3.bf16.msra.mxu1 %v8352_v45  ;;  %v2992_v45 = vld [vmem:[#allocation2 + $0xc] sm:$0x7] }
 0x2d1   : > { %7465 = vmatprep.subr.bf16.mxu0 %v8354_v47  ;;  %7913 = vmatprep.subr.bf16.mxu1 %v8583_v1 }
 0x332   : > { %v2426_v49 = vpop.f32.mrf.mxu1 }
 0x333   : > { %v7357_v48 = vpop.f32.mrf.mxu0 }
 0x334   : > { %v7851_v52 = vpop.f32.mrf.mxu1 }
 0x335   : > { %v7358_v51 = vpop.f32.mrf.mxu0 }
 0x336   : > { %v2429_v54 = vpop.f32.mrf.mxu1  ;;  %v7359_v2 = vadd.f32 %v7358_v51, %v7357_v48 }
 0x337   : > { %v7360_v53 = vpop.f32.mrf.mxu0 }
 0x338   : > { %v7852_v18 = vpop.f32.mrf.mxu1  ;;  %v2427_v4 = vadd.f32 %v7359_v2, %v2426_v49  ;;  %v3016_v49 = vld [vmem:[#allocation2 + $0x14] sm:$0x3]  ;;  %v8367_v2 = vld [vmem:[%s10266_s1 + $0x768] sm:$0xff]  }
 0x339   : > { %v7361_v55 = vpop.f32.mrf.mxu0 }
 0x33a   : > { %v8356_v55 = vld [vmem:[%s10266_s1 + $0x6f8] sm:$0xff]  }
 0x352   : > { %v2669_v57 = vpop.f32.mrf.mxu1 }
 0x353   : > { %v7388_v56 = vpop.f32.mrf.mxu0 }
 0x354   : > { %v7871_v59 = vpop.f32.mrf.mxu1 }
 0x355   : > { %v7389_v58 = vpop.f32.mrf.mxu0 }
 0x356   : > { %v2672_v62 = vpop.f32.mrf.mxu1  ;;  %v7390_v3 = vadd.f32 %v7389_v58, %v7388_v56  ;;  %v8361_v56 = vld [vmem:[%s10266_s1 + $0x778] sm:$0xff]   ;;  %v8362_v58 = vld [vmem:[%s10266_s1 + $0x730] sm:$0xff]  }
 0x357   : > { %v7391_v60 = vpop.f32.mrf.mxu0  ;;  %v8364_v62 = vld [vmem:[%s10266_s1 + $0x770] sm:$0xff]  }
 0x358   : > { %v7872_v0 = vpop.f32.mrf.mxu1  ;;  %v2630_v6 = vadd.f32 %v7390_v3, %v2427_v4  ;;  %v8363_v60 = vld [vmem:[%s10266_s1 + $0x6f0] sm:$0xff]   ;;  %v8368_v3 = vld [vmem:[%s10266_s1 + $0x720] sm:$0xff]  }
 0x359   : > { %v7392_v63 = vpop.f32.mrf.mxu0  ;;  %v8366_v0 = vld [vmem:[%s10266_s1 + $0x6e8] sm:$0xff]   ;;  %v8369_v4 = vld [vmem:[%s10266_s1 + $0x6e0] sm:$0xff]  }
 0x35a   : > { %v2670_v13 = vadd.f32 %v2669_v57, %v2630_v6  ;;  %v8365_v63 = vld [vmem:[%s10266_s1 + $0x728] sm:$0xff]   ;;  %v8371_v6 = vld [vmem:[%s10266_s1 + $0x718] sm:$0xff]  }
 0x372   : > { %v2958_v7 = vpop.f32.mrf.mxu1 }
 0x373   : > { %v7419_v5 = vpop.f32.mrf.mxu0 }
 0x374   : > { %v7891_v11 = vpop.f32.mrf.mxu1 }
 0x375   : > { %v7420_v8 = vpop.f32.mrf.mxu0  ;;  %v8376_v11 = vld [vmem:[%s10266_s1 + $0x750] sm:$0xff]  }
 0x376   : > { %v7421_v10 = vadd.f32 %v7420_v8, %v7419_v5  ;;  %v2961_v16 = vpop.f32.mrf.mxu1  ;;  %v8370_v5 = vld [vmem:[%s10266_s1 + $0x760] sm:$0xff]   ;;  %v8373_v8 = vld [vmem:[%s10266_s1 + $0x758] sm:$0xff]  }
 0x377   : > { %v7422_v12 = vpop.f32.mrf.mxu0  ;;  %v8381_v16 = vld [vmem:[%s10266_s1 + $0x6c0] sm:$0xff]  }
 0x378   : > { %v2959_v14 = vadd.f32 %v7421_v10, %v2958_v7  ;;  %v7892_v21 = vpop.f32.mrf.mxu1  ;;  %v8372_v7 = vld [vmem:[%s10266_s1 + $0x6d8] sm:$0xff]   ;;  %v8375_v10 = vld [vmem:[%s10266_s1 + $0x6d0] sm:$0xff]   ;;  %v8377_v12 = vld [vmem:[%s10266_s1 + $0x708] sm:$0xff]  }
 0x379   : > { %v7423_v17 = vpop.f32.mrf.mxu0  ;;  %v8383_v21 = vld [vmem:[%s10266_s1 + $0x8b8] sm:$0xff]  }
 0x37a   : > { %v2964_v19 = vadd.f32 %v2959_v14, %v2670_v13  ;;  %v8378_v13 = vld [vmem:[%s10266_s1 + $0x6c8] sm:$0xff]  }
 0x37b   : > { %v8379_v14 = vld [vmem:[%s10266_s1 + $0x748] sm:$0xff]  }
 0x37c   : > { %v2971_v22 = vadd.f32 %v2970_v15, %v2964_v19  ;;  %v8380_v15 = vld [vmem:[%s10266_s1 + $0x700] sm:$0xff]  }
 0x37e   : > { %vm2972_vm14 = vcmp.ge.f32.partialorder %v2971_v22, 0.0  ;;  %v2977_v23 = vmul.f32 %v2976_v20, %v2971_v22  ;;  %v8382_v20 = vld [vmem:[%s10266_s1 + $0x740] sm:$0xff]  }
 0x380   : > { %v2978_v24 = vsel %vm2972_vm14, %v2971_v22, %v2977_v23 }
 0x381   : > { %v2979_v25 = vsel %vm8703_vm1, %v2978_v24, 0.0  ;;  %v2995_v27 = vpack.c.bf16 %v2978_v24, %v2978_v24  ;;  %v2997_v29 = vsel %vm8708_vm2, %v2978_v24, 0.0  ;;  %v8385_v24 = vld [vmem:[%s10266_s1 + $0x878] sm:$0xff]  }
 0x382   : > { %v7149_v30 = vpack.c.bf16 %v2979_v25, %v2979_v25  ;;  %v7150_v31 = vpack.c.bf16 %v2997_v29, %v2997_v29 }
 0x383   : > { %2996 = vst [vmem:[#allocation2 + $0x10] sm:$0x3] %v2995_v27  ;;  %v8387_v27 = vld [vmem:[%s10266_s1 + $0x8f8] sm:$0xff]  }
 0x384   : > { %v2985_v32 = vshrl.u32 %v7149_v30, 16  ;;  %v3003_v33 = vshll.u32 %v7150_v31, 16  ;;  %v3006_v34 = vshrl.u32 %v7150_v31, 16  ;;  %v2988_v36 = vshll.u32 %v7149_v30, 16  ;;  %v8388_v30 = vld [vmem:[%s10266_s1 + $0x8b0] sm:$0xff]  }
 0x386   : > { %v2987_v35 = vrot.slane %v2985_v32, 7  ;;  %v3005_v39 = vrot.slane %v3003_v33, 5  ;;  %v3008_v40 = vrot.slane %v3006_v34, 4  ;;  %v8389_v32 = vld [vmem:[%s10266_s1 + $0x870] sm:$0xff]   ;;  %v8391_v34 = vld [vmem:[%s10266_s1 + $0x8a8] sm:$0xff]  }
 0x387   : > { %v8390_v33 = vld [vmem:[%s10266_s1 + $0x8f0] sm:$0xff]  }
 0x388   : > { %v2990_v42 = vor.u32 %v2988_v36, %v2987_v35  ;;  %v3009_v43 = vor.u32 %v3008_v40, %v3005_v39  ;;  %v3014_v44 = vsel %vm8753_vm11, %v3005_v39, %v3013_v41  ;;  %v8392_v35 = vld [vmem:[%s10266_s1 + $0x868] sm:$0xff]   ;;  %v8394_v39 = vld [vmem:[%s10266_s1 + $0x8a0] sm:$0xff]  }
 0x389   : > { %3015 = vst [vmem:[#allocation2 + $0x8] sm:$0x8] %v3014_v44  ;;  %v8393_v36 = vld [vmem:[%s10266_s1 + $0x8e8] sm:$0xff]   ;;  %v8395_v40 = vld [vmem:[%s10266_s1 + $0x860] sm:$0xff]   ;;  %v8399_v44 = vld [vmem:[%s10266_s1 + $0x8d8] sm:$0xff]  }
 0x38a   : > { %v2993_v47 = vsel %vm8731_vm7, %v2990_v42, %v2992_v45  ;;  %v3010_v48 = vrot.slane %v3009_v43, 4  ;;  %v8360_v18 = vld [vmem:[#allocation2 + $0x4] ss:$12 sps:$4 sm:$0x18]   ;;  %v8397_v42 = vld [vmem:[%s10266_s1 + $0x898] sm:$0xff]  }
 0x38b   : > { %2994 = vst [vmem:[#allocation2 + $0xc] sm:$0x7] %v2993_v47  ;;  %v3372_v59 = vrot.slane %v8360_v18, 3  ;;  %v8396_v41 = vld [vmem:[%s10266_s1 + $0x8e0] sm:$0xff]   ;;  %v8398_v43 = vld [vmem:[%s10266_s1 + $0x858] sm:$0xff]   ;;  %v8400_v45 = vld [vmem:[%s10266_s1 + $0x890] sm:$0xff]  }
 0x38c   : > { %v3017_v51 = vsel %vm8736_vm8, %v3010_v48, %v3016_v49  ;;  %v8401_v47 = vld [vmem:[%s10266_s1 + $0x850] sm:$0xff]   ;;  %v8403_v49 = vld [vmem:[%s10266_s1 + $0x888] sm:$0xff]  }
 0x38d   : > { %3018 = vst [vmem:[#allocation2 + $0x14] sm:$0x3] %v3017_v51  ;;  %v8402_v48 = vld [vmem:[%s10266_s1 + $0x8d0] sm:$0xff]   ;;  %v8404_v51 = vld [vmem:[%s10266_s1 + $0x848] sm:$0xff]  }
 0x392   : > { %v3072_v52 = vld [vmem:[#allocation2 + $0xc] sm:$0x33] }
 0x393   : > { %v6556_v53 = vcombine.high %v3072_v52, %v3072_v52  ;;  %v6555_v54 = vcombine.low %v3072_v52, %v3072_v52  ;;  %v9625_v17 = vld [vmem:[#allocation2 + $0xc] sm:$0x66]  ;;  %v8358_v19 = vld [vmem:[#allocation2] ss:$12 sps:$4 sm:$0x18]  }
 0x394   : > { %v8357_v57 = vld [vmem:[#allocation2 + $0x14] ss:$0 sps:$4 sm:$0x33]   ;;  %v6658_v23 = vcombine.high %v9625_v17, %v9625_v17  ;;  %v3371_v25 = vrot.slane %v8358_v19, 3  ;;  %v8405_v52 = vld [vmem:[%s10266_s1 + $0x8c8] sm:$0xff]   ;;  %v6657_v18 = vcombine.low %v9625_v17, %v9625_v17  ;;  %v8432_v19 = vld [vmem:[%s10266_s1 + $0xa00] sm:$0xff]  }
 0x395   : > { %3310 = vmatprep.mubr.bf16.mxu0 %v6556_v53  ;;  %7910 = vmatmul.mubr.bf16.vlgmr.msra.gmra.mxu1 %v8357_v57  ;;  %v8384_v22 = vld [vmem:[#allocation2 + $0x8] ss:$12 sps:$4 sm:$0x18]   ;;  %v8406_v53 = vld [vmem:[%s10266_s1 + $0x880] sm:$0xff]  }
 0x396   : > { %3311 = vmatmul.mubr.bf16.vlgmr.msra.gmra.mxu0 %v6555_v54  ;;  %7914 = vmatpush3.bf16.msra.mxu1 %v8361_v56  ;;  %v3373_v29 = vrot.slane %v8384_v22, 3  ;;  %v3661_v31 = vrot.slane %v6658_v23, 1  ;;  %v8407_v54 = vld [vmem:[%s10266_s1 + $0x840] sm:$0xff]   ;;  %v8410_v56 = vld [vmem:[#allocation2 + $0x14] ss:$0 sps:$4 sm:$0x66]  }
 0x397   : > { %7466 = vmatpush3.bf16.msra.mxu0 %v8356_v55  ;;  %3553 = vmatprep.mubr.bf16.mxu0 %v3372_v59  ;;  %v8408_v55 = vld [vmem:[%s10266_s1 + $0x8c0] sm:$0xff]   ;;  %v3660_v57 = vrot.slane %v6657_v18, 1  ;;  %v8411_v59 = vld [vmem:[%s10266_s1 + $0xa38] sm:$0xff]   ;;  %v8431_v17 = vld [vmem:[%s10266_s1 + $0xa48] sm:$0xff]  }
 0x398   : > { %7467 = vmatprep.subr.bf16.mxu0 %v8362_v58  ;;  %7915 = vmatprep.subr.bf16.mxu1 %v8583_v1  ;;  %v3662_v58 = vrot.slane %v8410_v56, 1  ;;  %v8436_v22 = vld [vmem:[%s10266_s1 + $0x978] sm:$0xff]  }
 0x399   : > { %7929 = vmatprep.mubr.msk.bf16.mxu1 %vm8584_vm0, %v8583_v1 }
 0x39a   : > { %7916 = vmatpush3.bf16.msra.mxu1 %v8364_v62  ;;  %v8413_v62 = vld [vmem:[%s10266_s1 + $0xa78] sm:$0xff]  }
 0x39b   : > { %7468 = vmatpush3.bf16.msra.mxu0 %v8363_v60  ;;  %7917 = vmatprep.subr.bf16.mxu1 %v8583_v1  ;;  %v8412_v60 = vld [vmem:[%s10266_s1 + $0x9f8] sm:$0xff]  }
 0x39c   : > { %7469 = vmatprep.subr.bf16.mxu0 %v8365_v63  ;;  %v8414_v63 = vld [vmem:[%s10266_s1 + $0xa30] sm:$0xff]  }
 0x39e   : > { %7918 = vmatpush3.bf16.msra.mxu1 %v8367_v2  ;;  %v8416_v2 = vld [vmem:[%s10266_s1 + $0xa70] sm:$0xff]  }
 0x39f   : > { %7470 = vmatpush3.bf16.msra.mxu0 %v8366_v0  ;;  %7919 = vmatprep.subr.bf16.mxu1 %v8583_v1  ;;  %v8415_v0 = vld [vmem:[%s10266_s1 + $0x9f0] sm:$0xff]  }
 0x3a0   : > { %7471 = vmatprep.subr.bf16.mxu0 %v8368_v3  ;;  %v8417_v3 = vld [vmem:[%s10266_s1 + $0xa28] sm:$0xff]  }
 0x3a2   : > { %7920 = vmatpush3.bf16.msra.mxu1 %v8370_v5  ;;  %v8419_v5 = vld [vmem:[%s10266_s1 + $0xa68] sm:$0xff]  }
 0x3a3   : > { %7472 = vmatpush3.bf16.msra.mxu0 %v8369_v4  ;;  %7921 = vmatprep.subr.bf16.mxu1 %v8583_v1  ;;  %v8418_v4 = vld [vmem:[%s10266_s1 + $0x9e8] sm:$0xff]  }
 0x3a4   : > { %7473 = vmatprep.subr.bf16.mxu0 %v8371_v6  ;;  %v8420_v6 = vld [vmem:[%s10266_s1 + $0xa20] sm:$0xff]  }
 0x3a6   : > { %7922 = vmatpush3.bf16.msra.mxu1 %v8373_v8  ;;  %v8422_v8 = vld [vmem:[%s10266_s1 + $0xa60] sm:$0xff]  }
 0x3a7   : > { %7474 = vmatpush3.bf16.msra.mxu0 %v8372_v7  ;;  %7923 = vmatprep.subr.bf16.mxu1 %v8583_v1  ;;  %v8421_v7 = vld [vmem:[%s10266_s1 + $0x9e0] sm:$0xff]  }
 0x3a8   : > { %7475 = vmatprep.subr.bf16.mxu0 %v8374_v9  ;;  %v8423_v9 = vld [vmem:[%s10266_s1 + $0xa18] sm:$0xff]  }
 0x3aa   : > { %7924 = vmatpush3.bf16.msra.mxu1 %v8376_v11  ;;  %v8425_v11 = vld [vmem:[%s10266_s1 + $0xa58] sm:$0xff]  }
 0x3ab   : > { %7476 = vmatpush3.bf16.msra.mxu0 %v8375_v10  ;;  %7925 = vmatprep.subr.bf16.mxu1 %v8583_v1  ;;  %v8424_v10 = vld [vmem:[%s10266_s1 + $0x9d8] sm:$0xff]  }
 0x3ac   : > { %7477 = vmatprep.subr.bf16.mxu0 %v8377_v12  ;;  %v8426_v12 = vld [vmem:[%s10266_s1 + $0xa10] sm:$0xff]  }
 0x3ae   : > { %7926 = vmatpush3.bf16.msra.mxu1 %v8379_v14  ;;  %v8428_v14 = vld [vmem:[%s10266_s1 + $0xa50] sm:$0xff]  }
 0x3af   : > { %7478 = vmatpush3.bf16.msra.mxu0 %v8378_v13  ;;  %7927 = vmatprep.subr.bf16.mxu1 %v8583_v1  ;;  %v8427_v13 = vld [vmem:[%s10266_s1 + $0x9d0] sm:$0xff]  }
 0x3b0   : > { %7479 = vmatprep.subr.bf16.mxu0 %v8380_v15  ;;  %v8429_v15 = vld [vmem:[%s10266_s1 + $0xa08] sm:$0xff]  }
 0x3b2   : > { %7928 = vmatpush3.bf16.msra.mxu1 %v8382_v20  ;;  %v8433_v20 = vld [vmem:[%s10266_s1 + $0x9c0] sm:$0xff]  }
 0x3b3   : > { %7480 = vmatpush3.bf16.msra.mxu0 %v8381_v16  ;;  %7933 = vmatprep.subr.bf16.mxu1 %v8583_v1  ;;  %v8430_v16 = vld [vmem:[%s10266_s1 + $0x9c8] sm:$0xff]  }
 0x3b4   : > { %7496 = vmatprep.subr.bf16.mxu0 %v8383_v21  ;;  %v8434_v21 = vld [vmem:[%s10266_s1 + $0xa40] sm:$0xff]  }
 0x3b5   : > { %7930 = vmatmul.mubr.bf16.vlgmr.msra.gmra.mxu1 %v3373_v29 }
 0x3b6   : > { %3554 = vmatmul.mubr.bf16.vlgmr.msra.gmra.mxu0 %v3371_v25  ;;  %7934 = vmatpush3.bf16.msra.mxu1 %v8387_v27 }
 0x3b7   : > { %7497 = vmatpush3.bf16.msra.mxu0 %v8385_v24  ;;  %3842 = vmatprep.mubr.bf16.mxu0 %v3661_v31 }
 0x3b8   : > { %7498 = vmatprep.subr.bf16.mxu0 %v8388_v30  ;;  %7935 = vmatprep.subr.bf16.mxu1 %v8583_v1 }
 0x3b9   : > { %7949 = vmatprep.mubr.msk.bf16.mxu1 %vm8584_vm0, %v8583_v1 }
 0x3ba   : > { %7936 = vmatpush3.bf16.msra.mxu1 %v8390_v33 }
 0x3bb   : > { %7499 = vmatpush3.bf16.msra.mxu0 %v8389_v32  ;;  %7937 = vmatprep.subr.bf16.mxu1 %v8583_v1 }
 0x3bc   : > { %7500 = vmatprep.subr.bf16.mxu0 %v8391_v34 }
 0x3be   : > { %7938 = vmatpush3.bf16.msra.mxu1 %v8393_v36 }
 0x3bf   : > { %7501 = vmatpush3.bf16.msra.mxu0 %v8392_v35  ;;  %7939 = vmatprep.subr.bf16.mxu1 %v8583_v1 }
 0x3c0   : > { %7502 = vmatprep.subr.bf16.mxu0 %v8394_v39 }
 0x3c2   : > { %7940 = vmatpush3.bf16.msra.mxu1 %v8396_v41 }
 0x3c3   : > { %7503 = vmatpush3.bf16.msra.mxu0 %v8395_v40  ;;  %7941 = vmatprep.subr.bf16.mxu1 %v8583_v1 }
 0x3c4   : > { %7504 = vmatprep.subr.bf16.mxu0 %v8397_v42 }
 0x3c6   : > { %7942 = vmatpush3.bf16.msra.mxu1 %v8399_v44 }
 0x3c7   : > { %7505 = vmatpush3.bf16.msra.mxu0 %v8398_v43  ;;  %7943 = vmatprep.subr.bf16.mxu1 %v8583_v1 }
 0x3c8   : > { %7506 = vmatprep.subr.bf16.mxu0 %v8400_v45 }
 0x3ca   : > { %7944 = vmatpush3.bf16.msra.mxu1 %v8402_v48 }
 0x3cb   : > { %7507 = vmatpush3.bf16.msra.mxu0 %v8401_v47  ;;  %7945 = vmatprep.subr.bf16.mxu1 %v8583_v1 }
 0x3cc   : > { %7508 = vmatprep.subr.bf16.mxu0 %v8403_v49 }
 0x3ce   : > { %7946 = vmatpush3.bf16.msra.mxu1 %v8405_v52  ;;  %v6684_v52 = vld [vmem:[%s10267_s2 + $0x6] sm:$0x3] }
 0x3cf   : > { %7509 = vmatpush3.bf16.msra.mxu0 %v8404_v51  ;;  %7947 = vmatprep.subr.bf16.mxu1 %v8583_v1 }
 0x3d0   : > { %7510 = vmatprep.subr.bf16.mxu0 %v8406_v53 }
 0x3d2   : > { %7948 = vmatpush3.bf16.msra.mxu1 %v8408_v55 }
 0x3d3   : > { %7511 = vmatpush3.bf16.msra.mxu0 %v8407_v54  ;;  %7953 = vmatprep.subr.bf16.mxu1 %v8583_v1 }
 0x3d4   : > { %7527 = vmatprep.subr.bf16.mxu0 %v8411_v59 }
 0x3d5   : > { %7950 = vmatmul.mubr.bf16.vlgmr.msra.gmra.mxu1 %v3662_v58 }
 0x3d6   : > { %3843 = vmatmul.mubr.bf16.vlgmr.msra.gmra.mxu0 %v3660_v57  ;;  %7969 = vmatprep.mubr.msk.bf16.mxu1 %vm8584_vm0, %v8583_v1  ;;  %v3896_v57 = vrot.slane %v6684_v52, %v8997_v37 }
 0x3d7   : > { %7528 = vmatpush3.bf16.msra.mxu0 %v8412_v60  ;;  %7954 = vmatpush3.bf16.msra.mxu1 %v8413_v62  ;;  %v3902_v62 = vrot.slane %v6684_v52, %v9000_v38  ;;  %v8456_v52 = vld [vmem:[%s10266_s1 + $0x950] sm:$0xff]  }
 0x3d8   : > { %7955 = vmatprep.subr.bf16.mxu1 %v8583_v1  ;;  %7529 = vmatprep.subr.bf16.mxu0 %v8414_v63 }
 0x3db   : > { %7530 = vmatpush3.bf16.msra.mxu0 %v8415_v0  ;;  %7956 = vmatpush3.bf16.msra.mxu1 %v8416_v2 }
 0x3dc   : > { %7957 = vmatprep.subr.bf16.mxu1 %v8583_v1  ;;  %7531 = vmatprep.subr.bf16.mxu0 %v8417_v3 }
 0x3df   : > { %7532 = vmatpush3.bf16.msra.mxu0 %v8418_v4  ;;  %7958 = vmatpush3.bf16.msra.mxu1 %v8419_v5 }
 0x3e0   : > { %7959 = vmatprep.subr.bf16.mxu1 %v8583_v1  ;;  %7533 = vmatprep.subr.bf16.mxu0 %v8420_v6 }
 0x3e3   : > { %7534 = vmatpush3.bf16.msra.mxu0 %v8421_v7  ;;  %7960 = vmatpush3.bf16.msra.mxu1 %v8422_v8 }
 0x3e4   : > { %7961 = vmatprep.subr.bf16.mxu1 %v8583_v1  ;;  %7535 = vmatprep.subr.bf16.mxu0 %v8423_v9 }
 0x3e7   : > { %7536 = vmatpush3.bf16.msra.mxu0 %v8424_v10  ;;  %7962 = vmatpush3.bf16.msra.mxu1 %v8425_v11 }
 0x3e8   : > { %7963 = vmatprep.subr.bf16.mxu1 %v8583_v1  ;;  %7537 = vmatprep.subr.bf16.mxu0 %v8426_v12 }
 0x3eb   : > { %7538 = vmatpush3.bf16.msra.mxu0 %v8427_v13  ;;  %7964 = vmatpush3.bf16.msra.mxu1 %v8428_v14 }
 0x3ec   : > { %7539 = vmatprep.subr.bf16.mxu0 %v8429_v15  ;;  %7965 = vmatprep.subr.bf16.mxu1 %v8583_v1 }
 0x3ef   : > { %7540 = vmatpush3.bf16.msra.mxu0 %v8430_v16  ;;  %7966 = vmatpush3.bf16.msra.mxu1 %v8431_v17  ;;  %v3939_v16 = vld [vmem:[#allocation2 + $0x8] sm:$0x8] }
 0x3f0   : > { %7541 = vmatprep.subr.bf16.mxu0 %v8432_v19  ;;  %7967 = vmatprep.subr.bf16.mxu1 %v8583_v1 }
 0x3f3   : > { %7542 = vmatpush3.bf16.msra.mxu0 %v8433_v20  ;;  %7968 = vmatpush3.bf16.msra.mxu1 %v8434_v21  ;;  %v3918_v21 = vld [vmem:[#allocation2 + $0xc] sm:$0x7] }
 0x3f4   : > { %7558 = vmatprep.subr.bf16.mxu0 %v8436_v22  ;;  %7973 = vmatprep.subr.bf16.mxu1 %v8583_v1 }
 0x455   : > { %v3352_v24 = vpop.f32.mrf.mxu1 }
 0x456   : > { %v7450_v23 = vpop.f32.mrf.mxu0 }
 0x457   : > { %v7911_v27 = vpop.f32.mrf.mxu1 }
 0x458   : > { %v7451_v25 = vpop.f32.mrf.mxu0 }
 0x459   : > { %v3355_v30 = vpop.f32.mrf.mxu1  ;;  %v7452_v43 = vadd.f32 %v7451_v25, %v7450_v23 }
 0x45a   : > { %v7453_v29 = vpop.f32.mrf.mxu0 }
 0x45b   : > { %v7912_v32 = vpop.f32.mrf.mxu1  ;;  %v3353_v45 = vadd.f32 %v7452_v43, %v3352_v24  ;;  %v3942_v24 = vld [vmem:[#allocation2 + $0x14] sm:$0x3]  ;;  %v8449_v43 = vld [vmem:[%s10266_s1 + $0x9a8] sm:$0xff]  }
 0x45c   : > { %v7454_v31 = vpop.f32.mrf.mxu0 }
 0x45d   : > { %v8438_v31 = vld [vmem:[%s10266_s1 + $0x938] sm:$0xff]  }
 0x475   : > { %v3595_v34 = vpop.f32.mrf.mxu1 }
 0x476   : > { %v7481_v33 = vpop.f32.mrf.mxu0 }
 0x477   : > { %v7931_v36 = vpop.f32.mrf.mxu1 }
 0x478   : > { %v7482_v35 = vpop.f32.mrf.mxu0 }
 0x479   : > { %v3598_v40 = vpop.f32.mrf.mxu1  ;;  %v7483_v44 = vadd.f32 %v7482_v35, %v7481_v33  ;;  %v8443_v33 = vld [vmem:[%s10266_s1 + $0x9b8] sm:$0xff]   ;;  %v8444_v35 = vld [vmem:[%s10266_s1 + $0x970] sm:$0xff]  }
 0x47a   : > { %v7484_v39 = vpop.f32.mrf.mxu0  ;;  %v8446_v40 = vld [vmem:[%s10266_s1 + $0x9b0] sm:$0xff]  }
 0x47b   : > { %v7932_v42 = vpop.f32.mrf.mxu1  ;;  %v3556_v48 = vadd.f32 %v7483_v44, %v3353_v45  ;;  %v8445_v39 = vld [vmem:[%s10266_s1 + $0x930] sm:$0xff]   ;;  %v8450_v44 = vld [vmem:[%s10266_s1 + $0x960] sm:$0xff]  }
 0x47c   : > { %v7485_v41 = vpop.f32.mrf.mxu0  ;;  %v8448_v42 = vld [vmem:[%s10266_s1 + $0x928] sm:$0xff]   ;;  %v8451_v45 = vld [vmem:[%s10266_s1 + $0x920] sm:$0xff]  }
 0x47d   : > { %v3596_v18 = vadd.f32 %v3595_v34, %v3556_v48  ;;  %v8447_v41 = vld [vmem:[%s10266_s1 + $0x968] sm:$0xff]   ;;  %v8453_v48 = vld [vmem:[%s10266_s1 + $0x958] sm:$0xff]  }
 0x495   : > { %v3884_v49 = vpop.f32.mrf.mxu1 }
 0x496   : > { %v7512_v47 = vpop.f32.mrf.mxu0 }
 0x497   : > { %v7951_v54 = vpop.f32.mrf.mxu1 }
 0x498   : > { %v7513_v51 = vpop.f32.mrf.mxu0  ;;  %v8458_v54 = vld [vmem:[%s10266_s1 + $0x990] sm:$0xff]  }
 0x499   : > { %v7514_v53 = vadd.f32 %v7513_v51, %v7512_v47  ;;  %v3887_v58 = vpop.f32.mrf.mxu1  ;;  %v8452_v47 = vld [vmem:[%s10266_s1 + $0x9a0] sm:$0xff]   ;;  %v8455_v51 = vld [vmem:[%s10266_s1 + $0x998] sm:$0xff]  }
 0x49a   : > { %v7515_v55 = vpop.f32.mrf.mxu0  ;;  %v8463_v58 = vld [vmem:[%s10266_s1 + $0x900] sm:$0xff]  }
 0x49b   : > { %v3885_v56 = vadd.f32 %v7514_v53, %v3884_v49  ;;  %v7952_v63 = vpop.f32.mrf.mxu1  ;;  %v8454_v49 = vld [vmem:[%s10266_s1 + $0x918] sm:$0xff]   ;;  %v8457_v53 = vld [vmem:[%s10266_s1 + $0x910] sm:$0xff]   ;;  %v8459_v55 = vld [vmem:[%s10266_s1 + $0x948] sm:$0xff]  }
 0x49c   : > { %v7516_v59 = vpop.f32.mrf.mxu0  ;;  %v8465_v63 = vld [vmem:[%s10266_s1 + $0xaf8] sm:$0xff]  }
 0x49d   : > { %v3890_v60 = vadd.f32 %v3885_v56, %v3596_v18  ;;  %v8460_v18 = vld [vmem:[%s10266_s1 + $0x908] sm:$0xff]  }
 0x49e   : > { %v8461_v56 = vld [vmem:[%s10266_s1 + $0x988] sm:$0xff]  }
 0x49f   : > { %v3897_v0 = vadd.f32 %v3896_v57, %v3890_v60  ;;  %v8462_v57 = vld [vmem:[%s10266_s1 + $0x940] sm:$0xff]  }
 0x4a1   : > { %vm3898_vm15 = vcmp.ge.f32.partialorder %v3897_v0, 0.0  ;;  %v3903_v2 = vmul.f32 %v3902_v62, %v3897_v0  ;;  %v8464_v62 = vld [vmem:[%s10266_s1 + $0x980] sm:$0xff]  }
 0x4a3   : > { %v3904_v3 = vsel %vm3898_vm15, %v3897_v0, %v3903_v2 }
 0x4a4   : > { %v3905_v4 = vsel %vm8703_vm1, %v3904_v3, 0.0  ;;  %v3921_v5 = vpack.c.bf16 %v3904_v3, %v3904_v3  ;;  %v3923_v6 = vsel %vm8708_vm2, %v3904_v3, 0.0  ;;  %v8467_v3 = vld [vmem:[%s10266_s1 + $0xab8] sm:$0xff]  }
 0x4a5   : > { %v7151_v7 = vpack.c.bf16 %v3905_v4, %v3905_v4  ;;  %v7152_v8 = vpack.c.bf16 %v3923_v6, %v3923_v6 }
 0x4a6   : > { %3922 = vst [vmem:[#allocation2 + $0x10] sm:$0x3] %v3921_v5  ;;  %v8469_v5 = vld [vmem:[%s10266_s1 + $0xb38] sm:$0xff]  }
 0x4a7   : > { %v3911_v9 = vshrl.u32 %v7151_v7, 16  ;;  %v3929_v10 = vshll.u32 %v7152_v8, 16  ;;  %v3932_v11 = vshrl.u32 %v7152_v8, 16  ;;  %v3914_v13 = vshll.u32 %v7151_v7, 16  ;;  %v8470_v7 = vld [vmem:[%s10266_s1 + $0xaf0] sm:$0xff]  }
 0x4a9   : > { %v3913_v12 = vrot.slane %v3911_v9, 7  ;;  %v3931_v14 = vrot.slane %v3929_v10, 5  ;;  %v3934_v15 = vrot.slane %v3932_v11, 4  ;;  %v8471_v9 = vld [vmem:[%s10266_s1 + $0xab0] sm:$0xff]   ;;  %v8473_v11 = vld [vmem:[%s10266_s1 + $0xae8] sm:$0xff]  }
 0x4aa   : > { %v8472_v10 = vld [vmem:[%s10266_s1 + $0xb30] sm:$0xff]  }
 0x4ab   : > { %v3916_v17 = vor.u32 %v3914_v13, %v3913_v12  ;;  %v3935_v19 = vor.u32 %v3934_v15, %v3931_v14  ;;  %v3940_v20 = vsel %vm8753_vm11, %v3931_v14, %v3939_v16  ;;  %v8474_v12 = vld [vmem:[%s10266_s1 + $0xaa8] sm:$0xff]   ;;  %v8476_v14 = vld [vmem:[%s10266_s1 + $0xae0] sm:$0xff]  }
 0x4ac   : > { %3941 = vst [vmem:[#allocation2 + $0x8] sm:$0x8] %v3940_v20  ;;  %v8475_v13 = vld [vmem:[%s10266_s1 + $0xb28] sm:$0xff]   ;;  %v8477_v15 = vld [vmem:[%s10266_s1 + $0xaa0] sm:$0xff]   ;;  %v8481_v20 = vld [vmem:[%s10266_s1 + $0xb18] sm:$0xff]  }
 0x4ad   : > { %v3919_v22 = vsel %vm8731_vm7, %v3916_v17, %v3918_v21  ;;  %v3936_v23 = vrot.slane %v3935_v19, 4  ;;  %v8442_v32 = vld [vmem:[#allocation2 + $0x4] ss:$12 sps:$4 sm:$0x18]   ;;  %v8479_v17 = vld [vmem:[%s10266_s1 + $0xad8] sm:$0xff]  }
 0x4ae   : > { %3920 = vst [vmem:[#allocation2 + $0xc] sm:$0x7] %v3919_v22  ;;  %v4298_v36 = vrot.slane %v8442_v32, 3  ;;  %v8478_v16 = vld [vmem:[%s10266_s1 + $0xb20] sm:$0xff]   ;;  %v8480_v19 = vld [vmem:[%s10266_s1 + $0xa98] sm:$0xff]   ;;  %v8482_v21 = vld [vmem:[%s10266_s1 + $0xad0] sm:$0xff]  }
 0x4af   : > { %v3943_v25 = vsel %vm8736_vm8, %v3936_v23, %v3942_v24  ;;  %v8483_v22 = vld [vmem:[%s10266_s1 + $0xa90] sm:$0xff]   ;;  %v8485_v24 = vld [vmem:[%s10266_s1 + $0xac8] sm:$0xff]  }
 0x4b0   : > { %3944 = vst [vmem:[#allocation2 + $0x14] sm:$0x3] %v3943_v25  ;;  %v8484_v23 = vld [vmem:[%s10266_s1 + $0xb10] sm:$0xff]   ;;  %v8486_v25 = vld [vmem:[%s10266_s1 + $0xa88] sm:$0xff]  }
 0x4b5   : > { %v3998_v27 = vld [vmem:[#allocation2 + $0xc] sm:$0x33] }
 0x4b6   : > { %v6784_v29 = vcombine.high %v3998_v27, %v3998_v27  ;;  %v6783_v30 = vcombine.low %v3998_v27, %v3998_v27  ;;  %v9892_v59 = vld [vmem:[#allocation2 + $0xc] sm:$0x66]  ;;  %v8440_v60 = vld [vmem:[#allocation2] ss:$12 sps:$4 sm:$0x18]  }
 0x4b7   : > { %v8439_v34 = vld [vmem:[#allocation2 + $0x14] ss:$0 sps:$4 sm:$0x33]   ;;  %v6886_v2 = vcombine.high %v9892_v59, %v9892_v59  ;;  %v4297_v4 = vrot.slane %v8440_v60, 3  ;;  %v8487_v27 = vld [vmem:[%s10266_s1 + $0xb08] sm:$0xff]   ;;  %v6885_v32 = vcombine.low %v9892_v59, %v9892_v59  ;;  %v8514_v60 = vld [vmem:[%s10266_s1 + $0xc40] sm:$0xff]  }
 0x4b8   : > { %4236 = vmatprep.mubr.bf16.mxu0 %v6784_v29  ;;  %7970 = vmatmul.mubr.bf16.vlgmr.msra.gmra.mxu1 %v8439_v34  ;;  %v8466_v0 = vld [vmem:[#allocation2 + $0x8] ss:$12 sps:$4 sm:$0x18]   ;;  %v8488_v29 = vld [vmem:[%s10266_s1 + $0xac0] sm:$0xff]  }
 0x4b9   : > { %4237 = vmatmul.mubr.bf16.vlgmr.msra.gmra.mxu0 %v6783_v30  ;;  %7974 = vmatpush3.bf16.msra.mxu1 %v8443_v33  ;;  %v4299_v6 = vrot.slane %v8466_v0, 3  ;;  %v4587_v8 = vrot.slane %v6886_v2, 1  ;;  %v8489_v30 = vld [vmem:[%s10266_s1 + $0xa80] sm:$0xff]   ;;  %v8492_v33 = vld [vmem:[#allocation2 + $0x14] ss:$0 sps:$4 sm:$0x66]  }
 0x4ba   : > { %7559 = vmatpush3.bf16.msra.mxu0 %v8438_v31  ;;  %4479 = vmatprep.mubr.bf16.mxu0 %v4298_v36  ;;  %v8490_v31 = vld [vmem:[%s10266_s1 + $0xb00] sm:$0xff]   ;;  %v4586_v34 = vrot.slane %v6885_v32, 1  ;;  %v8493_v36 = vld [vmem:[%s10266_s1 + $0xc78] sm:$0xff]   ;;  %v8513_v59 = vld [vmem:[%s10266_s1 + $0xc88] sm:$0xff]  }
 0x4bb   : > { %7560 = vmatprep.subr.bf16.mxu0 %v8444_v35  ;;  %7975 = vmatprep.subr.bf16.mxu1 %v8583_v1  ;;  %v4588_v35 = vrot.slane %v8492_v33, 1  ;;  %v8519_v0 = vld [vmem:[%s10266_s1 + $0xbb8] sm:$0xff]  }
 0x4bc   : > { %7989 = vmatprep.mubr.msk.bf16.mxu1 %vm8584_vm0, %v8583_v1 }
 0x4bd   : > { %7976 = vmatpush3.bf16.msra.mxu1 %v8446_v40  ;;  %v8495_v40 = vld [vmem:[%s10266_s1 + $0xcb8] sm:$0xff]  }
 0x4be   : > { %7561 = vmatpush3.bf16.msra.mxu0 %v8445_v39  ;;  %7977 = vmatprep.subr.bf16.mxu1 %v8583_v1  ;;  %v8494_v39 = vld [vmem:[%s10266_s1 + $0xc38] sm:$0xff]  }
 0x4bf   : > { %7562 = vmatprep.subr.bf16.mxu0 %v8447_v41  ;;  %v8496_v41 = vld [vmem:[%s10266_s1 + $0xc70] sm:$0xff]  }
 0x4c1   : > { %7978 = vmatpush3.bf16.msra.mxu1 %v8449_v43  ;;  %v8498_v43 = vld [vmem:[%s10266_s1 + $0xcb0] sm:$0xff]  }
 0x4c2   : > { %7563 = vmatpush3.bf16.msra.mxu0 %v8448_v42  ;;  %7979 = vmatprep.subr.bf16.mxu1 %v8583_v1  ;;  %v8497_v42 = vld [vmem:[%s10266_s1 + $0xc30] sm:$0xff]  }
 0x4c3   : > { %7564 = vmatprep.subr.bf16.mxu0 %v8450_v44  ;;  %v8499_v44 = vld [vmem:[%s10266_s1 + $0xc68] sm:$0xff]  }
 0x4c5   : > { %7980 = vmatpush3.bf16.msra.mxu1 %v8452_v47  ;;  %v8501_v47 = vld [vmem:[%s10266_s1 + $0xca8] sm:$0xff]  }
 0x4c6   : > { %7565 = vmatpush3.bf16.msra.mxu0 %v8451_v45  ;;  %7981 = vmatprep.subr.bf16.mxu1 %v8583_v1  ;;  %v8500_v45 = vld [vmem:[%s10266_s1 + $0xc28] sm:$0xff]  }
 0x4c7   : > { %7566 = vmatprep.subr.bf16.mxu0 %v8453_v48  ;;  %v8502_v48 = vld [vmem:[%s10266_s1 + $0xc60] sm:$0xff]  }
 0x4c9   : > { %7982 = vmatpush3.bf16.msra.mxu1 %v8455_v51  ;;  %v8504_v51 = vld [vmem:[%s10266_s1 + $0xca0] sm:$0xff]  }
 0x4ca   : > { %7567 = vmatpush3.bf16.msra.mxu0 %v8454_v49  ;;  %7983 = vmatprep.subr.bf16.mxu1 %v8583_v1  ;;  %v8503_v49 = vld [vmem:[%s10266_s1 + $0xc20] sm:$0xff]  }
 0x4cb   : > { %7568 = vmatprep.subr.bf16.mxu0 %v8456_v52  ;;  %v8505_v52 = vld [vmem:[%s10266_s1 + $0xc58] sm:$0xff]  }
 0x4cd   : > { %7984 = vmatpush3.bf16.msra.mxu1 %v8458_v54  ;;  %v8507_v54 = vld [vmem:[%s10266_s1 + $0xc98] sm:$0xff]  }
 0x4ce   : > { %7569 = vmatpush3.bf16.msra.mxu0 %v8457_v53  ;;  %7985 = vmatprep.subr.bf16.mxu1 %v8583_v1  ;;  %v8506_v53 = vld [vmem:[%s10266_s1 + $0xc18] sm:$0xff]  }
 0x4cf   : > { %7570 = vmatprep.subr.bf16.mxu0 %v8459_v55  ;;  %v8508_v55 = vld [vmem:[%s10266_s1 + $0xc50] sm:$0xff]  }
 0x4d1   : > { %7986 = vmatpush3.bf16.msra.mxu1 %v8461_v56  ;;  %v8510_v56 = vld [vmem:[%s10266_s1 + $0xc90] sm:$0xff]  }
 0x4d2   : > { %7571 = vmatpush3.bf16.msra.mxu0 %v8460_v18  ;;  %7987 = vmatprep.subr.bf16.mxu1 %v8583_v1  ;;  %v8509_v18 = vld [vmem:[%s10266_s1 + $0xc10] sm:$0xff]  }
 0x4d3   : > { %7572 = vmatprep.subr.bf16.mxu0 %v8462_v57  ;;  %v8511_v57 = vld [vmem:[%s10266_s1 + $0xc48] sm:$0xff]  }
 0x4d5   : > { %7988 = vmatpush3.bf16.msra.mxu1 %v8464_v62  ;;  %v8515_v62 = vld [vmem:[%s10266_s1 + $0xc00] sm:$0xff]  }
 0x4d6   : > { %7573 = vmatpush3.bf16.msra.mxu0 %v8463_v58  ;;  %7993 = vmatprep.subr.bf16.mxu1 %v8583_v1  ;;  %v8512_v58 = vld [vmem:[%s10266_s1 + $0xc08] sm:$0xff]  }
 0x4d7   : > { %7589 = vmatprep.subr.bf16.mxu0 %v8465_v63  ;;  %v8516_v63 = vld [vmem:[%s10266_s1 + $0xc80] sm:$0xff]  }
 0x4d8   : > { %7990 = vmatmul.mubr.bf16.vlgmr.msra.gmra.mxu1 %v4299_v6 }
 0x4d9   : > { %4480 = vmatmul.mubr.bf16.vlgmr.msra.gmra.mxu0 %v4297_v4  ;;  %7994 = vmatpush3.bf16.msra.mxu1 %v8469_v5 }
 0x4da   : > { %7590 = vmatpush3.bf16.msra.mxu0 %v8467_v3  ;;  %4768 = vmatprep.mubr.bf16.mxu0 %v4587_v8 }
 0x4db   : > { %7591 = vmatprep.subr.bf16.mxu0 %v8470_v7  ;;  %7995 = vmatprep.subr.bf16.mxu1 %v8583_v1 }
 0x4dc   : > { %8009 = vmatprep.mubr.msk.bf16.mxu1 %vm8584_vm0, %v8583_v1 }
 0x4dd   : > { %7996 = vmatpush3.bf16.msra.mxu1 %v8472_v10 }
 0x4de   : > { %7592 = vmatpush3.bf16.msra.mxu0 %v8471_v9  ;;  %7997 = vmatprep.subr.bf16.mxu1 %v8583_v1 }
 0x4df   : > { %7593 = vmatprep.subr.bf16.mxu0 %v8473_v11 }
 0x4e1   : > { %7998 = vmatpush3.bf16.msra.mxu1 %v8475_v13 }
 0x4e2   : > { %7594 = vmatpush3.bf16.msra.mxu0 %v8474_v12  ;;  %7999 = vmatprep.subr.bf16.mxu1 %v8583_v1 }
 0x4e3   : > { %7595 = vmatprep.subr.bf16.mxu0 %v8476_v14 }
 0x4e5   : > { %8000 = vmatpush3.bf16.msra.mxu1 %v8478_v16 }
 0x4e6   : > { %7596 = vmatpush3.bf16.msra.mxu0 %v8477_v15  ;;  %8001 = vmatprep.subr.bf16.mxu1 %v8583_v1 }
 0x4e7   : > { %7597 = vmatprep.subr.bf16.mxu0 %v8479_v17 }
 0x4e9   : > { %8002 = vmatpush3.bf16.msra.mxu1 %v8481_v20 }
 0x4ea   : > { %7598 = vmatpush3.bf16.msra.mxu0 %v8480_v19  ;;  %8003 = vmatprep.subr.bf16.mxu1 %v8583_v1 }
 0x4eb   : > { %7599 = vmatprep.subr.bf16.mxu0 %v8482_v21 }
 0x4ed   : > { %8004 = vmatpush3.bf16.msra.mxu1 %v8484_v23 }
 0x4ee   : > { %7600 = vmatpush3.bf16.msra.mxu0 %v8483_v22  ;;  %8005 = vmatprep.subr.bf16.mxu1 %v8583_v1 }
 0x4ef   : > { %7601 = vmatprep.subr.bf16.mxu0 %v8485_v24 }
 0x4f1   : > { %8006 = vmatpush3.bf16.msra.mxu1 %v8487_v27  ;;  %v6912_v27 = vld [vmem:[%s10267_s2 + $0x8] sm:$0x3] }
 0x4f2   : > { %7602 = vmatpush3.bf16.msra.mxu0 %v8486_v25  ;;  %8007 = vmatprep.subr.bf16.mxu1 %v8583_v1 }
 0x4f3   : > { %7603 = vmatprep.subr.bf16.mxu0 %v8488_v29 }
 0x4f5   : > { %8008 = vmatpush3.bf16.msra.mxu1 %v8490_v31 }
 0x4f6   : > { %7604 = vmatpush3.bf16.msra.mxu0 %v8489_v30  ;;  %8013 = vmatprep.subr.bf16.mxu1 %v8583_v1 }
 0x4f7   : > { %7620 = vmatprep.subr.bf16.mxu0 %v8493_v36 }
 0x4f8   : > { %8010 = vmatmul.mubr.bf16.vlgmr.msra.gmra.mxu1 %v4588_v35 }
 0x4f9   : > { %4769 = vmatmul.mubr.bf16.vlgmr.msra.gmra.mxu0 %v4586_v34  ;;  %8029 = vmatprep.mubr.msk.bf16.mxu1 %vm8584_vm0, %v8583_v1  ;;  %v4822_v34 = vrot.slane %v6912_v27, %v8997_v37 }
 0x4fa   : > { %7621 = vmatpush3.bf16.msra.mxu0 %v8494_v39  ;;  %8014 = vmatpush3.bf16.msra.mxu1 %v8495_v40  ;;  %v4828_v40 = vrot.slane %v6912_v27, %v9000_v38  ;;  %v8543_v27 = vld [vmem:[%s10266_s1 + $0xbc8] sm:$0xff]  }
 0x4fb   : > { %8015 = vmatprep.subr.bf16.mxu1 %v8583_v1  ;;  %7622 = vmatprep.subr.bf16.mxu0 %v8496_v41 }
 0x4fe   : > { %7623 = vmatpush3.bf16.msra.mxu0 %v8497_v42  ;;  %8016 = vmatpush3.bf16.msra.mxu1 %v8498_v43 }
 0x4ff   : > { %8017 = vmatprep.subr.bf16.mxu1 %v8583_v1  ;;  %7624 = vmatprep.subr.bf16.mxu0 %v8499_v44 }
 0x502   : > { %7625 = vmatpush3.bf16.msra.mxu0 %v8500_v45  ;;  %8018 = vmatpush3.bf16.msra.mxu1 %v8501_v47 }
 0x503   : > { %8019 = vmatprep.subr.bf16.mxu1 %v8583_v1  ;;  %7626 = vmatprep.subr.bf16.mxu0 %v8502_v48 }
 0x506   : > { %7627 = vmatpush3.bf16.msra.mxu0 %v8503_v49  ;;  %8020 = vmatpush3.bf16.msra.mxu1 %v8504_v51 }
 0x507   : > { %8021 = vmatprep.subr.bf16.mxu1 %v8583_v1  ;;  %7628 = vmatprep.subr.bf16.mxu0 %v8505_v52 }
 0x50a   : > { %7629 = vmatpush3.bf16.msra.mxu0 %v8506_v53  ;;  %8022 = vmatpush3.bf16.msra.mxu1 %v8507_v54 }
 0x50b   : > { %8023 = vmatprep.subr.bf16.mxu1 %v8583_v1  ;;  %7630 = vmatprep.subr.bf16.mxu0 %v8508_v55 }
 0x50e   : > { %7631 = vmatpush3.bf16.msra.mxu0 %v8509_v18  ;;  %8024 = vmatpush3.bf16.msra.mxu1 %v8510_v56 }
 0x50f   : > { %7632 = vmatprep.subr.bf16.mxu0 %v8511_v57  ;;  %8025 = vmatprep.subr.bf16.mxu1 %v8583_v1 }
 0x512   : > { %7633 = vmatpush3.bf16.msra.mxu0 %v8512_v58  ;;  %8026 = vmatpush3.bf16.msra.mxu1 %v8513_v59  ;;  %v4865_v58 = vld [vmem:[#allocation2 + $0x8] sm:$0x8] }
 0x513   : > { %7634 = vmatprep.subr.bf16.mxu0 %v8514_v60  ;;  %8027 = vmatprep.subr.bf16.mxu1 %v8583_v1 }
 0x516   : > { %7635 = vmatpush3.bf16.msra.mxu0 %v8515_v62  ;;  %8028 = vmatpush3.bf16.msra.mxu1 %v8516_v63  ;;  %v4844_v62 = vld [vmem:[#allocation2 + $0xc] sm:$0x7] }
 0x517   : > { %7651 = vmatprep.subr.bf16.mxu0 %v8519_v0  ;;  %8033 = vmatprep.subr.bf16.mxu1 %v8583_v1  ;;  %v4868_v0 = vld [vmem:[#allocation2 + $0x14] sm:$0x3] }
 0x578   : > { %v4278_v3 = vpop.f32.mrf.mxu1 }
 0x579   : > { %v7543_v2 = vpop.f32.mrf.mxu0 }
 0x57a   : > { %v7971_v5 = vpop.f32.mrf.mxu1 }
 0x57b   : > { %v7544_v4 = vpop.f32.mrf.mxu0 }
 0x57c   : > { %v4281_v7 = vpop.f32.mrf.mxu1  ;;  %v7545_v19 = vadd.f32 %v7544_v4, %v7543_v2 }
 0x57d   : > { %v7546_v6 = vpop.f32.mrf.mxu0 }
 0x57e   : > { %v7972_v9 = vpop.f32.mrf.mxu1  ;;  %v4279_v21 = vadd.f32 %v7545_v19, %v4278_v3  ;;  %v8536_v19 = vld [vmem:[%s10266_s1 + $0xb58] sm:$0xff]  }
 0x57f   : > { %v7547_v8 = vpop.f32.mrf.mxu0  ;;  %v8527_v9 = vld [vmem:[%s10266_s1 + $0xb70] sm:$0xff]  }
 0x580   : > { %v8526_v8 = vld [vmem:[%s10266_s1 + $0xbb0] sm:$0xff]  }
 0x598   : > { %v4521_v11 = vpop.f32.mrf.mxu1 }
 0x599   : > { %v7574_v10 = vpop.f32.mrf.mxu0 }
 0x59a   : > { %v7991_v13 = vpop.f32.mrf.mxu1 }
 0x59b   : > { %v7575_v12 = vpop.f32.mrf.mxu0  ;;  %v8531_v13 = vld [vmem:[%s10266_s1 + $0xbe8] sm:$0xff]  }
 0x59c   : > { %v4524_v15 = vpop.f32.mrf.mxu1  ;;  %v7576_v20 = vadd.f32 %v7575_v12, %v7574_v10  ;;  %v8528_v10 = vld [vmem:[%s10266_s1 + $0xbf0] sm:$0xff]   ;;  %v8530_v12 = vld [vmem:[%s10266_s1 + $0xb68] sm:$0xff]  }
 0x59d   : > { %v7577_v14 = vpop.f32.mrf.mxu0  ;;  %v8533_v15 = vld [vmem:[%s10266_s1 + $0xb60] sm:$0xff]  }
 0x59e   : > { %v7992_v17 = vpop.f32.mrf.mxu1  ;;  %v4482_v23 = vadd.f32 %v7576_v20, %v4279_v21  ;;  %v8532_v14 = vld [vmem:[%s10266_s1 + $0xba0] sm:$0xff]   ;;  %v8537_v20 = vld [vmem:[%s10266_s1 + $0xbd8] sm:$0xff]   ;;  %v8538_v21 = vld [vmem:[%s10266_s1 + $0xb90] sm:$0xff]  }
 0x59f   : > { %v7578_v16 = vpop.f32.mrf.mxu0  ;;  %v8535_v17 = vld [vmem:[%s10266_s1 + $0xb98] sm:$0xff]  }
 0x5a0   : > { %v4522_v32 = vadd.f32 %v4521_v11, %v4482_v23  ;;  %v8529_v11 = vld [vmem:[%s10266_s1 + $0xba8] sm:$0xff]   ;;  %v8534_v16 = vld [vmem:[%s10266_s1 + $0xbe0] sm:$0xff]   ;;  %v8540_v23 = vld [vmem:[%s10266_s1 + $0xbd0] sm:$0xff]  }
 0x5b8   : > { %v4810_v24 = vpop.f32.mrf.mxu1 }
 0x5b9   : > { %v7605_v22 = vpop.f32.mrf.mxu0 }
 0x5ba   : > { %v8011_v30 = vpop.f32.mrf.mxu1 }
 0x5bb   : > { %v7606_v25 = vpop.f32.mrf.mxu0  ;;  %v8545_v30 = vld [vmem:[%s10266_s1 + $0xb40] sm:$0xff]  }
 0x5bc   : > { %v7607_v29 = vadd.f32 %v7606_v25, %v7605_v22  ;;  %v4813_v35 = vpop.f32.mrf.mxu1  ;;  %v8539_v22 = vld [vmem:[%s10266_s1 + $0xb50] sm:$0xff]   ;;  %v8542_v25 = vld [vmem:[%s10266_s1 + $0xb48] sm:$0xff]  }
 0x5bd   : > { %v7608_v31 = vpop.f32.mrf.mxu0 }
 0x5be   : > { %v4811_v33 = vadd.f32 %v7607_v29, %v4810_v24  ;;  %v8012_v41 = vpop.f32.mrf.mxu1  ;;  %v8541_v24 = vld [vmem:[%s10266_s1 + $0xb88] sm:$0xff]   ;;  %v8544_v29 = vld [vmem:[%s10266_s1 + $0xb80] sm:$0xff]  }
 0x5bf   : > { %v7609_v36 = vpop.f32.mrf.mxu0  ;;  %v8552_v41 = vld [vmem:[%s10266_s1 + $0xd78] sm:$0xff]  }
 0x5c0   : > { %v4816_v39 = vadd.f32 %v4811_v33, %v4522_v32  ;;  %v8546_v33 = vld [vmem:[%s10266_s1 + $0xbc0] sm:$0xff]  }
 0x5c2   : > { %v4823_v42 = vadd.f32 %v4822_v34, %v4816_v39  ;;  %v8547_v34 = vld [vmem:[%s10266_s1 + $0xd38] sm:$0xff]  }
 0x5c3   : > { %v8549_v39 = vld [vmem:[%s10266_s1 + $0xcf8] sm:$0xff]  }
 0x5c4   : > { %vm4824_vm3 = vcmp.ge.f32.partialorder %v4823_v42, 0.0  ;;  %v4829_v43 = vmul.f32 %v4828_v40, %v4823_v42 }
 0x5c6   : > { %v4830_v44 = vsel %vm4824_vm3, %v4823_v42, %v4829_v43  ;;  %v8553_v43 = vld [vmem:[%s10266_s1 + $0xd30] sm:$0xff]  }
 0x5c7   : > { %v4831_v45 = vsel %vm8703_vm1, %v4830_v44, 0.0  ;;  %v4847_v47 = vpack.c.bf16 %v4830_v44, %v4830_v44  ;;  %v4849_v48 = vsel %vm8708_vm2, %v4830_v44, 0.0 }
 0x5c8   : > { %v7153_v49 = vpack.c.bf16 %v4831_v45, %v4831_v45  ;;  %v7154_v51 = vpack.c.bf16 %v4849_v48, %v4849_v48  ;;  %v8554_v45 = vld [vmem:[%s10266_s1 + $0xcf0] sm:$0xff]   ;;  %v8556_v48 = vld [vmem:[%s10266_s1 + $0xd28] sm:$0xff]  }
 0x5c9   : > { %4848 = vst [vmem:[#allocation2 + $0x10] sm:$0x3] %v4847_v47  ;;  %v8555_v47 = vld [vmem:[%s10266_s1 + $0xd70] sm:$0xff]  }
 0x5ca   : > { %v4837_v52 = vshrl.u32 %v7153_v49, 16  ;;  %v4855_v53 = vshll.u32 %v7154_v51, 16  ;;  %v4858_v54 = vshrl.u32 %v7154_v51, 16  ;;  %v4840_v18 = vshll.u32 %v7153_v49, 16  ;;  %v8557_v49 = vld [vmem:[%s10266_s1 + $0xce8] sm:$0xff]  }
 0x5cb   : > { %v8558_v51 = vld [vmem:[%s10266_s1 + $0xd68] sm:$0xff]  }
 0x5cc   : > { %v4839_v55 = vrot.slane %v4837_v52, 7  ;;  %v4857_v56 = vrot.slane %v4855_v53, 5  ;;  %v4860_v57 = vrot.slane %v4858_v54, 4  ;;  %v8559_v52 = vld [vmem:[%s10266_s1 + $0xd20] sm:$0xff]  }
 0x5cd   : > { %v8560_v53 = vld [vmem:[%s10266_s1 + $0xce0] sm:$0xff]  }
 0x5ce   : > { %v4842_v59 = vor.u32 %v4840_v18, %v4839_v55  ;;  %v4861_v60 = vor.u32 %v4860_v57, %v4857_v56  ;;  %v4866_v26 = vsel %vm8753_vm11, %v4857_v56, %v4865_v58  ;;  %v8561_v54 = vld [vmem:[%s10266_s1 + $0xd60] sm:$0xff]   ;;  %v8562_v55 = vld [vmem:[%s10266_s1 + $0xd18] sm:$0xff]   ;;  %v8565_v57 = vld [vmem:[%s10266_s1 + $0xd10] sm:$0xff]  }
 0x5cf   : > { %4867 = vst [vmem:[#allocation2 + $0x8] sm:$0x8] %v4866_v26  ;;  %v8563_v18 = vld [vmem:[%s10266_s1 + $0xcd8] sm:$0xff]   ;;  %v8566_v58 = vld [vmem:[%s10266_s1 + $0xcd0] sm:$0xff]   ;;  %v8569_v26 = vld [vmem:[%s10266_s1 + $0xcc8] sm:$0xff]  }
 0x5d0   : > { %v4845_v28 = vsel %vm8731_vm7, %v4842_v59, %v4844_v62  ;;  %v4862_v63 = vrot.slane %v4861_v60, 4  ;;  %v8524_v6 = vld [vmem:[#allocation2 + $0x4] ss:$12 sps:$4 sm:$0x18]   ;;  %v8564_v56 = vld [vmem:[%s10266_s1 + $0xd58] sm:$0xff]   ;;  %v8568_v60 = vld [vmem:[%s10266_s1 + $0xd08] sm:$0xff]  }
 0x5d1   : > { %4846 = vst [vmem:[#allocation2 + $0xc] sm:$0x7] %v4845_v28  ;;  %v5224_v50 = vrot.slane %v8524_v6, 3  ;;  %v8567_v59 = vld [vmem:[%s10266_s1 + $0xd50] sm:$0xff]   ;;  %v8570_v62 = vld [vmem:[%s10266_s1 + $0xd48] sm:$0xff]   ;;  %v8571_v28 = vld [vmem:[%s10266_s1 + $0xd00] sm:$0xff]  }
 0x5d2   : > { %v4869_v2 = vsel %vm8736_vm8, %v4862_v63, %v4868_v0  ;;  %v8572_v63 = vld [vmem:[%s10266_s1 + $0xcc0] sm:$0xff]  }
 0x5d3   : > { %4870 = vst [vmem:[#allocation2 + $0x14] sm:$0x3] %v4869_v2  ;;  %v8573_v2 = vld [vmem:[%s10266_s1 + $0xd40] sm:$0xff]  }
 0x5d8   : > { %v4924_v3 = vld [vmem:[#allocation2 + $0xc] sm:$0x33] }
 0x5d9   : > { %v7011_v4 = vcombine.low %v4924_v3, %v4924_v3  ;;  %v7012_v5 = vcombine.high %v4924_v3, %v4924_v3  ;;  %v10159_v31 = vld [vmem:[#allocation2 + $0xc] sm:$0x66]  ;;  %v8522_v32 = vld [vmem:[#allocation2] ss:$12 sps:$4 sm:$0x18]  }
 0x5da   : > { %v8521_v7 = vld [vmem:[#allocation2 + $0x14] ss:$0 sps:$4 sm:$0x33]   ;;  %v7114_v36 = vcombine.high %v10159_v31, %v10159_v31  ;;  %v5223_v40 = vrot.slane %v8522_v32, 3  ;;  %v7113_v0 = vcombine.low %v10159_v31, %v10159_v31 }
 0x5db   : > { %5162 = vmatprep.mubr.bf16.mxu0 %v7012_v5  ;;  %8030 = vmatmul.mubr.bf16.vlgmr.msra.gmra.mxu1 %v8521_v7  ;;  %v8548_v35 = vld [vmem:[#allocation2 + $0x8] ss:$12 sps:$4 sm:$0x18]  }
 0x5dc   : > { %5163 = vmatmul.mubr.bf16.vlgmr.msra.gmra.mxu0 %v7011_v4  ;;  %8034 = vmatpush3.bf16.msra.mxu1 %v8525_v46  ;;  %v5225_v42 = vrot.slane %v8548_v35, 3  ;;  %v5513_v44 = vrot.slane %v7114_v36, 1  ;;  %v8574_v3 = vld [vmem:[#allocation2 + $0x14] ss:$0 sps:$4 sm:$0x66]   ;;  %v5512_v4 = vrot.slane %v7113_v0, 1 }
 0x5dd   : > { %7652 = vmatpush3.bf16.msra.mxu0 %v8520_v61  ;;  %5405 = vmatprep.mubr.bf16.mxu0 %v5224_v50  ;;  %v5514_v5 = vrot.slane %v8574_v3, 1 }
 0x5de   : > { %7653 = vmatprep.subr.bf16.mxu0 %v8526_v8  ;;  %8035 = vmatprep.subr.bf16.mxu1 %v8583_v1 }
 0x5df   : > { %8049 = vmatprep.mubr.msk.bf16.mxu1 %vm8584_vm0, %v8583_v1 }
 0x5e0   : > { %8036 = vmatpush3.bf16.msra.mxu1 %v8528_v10 }
 0x5e1   : > { %7654 = vmatpush3.bf16.msra.mxu0 %v8527_v9  ;;  %8037 = vmatprep.subr.bf16.mxu1 %v8583_v1 }
 0x5e2   : > { %7655 = vmatprep.subr.bf16.mxu0 %v8529_v11 }
 0x5e4   : > { %8038 = vmatpush3.bf16.msra.mxu1 %v8531_v13 }
 0x5e5   : > { %7656 = vmatpush3.bf16.msra.mxu0 %v8530_v12  ;;  %8039 = vmatprep.subr.bf16.mxu1 %v8583_v1 }
 0x5e6   : > { %7657 = vmatprep.subr.bf16.mxu0 %v8532_v14 }
 0x5e8   : > { %8040 = vmatpush3.bf16.msra.mxu1 %v8534_v16 }
 0x5e9   : > { %7658 = vmatpush3.bf16.msra.mxu0 %v8533_v15  ;;  %8041 = vmatprep.subr.bf16.mxu1 %v8583_v1 }
 0x5ea   : > { %7659 = vmatprep.subr.bf16.mxu0 %v8535_v17 }
 0x5ec   : > { %8042 = vmatpush3.bf16.msra.mxu1 %v8537_v20 }
 0x5ed   : > { %7660 = vmatpush3.bf16.msra.mxu0 %v8536_v19  ;;  %8043 = vmatprep.subr.bf16.mxu1 %v8583_v1 }
 0x5ee   : > { %7661 = vmatprep.subr.bf16.mxu0 %v8538_v21 }
 0x5f0   : > { %8044 = vmatpush3.bf16.msra.mxu1 %v8540_v23 }
 0x5f1   : > { %7662 = vmatpush3.bf16.msra.mxu0 %v8539_v22  ;;  %8045 = vmatprep.subr.bf16.mxu1 %v8583_v1 }
 0x5f2   : > { %7663 = vmatprep.subr.bf16.mxu0 %v8541_v24 }
 0x5f4   : > { %8046 = vmatpush3.bf16.msra.mxu1 %v8543_v27  ;;  %v7140_v27 = vld [vmem:[%s10267_s2 + $0xa] sm:$0x3] }
 0x5f5   : > { %7664 = vmatpush3.bf16.msra.mxu0 %v8542_v25  ;;  %8047 = vmatprep.subr.bf16.mxu1 %v8583_v1 }
 0x5f6   : > { %7665 = vmatprep.subr.bf16.mxu0 %v8544_v29 }
 0x5f8   : > { %8048 = vmatpush3.bf16.msra.mxu1 %v8546_v33 }
 0x5f9   : > { %7666 = vmatpush3.bf16.msra.mxu0 %v8545_v30  ;;  %8053 = vmatprep.subr.bf16.mxu1 %v8583_v1 }
 0x5fa   : > { %7682 = vmatprep.subr.bf16.mxu0 %v8547_v34  ;;  %v5748_v34 = vrot.slane %v7140_v27, %v8997_v37 }
 0x5fb   : > { %8050 = vmatmul.mubr.bf16.vlgmr.msra.gmra.mxu1 %v5225_v42 }
 0x5fc   : > { %5406 = vmatmul.mubr.bf16.vlgmr.msra.gmra.mxu0 %v5223_v40  ;;  %8054 = vmatpush3.bf16.msra.mxu1 %v8552_v41  ;;  %v5754_v40 = vrot.slane %v7140_v27, %v9000_v38  ;;  %v5757_v41 = vld [vmem:[%s8694_s30] sm:$0x3] }
 0x5fd   : > { %7683 = vmatpush3.bf16.msra.mxu0 %v8549_v39  ;;  %5694 = vmatprep.mubr.bf16.mxu0 %v5513_v44  ;;  %v5758_v44 = vunpack.c.l.bf16 %v5757_v41 }
 0x5fe   : > { %7684 = vmatprep.subr.bf16.mxu0 %v8553_v43  ;;  %8055 = vmatprep.subr.bf16.mxu1 %v8583_v1 }
 0x5ff   : > { %8069 = vmatprep.mubr.msk.bf16.mxu1 %vm8584_vm0, %v8583_v1 }
 0x600   : > { %8056 = vmatpush3.bf16.msra.mxu1 %v8555_v47 }
 0x601   : > { %7685 = vmatpush3.bf16.msra.mxu0 %v8554_v45  ;;  %8057 = vmatprep.subr.bf16.mxu1 %v8583_v1 }
 0x602   : > { %7686 = vmatprep.subr.bf16.mxu0 %v8556_v48 }
 0x604   : > { %8058 = vmatpush3.bf16.msra.mxu1 %v8558_v51 }
 0x605   : > { %7687 = vmatpush3.bf16.msra.mxu0 %v8557_v49  ;;  %8059 = vmatprep.subr.bf16.mxu1 %v8583_v1 }
 0x606   : > { %7688 = vmatprep.subr.bf16.mxu0 %v8559_v52 }
 0x608   : > { %8060 = vmatpush3.bf16.msra.mxu1 %v8561_v54 }
 0x609   : > { %7689 = vmatpush3.bf16.msra.mxu0 %v8560_v53  ;;  %8061 = vmatprep.subr.bf16.mxu1 %v8583_v1 }
 0x60a   : > { %7690 = vmatprep.subr.bf16.mxu0 %v8562_v55 }
 0x60c   : > { %8062 = vmatpush3.bf16.msra.mxu1 %v8564_v56 }
 0x60d   : > { %7691 = vmatpush3.bf16.msra.mxu0 %v8563_v18  ;;  %8063 = vmatprep.subr.bf16.mxu1 %v8583_v1 }
 0x60e   : > { %7692 = vmatprep.subr.bf16.mxu0 %v8565_v57 }
 0x610   : > { %8064 = vmatpush3.bf16.msra.mxu1 %v8567_v59 }
 0x611   : > { %7693 = vmatpush3.bf16.msra.mxu0 %v8566_v58  ;;  %8065 = vmatprep.subr.bf16.mxu1 %v8583_v1 }
 0x612   : > { %7694 = vmatprep.subr.bf16.mxu0 %v8568_v60 }
 0x614   : > { %8066 = vmatpush3.bf16.msra.mxu1 %v8570_v62 }
 0x615   : > { %7695 = vmatpush3.bf16.msra.mxu0 %v8569_v26  ;;  %8067 = vmatprep.subr.bf16.mxu1 %v8583_v1 }
 0x616   : > { %7696 = vmatprep.subr.bf16.mxu0 %v8571_v28 }
 0x618   : > { %8068 = vmatpush3.bf16.msra.mxu1 %v8573_v2 }
 0x619   : > { %7697 = vmatpush3.bf16.msra.mxu0 %v8572_v63 }
 0x61b   : > { %8070 = vmatmul.mubr.bf16.vlgmr.msra.gmra.mxu1 %v5514_v5 }
 0x61c   : > { %5695 = vmatmul.mubr.bf16.vlgmr.msra.gmra.mxu0 %v5512_v4 }
 0x69b   : > { %v5204_v6 = vpop.f32.mrf.mxu1 }
 0x69c   : > { %v7636_v61 = vpop.f32.mrf.mxu0 }
 0x69d   : > { %v8031_v7 = vpop.f32.mrf.mxu1 }
 0x69e   : > { %v7637_v46 = vpop.f32.mrf.mxu0 }
 0x69f   : > { %v5207_v50 = vpop.f32.mrf.mxu1  ;;  %v7638_v19 = vadd.f32 %v7637_v46, %v7636_v61 }
 0x6a0   : > { %v7639_v8 = vpop.f32.mrf.mxu0 }
 0x6a1   : > { %v8032_v10 = vpop.f32.mrf.mxu1  ;;  %v5205_v21 = vadd.f32 %v7638_v19, %v5204_v6 }
 0x6a2   : > { %v7640_v9 = vpop.f32.mrf.mxu0 }
 0x6bb   : > { %v5447_v12 = vpop.f32.mrf.mxu1 }
 0x6bc   : > { %v7667_v11 = vpop.f32.mrf.mxu0 }
 0x6bd   : > { %v8051_v14 = vpop.f32.mrf.mxu1 }
 0x6be   : > { %v7668_v13 = vpop.f32.mrf.mxu0 }
 0x6bf   : > { %v5450_v15 = vpop.f32.mrf.mxu1  ;;  %v7669_v20 = vadd.f32 %v7668_v13, %v7667_v11 }
 0x6c0   : > { %v7670_v1 = vpop.f32.mrf.mxu0 }
 0x6c1   : > { %v8052_v17 = vpop.f32.mrf.mxu1  ;;  %v5408_v23 = vadd.f32 %v7669_v20, %v5205_v21 }
 0x6c2   : > { %v7671_v16 = vpop.f32.mrf.mxu0 }
 0x6c3   : > { %v5448_v32 = vadd.f32 %v5447_v12, %v5408_v23 }
 0x6db   : > { %v5736_v24 = vpop.f32.mrf.mxu1 }
 0x6dc   : > { %v7698_v22 = vpop.f32.mrf.mxu0 }
 0x6dd   : > { %v8071_v30 = vpop.f32.mrf.mxu1 }
 0x6de   : > { %v7699_v25 = vpop.f32.mrf.mxu0 }
 0x6df   : > { %v7700_v29 = vadd.f32 %v7699_v25, %v7698_v22  ;;  %v5739_v35 = vpop.f32.mrf.mxu1 }
 0x6e0   : > { %v7701_v31 = vpop.f32.mrf.mxu0 }
 0x6e1   : > { %v5737_v33 = vadd.f32 %v7700_v29, %v5736_v24  ;;  %v8072_v42 = vpop.f32.mrf.mxu1 }
 0x6e2   : > { %v7702_v36 = vpop.f32.mrf.mxu0 }
 0x6e3   : > { %v5742_v39 = vadd.f32 %v5737_v33, %v5448_v32 }
 0x6e5   : > { %v5749_v43 = vadd.f32 %v5748_v34, %v5742_v39 }
 0x6e7   : > { %vm5750_vm0 = vcmp.ge.f32.partialorder %v5749_v43, 0.0  ;;  %v5755_v45 = vmul.f32 %v5754_v40, %v5749_v43 }
 0x6e9   : > { %v5756_v47 = vsel %vm5750_vm0, %v5749_v43, %v5755_v45 }
 0x6ea   : > { %v5759_v48 = vadd.f32 %v5758_v44, %v5756_v47 }
 0x6ec   : > { %v5760_v49 = vpack.c.bf16 %v5759_v48, %v5759_v48 }
 0x6ee   : > { %5761 = vst [vmem:[%s165_s18] sm:$0x3] %v5760_v49 }
 0x6ef PF: > { %s13_s12 = sadd.s32 1, %s8581_s12  }
 0x6f0   : > { %p10_p4 = scmp.ge.s32.totalorder %s13_s12, 4  }
 0x6f2   :  { %12 = sbr.rel (!%p10_p4) target bundleno = 1 (0x1), region = 84 }

// kernel: tile.8
= control target key start
LH: loop header
LB: loop body
LE: loop exit
PB: predicated region body
PF: predicated region fallthrough
CT: control target
= control target key end

     0   :  { %s22_s0 = inlined_call_operand.vmem [shape: f32[4], index: 0, kind: input, shape index: {}]   ;;  %s23_s1 = inlined_call_operand.vmem [shape: f32[4,4], index: 1, kind: output, shape index: {}]  }
   0x1   :  { %v4_v0 = vld [vmem:[%s22_s0] ss:$0 sm:$0xff] }
   0x2   :  { %5 = vst [vmem:[%s23_s1] sm:$0xf] %v4_v0 }

// kernel: flow_block_forward.9
= control target key start
LH: loop header
LB: loop body
LE: loop exit
PB: predicated region body
PF: predicated region fallthrough
CT: control target
= control target key end

     0   :  { %v428_v1 = vmov 0.0   ;;  %vm429_vm0 = vmmov 0   ;;  %v68_v28 = vlaneseq  ;;  %s540_s1 = inlined_call_operand.vmem [shape: bf16[384,128], index: 1, kind: input, shape index: {}]   ;;  %s541_s0 = inlined_call_operand.vmem [shape: bf16[16,384], index: 0, kind: input, shape index: {}]   ;;  %s542_s2 = inlined_call_operand.vmem [shape: f32[2,128], index: 2, kind: input, shape index: {}]   ;;  %s543_s3 = inlined_call_operand.vmem [shape: f32[16,128], index: 3, kind: output, shape index: {}]  }
   0x1   :  { %v400_v0 = vld [vmem:[%s540_s1 + $0x78] sm:$0xff]   ;;  %378 = vmatprep.subr.bf16.mxu1 %v428_v1  ;;  %394 = vmatprep.mubr.msk.bf16.mxu1 %vm429_vm0, %v428_v1  ;;  %v403_v4 = vld [vmem:[%s540_s1 + $0x70] sm:$0xff]   ;;  %v406_v7 = vld [vmem:[%s540_s1 + $0x68] sm:$0xff]  }
   0x2   :  { %v401_v2 = vld [vmem:[%s540_s1 + $0x38] sm:$0xff]   ;;  %347 = vmatprep.subr.bf16.mxu0 %v400_v0  ;;  %v404_v5 = vld [vmem:[%s540_s1 + $0x30] sm:$0xff]   ;;  %v407_v8 = vld [vmem:[%s540_s1 + $0x28] sm:$0xff]   ;;  %v69_v29 = vshrl.u32 %v68_v28, 7 }
   0x3   :  { %v402_v3 = vld [vmem:[%s540_s1 + $0xb8] sm:$0xff]   ;;  %348 = vmatpush3.bf16.msra.mxu0 %v401_v2  ;;  %v405_v6 = vld [vmem:[%s540_s1 + $0xb0] sm:$0xff]   ;;  %v408_v9 = vld [vmem:[%s540_s1 + $0xa8] sm:$0xff]  }
   0x4   :  { %379 = vmatpush3.bf16.msra.mxu1 %v402_v3  ;;  %349 = vmatprep.subr.bf16.mxu0 %v403_v4  ;;  %v409_v10 = vld [vmem:[%s540_s1 + $0x60] sm:$0xff]   ;;  %v412_v13 = vld [vmem:[%s540_s1 + $0x58] sm:$0xff]   ;;  %v415_v16 = vld [vmem:[%s540_s1 + $0x50] sm:$0xff]   ;;  %v70_v30 = vsub.s32 0, %v69_v29 }
   0x5   :  { %380 = vmatprep.subr.bf16.mxu1 %v428_v1  ;;  %v410_v11 = vld [vmem:[%s540_s1 + $0x20] sm:$0xff]   ;;  %v413_v14 = vld [vmem:[%s540_s1 + $0x18] sm:$0xff]   ;;  %v416_v17 = vld [vmem:[%s540_s1 + $0x10] sm:$0xff]  }
   0x6   :  { %v411_v12 = vld [vmem:[%s540_s1 + $0xa0] sm:$0xff]   ;;  %v414_v15 = vld [vmem:[%s540_s1 + $0x98] sm:$0xff]   ;;  %v417_v18 = vld [vmem:[%s540_s1 + $0x90] sm:$0xff]  }
   0x7   :  { %350 = vmatpush3.bf16.msra.mxu0 %v404_v5  ;;  %v418_v19 = vld [vmem:[%s540_s1 + $0x48] sm:$0xff]   ;;  %v421_v22 = vld [vmem:[%s540_s1 + $0x40] sm:$0xff]  }
   0x8   :  { %381 = vmatpush3.bf16.msra.mxu1 %v405_v6  ;;  %351 = vmatprep.subr.bf16.mxu0 %v406_v7  ;;  %v419_v20 = vld [vmem:[%s540_s1 + $0x8] sm:$0xff]   ;;  %v426_v23 = vld [vmem:[%s541_s0 + $0x4] ss:$12 sps:$4 sm:$0xff]   ;;  %v67_v31 = vld [vmem:[%s542_s2] sm:$0x3] }
   0x9   :  { %382 = vmatprep.subr.bf16.mxu1 %v428_v1  ;;  %v420_v21 = vld [vmem:[%s540_s1 + $0x88] sm:$0xff]   ;;  %v422_v24 = vld [vmem:[%s540_s1] sm:$0xff]   ;;  %264 = vmatprep.mubr.bf16.mxu0 %v426_v23  ;;  %v71_v34 = vrot.slane %v67_v31, %v70_v30 }
   0xa   :  { %v423_v25 = vld [vmem:[%s540_s1 + $0x80] sm:$0xff]   ;;  %v427_v27 = vld [vmem:[%s541_s0 + $0x8] ss:$12 sps:$4 sm:$0xff]  }
   0xb   :  { %352 = vmatpush3.bf16.msra.mxu0 %v407_v8  ;;  %v424_v26 = vld [vmem:[%s541_s0] ss:$12 sps:$4 sm:$0xff]  }
   0xc   :  { %383 = vmatpush3.bf16.msra.mxu1 %v408_v9  ;;  %353 = vmatprep.subr.bf16.mxu0 %v409_v10 }
   0xd   :  { %384 = vmatprep.subr.bf16.mxu1 %v428_v1 }
   0xf   :  { %354 = vmatpush3.bf16.msra.mxu0 %v410_v11 }
  0x10   :  { %385 = vmatpush3.bf16.msra.mxu1 %v411_v12  ;;  %355 = vmatprep.subr.bf16.mxu0 %v412_v13 }
  0x11   :  { %386 = vmatprep.subr.bf16.mxu1 %v428_v1 }
  0x13   :  { %356 = vmatpush3.bf16.msra.mxu0 %v413_v14 }
  0x14   :  { %387 = vmatpush3.bf16.msra.mxu1 %v414_v15  ;;  %357 = vmatprep.subr.bf16.mxu0 %v415_v16 }
  0x15   :  { %388 = vmatprep.subr.bf16.mxu1 %v428_v1 }
  0x17   :  { %358 = vmatpush3.bf16.msra.mxu0 %v416_v17 }
  0x18   :  { %389 = vmatpush3.bf16.msra.mxu1 %v417_v18  ;;  %359 = vmatprep.subr.bf16.mxu0 %v418_v19 }
  0x19   :  { %390 = vmatprep.subr.bf16.mxu1 %v428_v1 }
  0x1b   :  { %360 = vmatpush3.bf16.msra.mxu0 %v419_v20 }
  0x1c   :  { %391 = vmatpush3.bf16.msra.mxu1 %v420_v21  ;;  %361 = vmatprep.subr.bf16.mxu0 %v421_v22 }
  0x1d   :  { %392 = vmatprep.subr.bf16.mxu1 %v428_v1 }
  0x1f   :  { %362 = vmatpush3.bf16.msra.mxu0 %v422_v24 }
  0x20   :  { %393 = vmatpush3.bf16.msra.mxu1 %v423_v25 }
  0x22   :  { %265 = vmatmul.mubr.bf16.vlgmr.msra.gmra.mxu0 %v424_v26 }
  0x23   :  { %395 = vmatmul.mubr.bf16.vlgmr.msra.gmra.mxu1 %v427_v27 }
  0xe2   :  { %v363_v32 = vpop.f32.mrf.mxu0 }
  0xe3   :  { %v307_v33 = vpop.f32.mrf.mxu1 }
  0xe4   :  { %v364_v35 = vpop.f32.mrf.mxu0 }
  0xe5   :  { %v365_v36 = vadd.f32 %v364_v35, %v363_v32  ;;  %v396_v37 = vpop.f32.mrf.mxu1 }
  0xe6   :  { %v366_v38 = vpop.f32.mrf.mxu0 }
  0xe7   :  { %v267_v39 = vadd.f32 %v365_v36, %v71_v34  ;;  %v310_v40 = vpop.f32.mrf.mxu1 }
  0xe8   :  { %v367_v41 = vpop.f32.mrf.mxu0 }
  0xe9   :  { %v308_v42 = vadd.f32 %v307_v33, %v267_v39  ;;  %v368_v43 = vadd.f32 %v367_v41, %v366_v38  ;;  %v397_v44 = vpop.f32.mrf.mxu1 }
  0xeb   :  { %314 = vst [vmem:[%s543_s3] sm:$0xff] %v308_v42  ;;  %v270_v45 = vadd.f32 %v368_v43, %v71_v34 }
  0xed   :  { %v311_v46 = vadd.f32 %v310_v40, %v270_v45 }
  0xef   :  { %315 = vst [vmem:[%s543_s3 + $0x8] sm:$0xff] %v311_v46 }

</bundles_post_ra>
